<compile_context>
chip_gen: v7x
topology: tpu7x:2x2x1
jax: 0.10.0
libtpu: 0.0.40
codegen_flags: <defaults>
</compile_context>

<pallas_src>
import math

import jax
import jax.numpy as jnp
from jax.experimental import pallas as pl
from jax.experimental.pallas import tpu as pltpu

# ----------------------------- config (scaled-down) -----------------------------
D        = 128    # xf_width          (1024 in the real model)
LAYERS   = 2      # xf_layers         (16)
HEADS    = 4      # xf_heads          (32)
HEAD_DIM = D // HEADS
CLIP_W   = 192    # clip_width        (512*3)
T5_DIM   = 128    # t5 embedding dim  (1024)
FF_MULT  = 4
INNER    = D * FF_MULT
SEQ_T5   = 8
B        = 2
SEQ      = SEQ_T5 + 4          # [t5 tokens | clip_sentence | time | x | final_emb]
M_TOK    = B * SEQ             # flattened token-slab rows
NEG_INF  = -1e30


# ============================ kernel 1: fused embeddings =========================
def _embed_kernel(
    # data
    x_ref, te_ref, cs_ref, t5_ref,
    # x_proj: Linear -> SiLU -> LayerNorm -> Linear
    xw0_ref, xb0_ref, xg_ref, xbeta_ref, xw1_ref, xb1_ref,
    # clip_sentence_proj (same structure)
    cw0_ref, cb0_ref, cg_ref, cbeta_ref, cw1_ref, cb1_ref,
    # time_embed: Linear -> SiLU -> Linear
    tw0_ref, tb0_ref, tw1_ref, tb1_ref,
    # t5_proj: LayerNorm -> Linear -> SiLU -> LayerNorm -> Linear
    sg0_ref, sbeta0_ref, sw0_ref, sb0_ref, sg1_ref, sbeta1_ref, sw1_ref, sb1_ref,
    # learned final token
    fin_ref,
    # output: flattened [B*SEQ, D] token slab
    o_ref,
):
    def dot(a, w_ref):                                  # bf16 MXU, f32 accumulate
        return jnp.dot(a.astype(jnp.bfloat16), w_ref[...],
                       preferred_element_type=jnp.float32)

    def layer_norm(v, g_ref, beta_ref):
        mu = jnp.mean(v, axis=-1, keepdims=True)
        var = jnp.mean(jnp.square(v - mu), axis=-1, keepdims=True)
        return (v - mu) * jax.lax.rsqrt(var + 1e-5) * g_ref[...] + beta_ref[...]

    def silu(v):
        return v * jax.nn.sigmoid(v)

    # x_proj                              [B, CLIP_W] -> [B, D]
    xt = dot(x_ref[...], xw0_ref) + xb0_ref[...]
    xt = layer_norm(silu(xt), xg_ref, xbeta_ref)
    xt = dot(xt, xw1_ref) + xb1_ref[...]

    # clip_sentence_proj                  [B, CLIP_W] -> [B, D]
    ct = dot(cs_ref[...], cw0_ref) + cb0_ref[...]
    ct = layer_norm(silu(ct), cg_ref, cbeta_ref)
    ct = dot(ct, cw1_ref) + cb1_ref[...]

    # time_embed                          [B, D] -> [B, D]
    tt = silu(dot(te_ref[...], tw0_ref) + tb0_ref[...])
    tt = dot(tt, tw1_ref) + tb1_ref[...]

    # t5_proj                             [B*SEQ_T5, T5_DIM] -> [B*SEQ_T5, D]
    st = layer_norm(t5_ref[...], sg0_ref, sbeta0_ref)
    st = silu(dot(st, sw0_ref) + sb0_ref[...])
    st = layer_norm(st, sg1_ref, sbeta1_ref)
    st = dot(st, sw1_ref) + sb1_ref[...]

    # scatter tokens into the flattened slab; per batch:
    #   [t5 tokens | clip_sentence | time | x | final_emb]   (vocab is None branch)
    for b in range(B):
        base = b * SEQ
        o_ref[pl.ds(base, SEQ_T5), :]         = st[b * SEQ_T5:(b + 1) * SEQ_T5, :]
        o_ref[pl.ds(base + SEQ_T5, 1), :]     = ct[b:b + 1, :]
        o_ref[pl.ds(base + SEQ_T5 + 1, 1), :] = tt[b:b + 1, :]
        o_ref[pl.ds(base + SEQ_T5 + 2, 1), :] = xt[b:b + 1, :]
        o_ref[pl.ds(base + SEQ_T5 + 3, 1), :] = fin_ref[...]


def embed_tokens(p, x, te, clip_s, t5_word_emb):
    t5_flat = t5_word_emb.reshape(B * SEQ_T5, T5_DIM)
    args = (
        x, te, clip_s, t5_flat,
        p["x_w0"], p["x_b0"], p["x_g"], p["x_beta"], p["x_w1"], p["x_b1"],
        p["c_w0"], p["c_b0"], p["c_g"], p["c_beta"], p["c_w1"], p["c_b1"],
        p["t_w0"], p["t_b0"], p["t_w1"], p["t_b1"],
        p["s_g0"], p["s_beta0"], p["s_w0"], p["s_b0"],
        p["s_g1"], p["s_beta1"], p["s_w1"], p["s_b1"],
        p["final_emb"],
    )
    return pl.pallas_call(
        _embed_kernel,
        out_shape=jax.ShapeDtypeStruct((M_TOK, D), jnp.float32),
    )(*args)


# ============================ kernel 2: whole decoder ============================
def _decoder_kernel(h0_ref, mask_ref,
                    wqkv_ref, wo_ref, bo_ref, g_attn_ref, g_ff_ref,
                    wff1_ref, bff1_ref, wff2_ref, bff2_ref,
                    g_fin_ref, w_out_ref,
                    o_ref, h_ref):
    layer = pl.program_id(0)

    @pl.when(layer == 0)
    def _init():
        h_ref[...] = h0_ref[...]

    def rms(v, g_ref):
        ms = jnp.mean(jnp.square(v), axis=-1, keepdims=True)
        return v * jax.lax.rsqrt(ms + 1e-8) * g_ref[...]

    def dot(a, w):
        return jnp.dot(a.astype(jnp.bfloat16), w, preferred_element_type=jnp.float32)

    h = h_ref[...]                                          # [B*SEQ, D] f32 residual stream

    # ---------------- attention block (pre-norm RMSNorm, causal MHA) -------------
    n = rms(h, g_attn_ref)
    qkv = dot(n, wqkv_ref[...])                             # one fused [D, 3D] projection
    q = qkv[:, 0:D]
    k = qkv[:, D:2 * D]
    v = qkv[:, 2 * D:3 * D]

    scale = HEAD_DIM ** -0.5
    bias = mask_ref[...]                                    # 0 / -1e30 batch-causal mask
    attn = jnp.zeros((M_TOK, D), jnp.float32)
    for hd in range(HEADS):                                 # static head loop, lane slices
        lo = hd * HEAD_DIM
        qh = q[:, lo:lo + HEAD_DIM].astype(jnp.bfloat16)
        kh = k[:, lo:lo + HEAD_DIM].astype(jnp.bfloat16)
        vh = v[:, lo:lo + HEAD_DIM].astype(jnp.bfloat16)
        s = jax.lax.dot_general(qh, kh, (((1,), (1,)), ((), ())),
                                preferred_element_type=jnp.float32)
        s = s * scale + bias
        p_att = jnp.exp(s - jnp.max(s, axis=-1, keepdims=True))
        p_att = p_att * pl.reciprocal(jnp.sum(p_att, axis=-1, keepdims=True), approx=True)
        oh = jnp.dot(p_att.astype(jnp.bfloat16), vh, preferred_element_type=jnp.float32)
        # fold the output projection in per-head (== concat heads then @ wo)
        wo_blk = wo_ref[pl.ds(lo, HEAD_DIM), :]
        attn = attn + dot(oh, wo_blk)
    h = h + attn + bo_ref[...]

    # ---------------- feed-forward block (pre-norm RMSNorm, GEGLU) ---------------
    n2 = rms(h, g_ff_ref)
    y = dot(n2, wff1_ref[...]) + bff1_ref[...]              # [M, 2*INNER]
    val = y[:, :INNER]
    gate = y[:, INNER:]
    # TODO(synk): PyTorch F.gelu defaults to exact erf; tanh approximation used for lowering.
    y = val * jax.nn.gelu(gate, approximate=True)
    h = h + dot(y, wff2_ref[...]) + bff2_ref[...]

    h_ref[...] = h

    # ------------- final RMSNorm + out_proj fused, last token only ---------------
    @pl.when(layer == pl.num_programs(0) - 1)
    def _final():
        last = jnp.concatenate(
            [h[(b + 1) * SEQ - 1:(b + 1) * SEQ, :] for b in range(B)], axis=0)  # [B, D]
        ln = rms(last, g_fin_ref)
        logit = jnp.sum(ln * w_out_ref[...], axis=-1, keepdims=True)            # [B, 1]
        o_ref[...] = jnp.broadcast_to(logit, o_ref.shape)   # lane-dense padded store


def decoder_forward(p, h0, mask_bias):
    def stack3(shape):
        return pl.BlockSpec((None,) + shape, lambda l: (l, 0, 0))

    def const2(shape):
        return pl.BlockSpec(shape, lambda l: (0, 0))

    grid_spec = pltpu.PrefetchScalarGridSpec(
        num_scalar_prefetch=0,
        grid=(LAYERS,),
        in_specs=[
            const2((M_TOK, D)),                 # h0 (token slab)
            const2((M_TOK, M_TOK)),             # attention bias
            stack3((D, 3 * D)),                 # wqkv      (bf16)
            stack3((D, D)),                     # wo        (bf16)
            stack3((1, D)),                     # bo
            stack3((1, D)),                     # attn RMSNorm gamma
            stack3((1, D)),                     # ff   RMSNorm gamma
            stack3((D, 2 * INNER)),             # w_ff1     (bf16)
            stack3((1, 2 * INNER)),             # b_ff1
            stack3((INNER, D)),                 # w_ff2     (bf16)
            stack3((1, D)),                     # b_ff2
            const2((1, D)),                     # final RMSNorm gamma
            const2((1, D)),                     # out_proj weight (as a lane row)
        ],
        out_specs=pl.BlockSpec((B, D), lambda l: (0, 0)),
        scratch_shapes=[pltpu.VMEM((M_TOK, D), jnp.float32)],   # residual stream
    )
    return pl.pallas_call(
        _decoder_kernel,
        out_shape=jax.ShapeDtypeStruct((B, D), jnp.float32),
        grid_spec=grid_spec,
        compiler_params=pltpu.CompilerParams(dimension_semantics=("arbitrary",)),
    )(h0, mask_bias,
      p["wqkv"], p["wo"], p["bo"], p["g_attn"], p["g_ff"],
      p["wff1"], p["bff1"], p["wff2"], p["bff2"],
      p["g_final"], p["w_out_row"])


# ----------------------------- plain-JAX glue ------------------------------------
def timestep_embedding(timesteps, dim, max_period=10000.0):
    half = dim // 2
    freqs = jnp.exp(-math.log(max_period) * jnp.arange(half, dtype=jnp.float32) / half)
    args = timesteps.astype(jnp.float32)[:, None] * freqs[None, :]
    return jnp.concatenate([jnp.cos(args), jnp.sin(args)], axis=-1)


def build_attn_bias():
    r = jnp.arange(M_TOK)
    c = jnp.arange(M_TOK)
    same_batch = (r[:, None] // SEQ) == (c[None, :] // SEQ)
    causal = (c[None, :] % SEQ) <= (r[:, None] % SEQ)
    ok = jnp.logical_and(same_batch, causal)
    return jnp.where(ok, 0.0, NEG_INF).astype(jnp.float32)


def init_params(key):
    keys = iter(jax.random.split(key, 64))

    def nrm(shape, s=0.02):
        return s * jax.random.normal(next(keys), shape, dtype=jnp.float32)

    zeros = lambda shape: jnp.zeros(shape, jnp.float32)
    ones = lambda shape: jnp.ones(shape, jnp.float32)
    bf = lambda a: a.astype(jnp.bfloat16)     # matmul weights in bf16, f32 accumulation

    p = {}
    # x_proj: Linear(CLIP_W,D) -> SiLU -> LN(D) -> Linear(D,D)
    p["x_w0"], p["x_b0"] = bf(nrm((CLIP_W, D))), zeros((1, D))
    p["x_g"], p["x_beta"] = ones((1, D)), zeros((1, D))
    p["x_w1"], p["x_b1"] = bf(nrm((D, D))), zeros((1, D))
    # clip_sentence_proj (same structure)
    p["c_w0"], p["c_b0"] = bf(nrm((CLIP_W, D))), zeros((1, D))
    p["c_g"], p["c_beta"] = ones((1, D)), zeros((1, D))
    p["c_w1"], p["c_b1"] = bf(nrm((D, D))), zeros((1, D))
    # time_embed: Linear(D,D) -> SiLU -> Linear(D,D)
    p["t_w0"], p["t_b0"] = bf(nrm((D, D))), zeros((1, D))
    p["t_w1"], p["t_b1"] = bf(nrm((D, D))), zeros((1, D))
    # t5_proj: LN(T5) -> Linear(T5,D) -> SiLU -> LN(D) -> Linear(D,D)
    p["s_g0"], p["s_beta0"] = ones((1, T5_DIM)), zeros((1, T5_DIM))
    p["s_w0"], p["s_b0"] = bf(nrm((T5_DIM, D))), zeros((1, D))
    p["s_g1"], p["s_beta1"] = ones((1, D)), zeros((1, D))
    p["s_w1"], p["s_b1"] = bf(nrm((D, D))), zeros((1, D))
    # learned final token
    p["final_emb"] = nrm((1, D), s=1.0)
    # transformer decoder, stacked over layers (q/k/v fused; no qkv bias in x-transformers)
    p["wqkv"] = bf(nrm((LAYERS, D, 3 * D)))
    p["wo"] = bf(nrm((LAYERS, D, D)))
    p["bo"] = zeros((LAYERS, 1, D))
    p["g_attn"] = ones((LAYERS, 1, D))
    p["g_ff"] = ones((LAYERS, 1, D))
    p["wff1"] = bf(nrm((LAYERS, D, 2 * INNER)))
    p["bff1"] = zeros((LAYERS, 1, 2 * INNER))
    p["wff2"] = bf(nrm((LAYERS, INNER, D)))
    p["bff2"] = zeros((LAYERS, 1, D))
    p["g_final"] = ones((1, D))
    # out_proj: Linear(D, 1), stored as a lane row for the fused lane reduction
    p["w_out_row"] = nrm((1, D))
    p["out_b"] = zeros((1,))
    return p


def discriminator_forward(params, x, timesteps, t5_word_emb, clip_sentence_emb,
                          emb_4_vocab=None, indices=None):
    # `vocab is None` branch of the reference forward.
    te = timestep_embedding(timesteps, D, max_period=1e6)
    h0 = embed_tokens(params, x, te, clip_sentence_emb, t5_word_emb)    # [B*SEQ, D]
    bias = build_attn_bias()
    logits_pad = decoder_forward(params, h0, bias)                      # [B, D] (lane-dense)
    return logits_pad[:, :1] + params["out_b"]                          # [B, 1]


# ----------------------------- main ----------------------------------------------
if __name__ == "__main__":
    key = jax.random.PRNGKey(0)
    kp, kx, kt5, kcs = jax.random.split(key, 4)

    params = init_params(kp)
    x = jax.random.normal(kx, (B, CLIP_W), dtype=jnp.float32)
    timesteps = jnp.array([3.0, 17.0], dtype=jnp.float32)
    t5_word_emb = jax.random.normal(kt5, (B, SEQ_T5, T5_DIM), dtype=jnp.float32)
    clip_sentence_emb = jax.random.normal(kcs, (B, CLIP_W), dtype=jnp.float32)

    fwd = jax.jit(discriminator_forward)
    out = fwd(params, x, timesteps, t5_word_emb, clip_sentence_emb)
    out = jax.block_until_ready(out)
    assert out.shape == (B, 1), out.shape
    assert bool(jnp.all(jnp.isfinite(out)))
    print("KERNEL_OK")
</pallas_src>

<mosaic_0001>
module attributes {stable_mosaic.version = 11 : i64} {
  func.func @_embed_kernel(%arg0: memref<2x192xf32, #tpu.memory_space<vmem>>, %arg1: memref<2x128xf32, #tpu.memory_space<vmem>>, %arg2: memref<2x192xf32, #tpu.memory_space<vmem>>, %arg3: memref<16x128xf32, #tpu.memory_space<vmem>>, %arg4: memref<192x128xbf16, #tpu.memory_space<vmem>>, %arg5: memref<1x128xf32, #tpu.memory_space<vmem>>, %arg6: memref<1x128xf32, #tpu.memory_space<vmem>>, %arg7: memref<1x128xf32, #tpu.memory_space<vmem>>, %arg8: memref<128x128xbf16, #tpu.memory_space<vmem>>, %arg9: memref<1x128xf32, #tpu.memory_space<vmem>>, %arg10: memref<192x128xbf16, #tpu.memory_space<vmem>>, %arg11: memref<1x128xf32, #tpu.memory_space<vmem>>, %arg12: memref<1x128xf32, #tpu.memory_space<vmem>>, %arg13: memref<1x128xf32, #tpu.memory_space<vmem>>, %arg14: memref<128x128xbf16, #tpu.memory_space<vmem>>, %arg15: memref<1x128xf32, #tpu.memory_space<vmem>>, %arg16: memref<128x128xbf16, #tpu.memory_space<vmem>>, %arg17: memref<1x128xf32, #tpu.memory_space<vmem>>, %arg18: memref<128x128xbf16, #tpu.memory_space<vmem>>, %arg19: memref<1x128xf32, #tpu.memory_space<vmem>>, %arg20: memref<1x128xf32, #tpu.memory_space<vmem>>, %arg21: memref<1x128xf32, #tpu.memory_space<vmem>>, %arg22: memref<128x128xbf16, #tpu.memory_space<vmem>>, %arg23: memref<1x128xf32, #tpu.memory_space<vmem>>, %arg24: memref<1x128xf32, #tpu.memory_space<vmem>>, %arg25: memref<1x128xf32, #tpu.memory_space<vmem>>, %arg26: memref<128x128xbf16, #tpu.memory_space<vmem>>, %arg27: memref<1x128xf32, #tpu.memory_space<vmem>>, %arg28: memref<1x128xf32, #tpu.memory_space<vmem>>, %arg29: memref<24x128xf32, #tpu.memory_space<vmem>>) attributes {dimension_semantics = [], scalar_prefetch = 0 : i64, scratch_operands = 0 : i64, tpu.core_type = #tpu.core_type<tc>} {
    %c0 = arith.constant 0 : index
    %c0_0 = arith.constant 0 : index
    %0 = vector.load %arg0[%c0, %c0_0] : memref<2x192xf32, #tpu.memory_space<vmem>>, vector<2x192xf32>
    %1 = arith.truncf %0 : vector<2x192xf32> to vector<2x192xbf16>
    %c0_1 = arith.constant 0 : index
    %c0_2 = arith.constant 0 : index
    %2 = vector.load %arg4[%c0_1, %c0_2] : memref<192x128xbf16, #tpu.memory_space<vmem>>, vector<192x128xbf16>
    %cst = arith.constant dense<0.000000e+00> : vector<2x128xf32>
    %3 = tpu.matmul %1, %2, %cst {dimension_numbers = #tpu.dot_dimension_numbers<[1], [0], [0], [1], [0, 0, 1, 1], [], []>} : vector<2x192xbf16>, vector<192x128xbf16>, vector<2x128xf32> -> vector<2x128xf32>
    %c0_3 = arith.constant 0 : index
    %c0_4 = arith.constant 0 : index
    %4 = vector.load %arg5[%c0_3, %c0_4] : memref<1x128xf32, #tpu.memory_space<vmem>>, vector<1x128xf32>
    %5 = vector.broadcast %4 : vector<1x128xf32> to vector<2x128xf32>
    %6 = arith.addf %3, %5 : vector<2x128xf32>
    %7 = arith.negf %6 : vector<2x128xf32>
    %8 = math.exp %7 : vector<2x128xf32>
    %cst_5 = arith.constant 1.000000e+00 : f32
    %9 = vector.broadcast %cst_5 : f32 to vector<2x128xf32>
    %10 = arith.addf %9, %8 : vector<2x128xf32>
    %11 = arith.divf %9, %10 : vector<2x128xf32>
    %12 = arith.mulf %6, %11 : vector<2x128xf32>
    %cst_6 = arith.constant dense<0.000000e+00> : vector<2xf32>
    %13 = vector.multi_reduction <add>, %12, %cst_6 [1] : vector<2x128xf32> to vector<2xf32>
    %14 = vector.shape_cast %13 : vector<2xf32> to vector<2x1xf32>
    %cst_7 = arith.constant 1.280000e+02 : f32
    %15 = vector.broadcast %cst_7 : f32 to vector<2x1xf32>
    %16 = arith.divf %14, %15 : vector<2x1xf32>
    %17 = vector.broadcast %16 : vector<2x1xf32> to vector<2x128xf32>
    %18 = arith.subf %12, %17 : vector<2x128xf32>
    %19 = arith.mulf %18, %18 : vector<2x128xf32>
    %cst_8 = arith.constant dense<0.000000e+00> : vector<2xf32>
    %20 = vector.multi_reduction <add>, %19, %cst_8 [1] : vector<2x128xf32> to vector<2xf32>
    %21 = vector.shape_cast %20 : vector<2xf32> to vector<2x1xf32>
    %cst_9 = arith.constant 1.280000e+02 : f32
    %22 = vector.broadcast %cst_9 : f32 to vector<2x1xf32>
    %23 = arith.divf %21, %22 : vector<2x1xf32>
    %24 = vector.broadcast %16 : vector<2x1xf32> to vector<2x128xf32>
    %25 = arith.subf %12, %24 : vector<2x128xf32>
    %cst_10 = arith.constant 9.99999974E-6 : f32
    %26 = vector.broadcast %cst_10 : f32 to vector<2x1xf32>
    %27 = arith.addf %23, %26 : vector<2x1xf32>
    %28 = math.rsqrt %27 : vector<2x1xf32>
    %29 = vector.broadcast %28 : vector<2x1xf32> to vector<2x128xf32>
    %30 = arith.mulf %25, %29 : vector<2x128xf32>
    %c0_11 = arith.constant 0 : index
    %c0_12 = arith.constant 0 : index
    %31 = vector.load %arg6[%c0_11, %c0_12] : memref<1x128xf32, #tpu.memory_space<vmem>>, vector<1x128xf32>
    %32 = vector.broadcast %31 : vector<1x128xf32> to vector<2x128xf32>
    %33 = arith.mulf %30, %32 : vector<2x128xf32>
    %c0_13 = arith.constant 0 : index
    %c0_14 = arith.constant 0 : index
    %34 = vector.load %arg7[%c0_13, %c0_14] : memref<1x128xf32, #tpu.memory_space<vmem>>, vector<1x128xf32>
    %35 = vector.broadcast %34 : vector<1x128xf32> to vector<2x128xf32>
    %36 = arith.addf %33, %35 : vector<2x128xf32>
    %37 = arith.truncf %36 : vector<2x128xf32> to vector<2x128xbf16>
    %c0_15 = arith.constant 0 : index
    %c0_16 = arith.constant 0 : index
    %38 = vector.load %arg8[%c0_15, %c0_16] : memref<128x128xbf16, #tpu.memory_space<vmem>>, vector<128x128xbf16>
    %cst_17 = arith.constant dense<0.000000e+00> : vector<2x128xf32>
    %39 = tpu.matmul %37, %38, %cst_17 {dimension_numbers = #tpu.dot_dimension_numbers<[1], [0], [0], [1], [0, 0, 1, 1], [], []>} : vector<2x128xbf16>, vector<128x128xbf16>, vector<2x128xf32> -> vector<2x128xf32>
    %c0_18 = arith.constant 0 : index
    %c0_19 = arith.constant 0 : index
    %40 = vector.load %arg9[%c0_18, %c0_19] : memref<1x128xf32, #tpu.memory_space<vmem>>, vector<1x128xf32>
    %41 = vector.broadcast %40 : vector<1x128xf32> to vector<2x128xf32>
    %42 = arith.addf %39, %41 : vector<2x128xf32>
    %c0_20 = arith.constant 0 : index
    %c0_21 = arith.constant 0 : index
    %43 = vector.load %arg2[%c0_20, %c0_21] : memref<2x192xf32, #tpu.memory_space<vmem>>, vector<2x192xf32>
    %44 = arith.truncf %43 : vector<2x192xf32> to vector<2x192xbf16>
    %c0_22 = arith.constant 0 : index
    %c0_23 = arith.constant 0 : index
    %45 = vector.load %arg10[%c0_22, %c0_23] : memref<192x128xbf16, #tpu.memory_space<vmem>>, vector<192x128xbf16>
    %cst_24 = arith.constant dense<0.000000e+00> : vector<2x128xf32>
    %46 = tpu.matmul %44, %45, %cst_24 {dimension_numbers = #tpu.dot_dimension_numbers<[1], [0], [0], [1], [0, 0, 1, 1], [], []>} : vector<2x192xbf16>, vector<192x128xbf16>, vector<2x128xf32> -> vector<2x128xf32>
    %c0_25 = arith.constant 0 : index
    %c0_26 = arith.constant 0 : index
    %47 = vector.load %arg11[%c0_25, %c0_26] : memref<1x128xf32, #tpu.memory_space<vmem>>, vector<1x128xf32>
    %48 = vector.broadcast %47 : vector<1x128xf32> to vector<2x128xf32>
    %49 = arith.addf %46, %48 : vector<2x128xf32>
    %50 = arith.negf %49 : vector<2x128xf32>
    %51 = math.exp %50 : vector<2x128xf32>
    %cst_27 = arith.constant 1.000000e+00 : f32
    %52 = vector.broadcast %cst_27 : f32 to vector<2x128xf32>
    %53 = arith.addf %52, %51 : vector<2x128xf32>
    %54 = arith.divf %52, %53 : vector<2x128xf32>
    %55 = arith.mulf %49, %54 : vector<2x128xf32>
    %cst_28 = arith.constant dense<0.000000e+00> : vector<2xf32>
    %56 = vector.multi_reduction <add>, %55, %cst_28 [1] : vector<2x128xf32> to vector<2xf32>
    %57 = vector.shape_cast %56 : vector<2xf32> to vector<2x1xf32>
    %cst_29 = arith.constant 1.280000e+02 : f32
    %58 = vector.broadcast %cst_29 : f32 to vector<2x1xf32>
    %59 = arith.divf %57, %58 : vector<2x1xf32>
    %60 = vector.broadcast %59 : vector<2x1xf32> to vector<2x128xf32>
    %61 = arith.subf %55, %60 : vector<2x128xf32>
    %62 = arith.mulf %61, %61 : vector<2x128xf32>
    %cst_30 = arith.constant dense<0.000000e+00> : vector<2xf32>
    %63 = vector.multi_reduction <add>, %62, %cst_30 [1] : vector<2x128xf32> to vector<2xf32>
    %64 = vector.shape_cast %63 : vector<2xf32> to vector<2x1xf32>
    %cst_31 = arith.constant 1.280000e+02 : f32
    %65 = vector.broadcast %cst_31 : f32 to vector<2x1xf32>
    %66 = arith.divf %64, %65 : vector<2x1xf32>
    %67 = vector.broadcast %59 : vector<2x1xf32> to vector<2x128xf32>
    %68 = arith.subf %55, %67 : vector<2x128xf32>
    %cst_32 = arith.constant 9.99999974E-6 : f32
    %69 = vector.broadcast %cst_32 : f32 to vector<2x1xf32>
    %70 = arith.addf %66, %69 : vector<2x1xf32>
    %71 = math.rsqrt %70 : vector<2x1xf32>
    %72 = vector.broadcast %71 : vector<2x1xf32> to vector<2x128xf32>
    %73 = arith.mulf %68, %72 : vector<2x128xf32>
    %c0_33 = arith.constant 0 : index
    %c0_34 = arith.constant 0 : index
    %74 = vector.load %arg12[%c0_33, %c0_34] : memref<1x128xf32, #tpu.memory_space<vmem>>, vector<1x128xf32>
    %75 = vector.broadcast %74 : vector<1x128xf32> to vector<2x128xf32>
    %76 = arith.mulf %73, %75 : vector<2x128xf32>
    %c0_35 = arith.constant 0 : index
    %c0_36 = arith.constant 0 : index
    %77 = vector.load %arg13[%c0_35, %c0_36] : memref<1x128xf32, #tpu.memory_space<vmem>>, vector<1x128xf32>
    %78 = vector.broadcast %77 : vector<1x128xf32> to vector<2x128xf32>
    %79 = arith.addf %76, %78 : vector<2x128xf32>
    %80 = arith.truncf %79 : vector<2x128xf32> to vector<2x128xbf16>
    %c0_37 = arith.constant 0 : index
    %c0_38 = arith.constant 0 : index
    %81 = vector.load %arg14[%c0_37, %c0_38] : memref<128x128xbf16, #tpu.memory_space<vmem>>, vector<128x128xbf16>
    %cst_39 = arith.constant dense<0.000000e+00> : vector<2x128xf32>
    %82 = tpu.matmul %80, %81, %cst_39 {dimension_numbers = #tpu.dot_dimension_numbers<[1], [0], [0], [1], [0, 0, 1, 1], [], []>} : vector<2x128xbf16>, vector<128x128xbf16>, vector<2x128xf32> -> vector<2x128xf32>
    %c0_40 = arith.constant 0 : index
    %c0_41 = arith.constant 0 : index
    %83 = vector.load %arg15[%c0_40, %c0_41] : memref<1x128xf32, #tpu.memory_space<vmem>>, vector<1x128xf32>
    %84 = vector.broadcast %83 : vector<1x128xf32> to vector<2x128xf32>
    %85 = arith.addf %82, %84 : vector<2x128xf32>
    %c0_42 = arith.constant 0 : index
    %c0_43 = arith.constant 0 : index
    %86 = vector.load %arg1[%c0_42, %c0_43] : memref<2x128xf32, #tpu.memory_space<vmem>>, vector<2x128xf32>
    %87 = arith.truncf %86 : vector<2x128xf32> to vector<2x128xbf16>
    %c0_44 = arith.constant 0 : index
    %c0_45 = arith.constant 0 : index
    %88 = vector.load %arg16[%c0_44, %c0_45] : memref<128x128xbf16, #tpu.memory_space<vmem>>, vector<128x128xbf16>
    %cst_46 = arith.constant dense<0.000000e+00> : vector<2x128xf32>
    %89 = tpu.matmul %87, %88, %cst_46 {dimension_numbers = #tpu.dot_dimension_numbers<[1], [0], [0], [1], [0, 0, 1, 1], [], []>} : vector<2x128xbf16>, vector<128x128xbf16>, vector<2x128xf32> -> vector<2x128xf32>
    %c0_47 = arith.constant 0 : index
    %c0_48 = arith.constant 0 : index
    %90 = vector.load %arg17[%c0_47, %c0_48] : memref<1x128xf32, #tpu.memory_space<vmem>>, vector<1x128xf32>
    %91 = vector.broadcast %90 : vector<1x128xf32> to vector<2x128xf32>
    %92 = arith.addf %89, %91 : vector<2x128xf32>
    %93 = arith.negf %92 : vector<2x128xf32>
    %94 = math.exp %93 : vector<2x128xf32>
    %cst_49 = arith.constant 1.000000e+00 : f32
    %95 = vector.broadcast %cst_49 : f32 to vector<2x128xf32>
    %96 = arith.addf %95, %94 : vector<2x128xf32>
    %97 = arith.divf %95, %96 : vector<2x128xf32>
    %98 = arith.mulf %92, %97 : vector<2x128xf32>
    %99 = arith.truncf %98 : vector<2x128xf32> to vector<2x128xbf16>
    %c0_50 = arith.constant 0 : index
    %c0_51 = arith.constant 0 : index
    %100 = vector.load %arg18[%c0_50, %c0_51] : memref<128x128xbf16, #tpu.memory_space<vmem>>, vector<128x128xbf16>
    %cst_52 = arith.constant dense<0.000000e+00> : vector<2x128xf32>
    %101 = tpu.matmul %99, %100, %cst_52 {dimension_numbers = #tpu.dot_dimension_numbers<[1], [0], [0], [1], [0, 0, 1, 1], [], []>} : vector<2x128xbf16>, vector<128x128xbf16>, vector<2x128xf32> -> vector<2x128xf32>
    %c0_53 = arith.constant 0 : index
    %c0_54 = arith.constant 0 : index
    %102 = vector.load %arg19[%c0_53, %c0_54] : memref<1x128xf32, #tpu.memory_space<vmem>>, vector<1x128xf32>
    %103 = vector.broadcast %102 : vector<1x128xf32> to vector<2x128xf32>
    %104 = arith.addf %101, %103 : vector<2x128xf32>
    %c0_55 = arith.constant 0 : index
    %c0_56 = arith.constant 0 : index
    %105 = vector.load %arg3[%c0_55, %c0_56] : memref<16x128xf32, #tpu.memory_space<vmem>>, vector<16x128xf32>
    %cst_57 = arith.constant dense<0.000000e+00> : vector<16xf32>
    %106 = vector.multi_reduction <add>, %105, %cst_57 [1] : vector<16x128xf32> to vector<16xf32>
    %107 = vector.shape_cast %106 : vector<16xf32> to vector<16x1xf32>
    %cst_58 = arith.constant 1.280000e+02 : f32
    %108 = vector.broadcast %cst_58 : f32 to vector<16x1xf32>
    %109 = arith.divf %107, %108 : vector<16x1xf32>
    %110 = vector.broadcast %109 : vector<16x1xf32> to vector<16x128xf32>
    %111 = arith.subf %105, %110 : vector<16x128xf32>
    %112 = arith.mulf %111, %111 : vector<16x128xf32>
    %cst_59 = arith.constant dense<0.000000e+00> : vector<16xf32>
    %113 = vector.multi_reduction <add>, %112, %cst_59 [1] : vector<16x128xf32> to vector<16xf32>
    %114 = vector.shape_cast %113 : vector<16xf32> to vector<16x1xf32>
    %cst_60 = arith.constant 1.280000e+02 : f32
    %115 = vector.broadcast %cst_60 : f32 to vector<16x1xf32>
    %116 = arith.divf %114, %115 : vector<16x1xf32>
    %117 = vector.broadcast %109 : vector<16x1xf32> to vector<16x128xf32>
    %118 = arith.subf %105, %117 : vector<16x128xf32>
    %cst_61 = arith.constant 9.99999974E-6 : f32
    %119 = vector.broadcast %cst_61 : f32 to vector<16x1xf32>
    %120 = arith.addf %116, %119 : vector<16x1xf32>
    %121 = math.rsqrt %120 : vector<16x1xf32>
    %122 = vector.broadcast %121 : vector<16x1xf32> to vector<16x128xf32>
    %123 = arith.mulf %118, %122 : vector<16x128xf32>
    %c0_62 = arith.constant 0 : index
    %c0_63 = arith.constant 0 : index
    %124 = vector.load %arg20[%c0_62, %c0_63] : memref<1x128xf32, #tpu.memory_space<vmem>>, vector<1x128xf32>
    %125 = vector.broadcast %124 : vector<1x128xf32> to vector<16x128xf32>
    %126 = arith.mulf %123, %125 : vector<16x128xf32>
    %c0_64 = arith.constant 0 : index
    %c0_65 = arith.constant 0 : index
    %127 = vector.load %arg21[%c0_64, %c0_65] : memref<1x128xf32, #tpu.memory_space<vmem>>, vector<1x128xf32>
    %128 = vector.broadcast %127 : vector<1x128xf32> to vector<16x128xf32>
    %129 = arith.addf %126, %128 : vector<16x128xf32>
    %130 = arith.truncf %129 : vector<16x128xf32> to vector<16x128xbf16>
    %c0_66 = arith.constant 0 : index
    %c0_67 = arith.constant 0 : index
    %131 = vector.load %arg22[%c0_66, %c0_67] : memref<128x128xbf16, #tpu.memory_space<vmem>>, vector<128x128xbf16>
    %cst_68 = arith.constant dense<0.000000e+00> : vector<16x128xf32>
    %132 = tpu.matmul %130, %131, %cst_68 {dimension_numbers = #tpu.dot_dimension_numbers<[1], [0], [0], [1], [0, 0, 1, 1], [], []>} : vector<16x128xbf16>, vector<128x128xbf16>, vector<16x128xf32> -> vector<16x128xf32>
    %c0_69 = arith.constant 0 : index
    %c0_70 = arith.constant 0 : index
    %133 = vector.load %arg23[%c0_69, %c0_70] : memref<1x128xf32, #tpu.memory_space<vmem>>, vector<1x128xf32>
    %134 = vector.broadcast %133 : vector<1x128xf32> to vector<16x128xf32>
    %135 = arith.addf %132, %134 : vector<16x128xf32>
    %136 = arith.negf %135 : vector<16x128xf32>
    %137 = math.exp %136 : vector<16x128xf32>
    %cst_71 = arith.constant 1.000000e+00 : f32
    %138 = vector.broadcast %cst_71 : f32 to vector<16x128xf32>
    %139 = arith.addf %138, %137 : vector<16x128xf32>
    %140 = arith.divf %138, %139 : vector<16x128xf32>
    %141 = arith.mulf %135, %140 : vector<16x128xf32>
    %cst_72 = arith.constant dense<0.000000e+00> : vector<16xf32>
    %142 = vector.multi_reduction <add>, %141, %cst_72 [1] : vector<16x128xf32> to vector<16xf32>
    %143 = vector.shape_cast %142 : vector<16xf32> to vector<16x1xf32>
    %cst_73 = arith.constant 1.280000e+02 : f32
    %144 = vector.broadcast %cst_73 : f32 to vector<16x1xf32>
    %145 = arith.divf %143, %144 : vector<16x1xf32>
    %146 = vector.broadcast %145 : vector<16x1xf32> to vector<16x128xf32>
    %147 = arith.subf %141, %146 : vector<16x128xf32>
    %148 = arith.mulf %147, %147 : vector<16x128xf32>
    %cst_74 = arith.constant dense<0.000000e+00> : vector<16xf32>
    %149 = vector.multi_reduction <add>, %148, %cst_74 [1] : vector<16x128xf32> to vector<16xf32>
    %150 = vector.shape_cast %149 : vector<16xf32> to vector<16x1xf32>
    %cst_75 = arith.constant 1.280000e+02 : f32
    %151 = vector.broadcast %cst_75 : f32 to vector<16x1xf32>
    %152 = arith.divf %150, %151 : vector<16x1xf32>
    %153 = vector.broadcast %145 : vector<16x1xf32> to vector<16x128xf32>
    %154 = arith.subf %141, %153 : vector<16x128xf32>
    %cst_76 = arith.constant 9.99999974E-6 : f32
    %155 = vector.broadcast %cst_76 : f32 to vector<16x1xf32>
    %156 = arith.addf %152, %155 : vector<16x1xf32>
    %157 = math.rsqrt %156 : vector<16x1xf32>
    %158 = vector.broadcast %157 : vector<16x1xf32> to vector<16x128xf32>
    %159 = arith.mulf %154, %158 : vector<16x128xf32>
    %c0_77 = arith.constant 0 : index
    %c0_78 = arith.constant 0 : index
    %160 = vector.load %arg24[%c0_77, %c0_78] : memref<1x128xf32, #tpu.memory_space<vmem>>, vector<1x128xf32>
    %161 = vector.broadcast %160 : vector<1x128xf32> to vector<16x128xf32>
    %162 = arith.mulf %159, %161 : vector<16x128xf32>
    %c0_79 = arith.constant 0 : index
    %c0_80 = arith.constant 0 : index
    %163 = vector.load %arg25[%c0_79, %c0_80] : memref<1x128xf32, #tpu.memory_space<vmem>>, vector<1x128xf32>
    %164 = vector.broadcast %163 : vector<1x128xf32> to vector<16x128xf32>
    %165 = arith.addf %162, %164 : vector<16x128xf32>
    %166 = arith.truncf %165 : vector<16x128xf32> to vector<16x128xbf16>
    %c0_81 = arith.constant 0 : index
    %c0_82 = arith.constant 0 : index
    %167 = vector.load %arg26[%c0_81, %c0_82] : memref<128x128xbf16, #tpu.memory_space<vmem>>, vector<128x128xbf16>
    %cst_83 = arith.constant dense<0.000000e+00> : vector<16x128xf32>
    %168 = tpu.matmul %166, %167, %cst_83 {dimension_numbers = #tpu.dot_dimension_numbers<[1], [0], [0], [1], [0, 0, 1, 1], [], []>} : vector<16x128xbf16>, vector<128x128xbf16>, vector<16x128xf32> -> vector<16x128xf32>
    %c0_84 = arith.constant 0 : index
    %c0_85 = arith.constant 0 : index
    %169 = vector.load %arg27[%c0_84, %c0_85] : memref<1x128xf32, #tpu.memory_space<vmem>>, vector<1x128xf32>
    %170 = vector.broadcast %169 : vector<1x128xf32> to vector<16x128xf32>
    %171 = arith.addf %168, %170 : vector<16x128xf32>
    %172 = vector.extract_strided_slice %171 {offsets = [0, 0], sizes = [8, 128], strides = [1, 1]} : vector<16x128xf32> to vector<8x128xf32>
    %c0_86 = arith.constant 0 : index
    %c0_87 = arith.constant 0 : index
    %173 = vector.load %arg29[%c0_86, %c0_87] : memref<24x128xf32, #tpu.memory_space<vmem>>, vector<8x128xf32>
    tpu.vector_store %arg29[%c0_86, %c0_87], %172 {strides = array<i32>} : memref<24x128xf32, #tpu.memory_space<vmem>>, vector<8x128xf32>,
    %174 = vector.extract_strided_slice %85 {offsets = [0, 0], sizes = [1, 128], strides = [1, 1]} : vector<2x128xf32> to vector<1x128xf32>
    %c8 = arith.constant 8 : index
    %c0_88 = arith.constant 0 : index
    %175 = vector.load %arg29[%c8, %c0_88] : memref<24x128xf32, #tpu.memory_space<vmem>>, vector<1x128xf32>
    tpu.vector_store %arg29[%c8, %c0_88], %174 {strides = array<i32>} : memref<24x128xf32, #tpu.memory_space<vmem>>, vector<1x128xf32>,
    %176 = vector.extract_strided_slice %104 {offsets = [0, 0], sizes = [1, 128], strides = [1, 1]} : vector<2x128xf32> to vector<1x128xf32>
    %c9 = arith.constant 9 : index
    %c0_89 = arith.constant 0 : index
    %177 = vector.load %arg29[%c9, %c0_89] : memref<24x128xf32, #tpu.memory_space<vmem>>, vector<1x128xf32>
    tpu.vector_store %arg29[%c9, %c0_89], %176 {strides = array<i32>} : memref<24x128xf32, #tpu.memory_space<vmem>>, vector<1x128xf32>,
    %178 = vector.extract_strided_slice %42 {offsets = [0, 0], sizes = [1, 128], strides = [1, 1]} : vector<2x128xf32> to vector<1x128xf32>
    %c10 = arith.constant 10 : index
    %c0_90 = arith.constant 0 : index
    %179 = vector.load %arg29[%c10, %c0_90] : memref<24x128xf32, #tpu.memory_space<vmem>>, vector<1x128xf32>
    tpu.vector_store %arg29[%c10, %c0_90], %178 {strides = array<i32>} : memref<24x128xf32, #tpu.memory_space<vmem>>, vector<1x128xf32>,
    %c0_91 = arith.constant 0 : index
    %c0_92 = arith.constant 0 : index
    %180 = vector.load %arg28[%c0_91, %c0_92] : memref<1x128xf32, #tpu.memory_space<vmem>>, vector<1x128xf32>
    %c11 = arith.constant 11 : index
    %c0_93 = arith.constant 0 : index
    %181 = vector.load %arg29[%c11, %c0_93] : memref<24x128xf32, #tpu.memory_space<vmem>>, vector<1x128xf32>
    tpu.vector_store %arg29[%c11, %c0_93], %180 {strides = array<i32>} : memref<24x128xf32, #tpu.memory_space<vmem>>, vector<1x128xf32>,
    %182 = vector.extract_strided_slice %171 {offsets = [8, 0], sizes = [8, 128], strides = [1, 1]} : vector<16x128xf32> to vector<8x128xf32>
    %c12 = arith.constant 12 : index
    %c0_94 = arith.constant 0 : index
    %183 = vector.load %arg29[%c12, %c0_94] : memref<24x128xf32, #tpu.memory_space<vmem>>, vector<8x128xf32>
    tpu.vector_store %arg29[%c12, %c0_94], %182 {strides = array<i32>} : memref<24x128xf32, #tpu.memory_space<vmem>>, vector<8x128xf32>,
    %184 = vector.extract_strided_slice %85 {offsets = [1, 0], sizes = [1, 128], strides = [1, 1]} : vector<2x128xf32> to vector<1x128xf32>
    %c20 = arith.constant 20 : index
    %c0_95 = arith.constant 0 : index
    %185 = vector.load %arg29[%c20, %c0_95] : memref<24x128xf32, #tpu.memory_space<vmem>>, vector<1x128xf32>
    tpu.vector_store %arg29[%c20, %c0_95], %184 {strides = array<i32>} : memref<24x128xf32, #tpu.memory_space<vmem>>, vector<1x128xf32>,
    %186 = vector.extract_strided_slice %104 {offsets = [1, 0], sizes = [1, 128], strides = [1, 1]} : vector<2x128xf32> to vector<1x128xf32>
    %c21 = arith.constant 21 : index
    %c0_96 = arith.constant 0 : index
    %187 = vector.load %arg29[%c21, %c0_96] : memref<24x128xf32, #tpu.memory_space<vmem>>, vector<1x128xf32>
    tpu.vector_store %arg29[%c21, %c0_96], %186 {strides = array<i32>} : memref<24x128xf32, #tpu.memory_space<vmem>>, vector<1x128xf32>,
    %188 = vector.extract_strided_slice %42 {offsets = [1, 0], sizes = [1, 128], strides = [1, 1]} : vector<2x128xf32> to vector<1x128xf32>
    %c22 = arith.constant 22 : index
    %c0_97 = arith.constant 0 : index
    %189 = vector.load %arg29[%c22, %c0_97] : memref<24x128xf32, #tpu.memory_space<vmem>>, vector<1x128xf32>
    tpu.vector_store %arg29[%c22, %c0_97], %188 {strides = array<i32>} : memref<24x128xf32, #tpu.memory_space<vmem>>, vector<1x128xf32>,
    %c0_98 = arith.constant 0 : index
    %c0_99 = arith.constant 0 : index
    %190 = vector.load %arg28[%c0_98, %c0_99] : memref<1x128xf32, #tpu.memory_space<vmem>>, vector<1x128xf32>
    %c23 = arith.constant 23 : index
    %c0_100 = arith.constant 0 : index
    %191 = vector.load %arg29[%c23, %c0_100] : memref<24x128xf32, #tpu.memory_space<vmem>>, vector<1x128xf32>
    tpu.vector_store %arg29[%c23, %c0_100], %190 {strides = array<i32>} : memref<24x128xf32, #tpu.memory_space<vmem>>, vector<1x128xf32>,
    return
  }
}

module attributes {stable_mosaic.version = 11 : i64} {
  func.func @_decoder_kernel(%arg0: i32, %arg1: memref<24x128xf32, #tpu.memory_space<vmem>>, %arg2: memref<24x24xf32, #tpu.memory_space<vmem>>, %arg3: memref<1x128x384xbf16, #tpu.memory_space<vmem>>, %arg4: memref<1x128x128xbf16, #tpu.memory_space<vmem>>, %arg5: memref<1x1x128xf32, #tpu.memory_space<vmem>>, %arg6: memref<1x1x128xf32, #tpu.memory_space<vmem>>, %arg7: memref<1x1x128xf32, #tpu.memory_space<vmem>>, %arg8: memref<1x128x1024xbf16, #tpu.memory_space<vmem>>, %arg9: memref<1x1x1024xf32, #tpu.memory_space<vmem>>, %arg10: memref<1x512x128xbf16, #tpu.memory_space<vmem>>, %arg11: memref<1x1x128xf32, #tpu.memory_space<vmem>>, %arg12: memref<1x128xf32, #tpu.memory_space<vmem>>, %arg13: memref<1x128xf32, #tpu.memory_space<vmem>>, %arg14: memref<2x128xf32, #tpu.memory_space<vmem>>, %arg15: memref<24x128xf32, #tpu.memory_space<vmem>>) attributes {dimension_semantics = [#tpu.dimension_semantics<arbitrary>], iteration_bounds = array<i64: 2>, scalar_prefetch = 0 : i64, scratch_operands = 1 : i64, tpu.core_type = #tpu.core_type<tc>, window_params = [{pipeline_mode = #tpu.pipeline_mode<synchronous>, transform_indices = @transform_0, window_bounds = array<i64: 24, 128>}, {pipeline_mode = #tpu.pipeline_mode<synchronous>, transform_indices = @transform_1, window_bounds = array<i64: 24, 24>}, {transform_indices = @transform_2, window_bounds = array<i64: 1, 128, 384>}, {transform_indices = @transform_3, window_bounds = array<i64: 1, 128, 128>}, {transform_indices = @transform_4, window_bounds = array<i64: 1, 1, 128>}, {transform_indices = @transform_5, window_bounds = array<i64: 1, 1, 128>}, {transform_indices = @transform_6, window_bounds = array<i64: 1, 1, 128>}, {transform_indices = @transform_7, window_bounds = array<i64: 1, 128, 1024>}, {transform_indices = @transform_8, window_bounds = array<i64: 1, 1, 1024>}, {transform_indices = @transform_9, window_bounds = array<i64: 1, 512, 128>}, {transform_indices = @transform_10, window_bounds = array<i64: 1, 1, 128>}, {pipeline_mode = #tpu.pipeline_mode<synchronous>, transform_indices = @transform_11, window_bounds = array<i64: 1, 128>}, {pipeline_mode = #tpu.pipeline_mode<synchronous>, transform_indices = @transform_12, window_bounds = array<i64: 1, 128>}, {pipeline_mode = #tpu.pipeline_mode<synchronous>, transform_indices = @transform_13, window_bounds = array<i64: 2, 128>}]} {
    %c0_i32 = arith.constant 0 : i32
    %0 = arith.cmpi eq, %arg0, %c0_i32 : i32
    %1 = arith.extui %0 : i1 to i32
    %c0_i32_0 = arith.constant 0 : i32
    %2 = arith.cmpi ne, %1, %c0_i32_0 : i32
    scf.if %2 {
      %c0_77 = arith.constant 0 : index
      %c0_78 = arith.constant 0 : index
      %191 = vector.load %arg1[%c0_77, %c0_78] : memref<24x128xf32, #tpu.memory_space<vmem>>, vector<24x128xf32>
      %c0_79 = arith.constant 0 : index
      %c0_80 = arith.constant 0 : index
      %192 = vector.load %arg15[%c0_79, %c0_80] : memref<24x128xf32, #tpu.memory_space<vmem>>, vector<24x128xf32>
      tpu.vector_store %arg15[%c0_79, %c0_80], %191 {strides = array<i32>} : memref<24x128xf32, #tpu.memory_space<vmem>>, vector<24x128xf32>,
    } else {
    }
    %c0 = arith.constant 0 : index
    %c0_1 = arith.constant 0 : index
    %3 = vector.load %arg15[%c0, %c0_1] : memref<24x128xf32, #tpu.memory_space<vmem>>, vector<24x128xf32>
    %4 = arith.mulf %3, %3 : vector<24x128xf32>
    %cst = arith.constant dense<0.000000e+00> : vector<24xf32>
    %5 = vector.multi_reduction <add>, %4, %cst [1] : vector<24x128xf32> to vector<24xf32>
    %6 = vector.shape_cast %5 : vector<24xf32> to vector<24x1xf32>
    %cst_2 = arith.constant 1.280000e+02 : f32
    %7 = vector.broadcast %cst_2 : f32 to vector<24x1xf32>
    %8 = arith.divf %6, %7 : vector<24x1xf32>
    %cst_3 = arith.constant 9.99999993E-9 : f32
    %9 = vector.broadcast %cst_3 : f32 to vector<24x1xf32>
    %10 = arith.addf %8, %9 : vector<24x1xf32>
    %11 = math.rsqrt %10 : vector<24x1xf32>
    %12 = vector.broadcast %11 : vector<24x1xf32> to vector<24x128xf32>
    %13 = arith.mulf %3, %12 : vector<24x128xf32>
    %c0_4 = arith.constant 0 : index
    %c0_5 = arith.constant 0 : index
    %c0_6 = arith.constant 0 : index
    %14 = vector.load %arg6[%c0_4, %c0_5, %c0_6] : memref<1x1x128xf32, #tpu.memory_space<vmem>>, vector<1x1x128xf32>
    %15 = vector.shape_cast %14 : vector<1x1x128xf32> to vector<1x128xf32>
    %16 = vector.broadcast %15 : vector<1x128xf32> to vector<24x128xf32>
    %17 = arith.mulf %13, %16 : vector<24x128xf32>
    %c0_7 = arith.constant 0 : index
    %c0_8 = arith.constant 0 : index
    %c0_9 = arith.constant 0 : index
    %18 = vector.load %arg3[%c0_7, %c0_8, %c0_9] : memref<1x128x384xbf16, #tpu.memory_space<vmem>>, vector<1x128x384xbf16>
    %19 = vector.shape_cast %18 : vector<1x128x384xbf16> to vector<128x384xbf16>
    %20 = arith.truncf %17 : vector<24x128xf32> to vector<24x128xbf16>
    %cst_10 = arith.constant dense<0.000000e+00> : vector<24x384xf32>
    %21 = tpu.matmul %20, %19, %cst_10 {dimension_numbers = #tpu.dot_dimension_numbers<[1], [0], [0], [1], [0, 0, 1, 1], [], []>} : vector<24x128xbf16>, vector<128x384xbf16>, vector<24x384xf32> -> vector<24x384xf32>
    %22 = vector.extract_strided_slice %21 {offsets = [0, 0], sizes = [24, 128], strides = [1, 1]} : vector<24x384xf32> to vector<24x128xf32>
    %23 = vector.extract_strided_slice %21 {offsets = [0, 128], sizes = [24, 128], strides = [1, 1]} : vector<24x384xf32> to vector<24x128xf32>
    %24 = vector.extract_strided_slice %21 {offsets = [0, 256], sizes = [24, 128], strides = [1, 1]} : vector<24x384xf32> to vector<24x128xf32>
    %c0_11 = arith.constant 0 : index
    %c0_12 = arith.constant 0 : index
    %25 = vector.load %arg2[%c0_11, %c0_12] : memref<24x24xf32, #tpu.memory_space<vmem>>, vector<24x24xf32>
    %cst_13 = arith.constant 0.000000e+00 : f32
    %26 = vector.broadcast %cst_13 : f32 to vector<24x128xf32>
    %27 = vector.extract_strided_slice %22 {offsets = [0, 0], sizes = [24, 32], strides = [1, 1]} : vector<24x128xf32> to vector<24x32xf32>
    %28 = arith.truncf %27 : vector<24x32xf32> to vector<24x32xbf16>
    %29 = vector.extract_strided_slice %23 {offsets = [0, 0], sizes = [24, 32], strides = [1, 1]} : vector<24x128xf32> to vector<24x32xf32>
    %30 = arith.truncf %29 : vector<24x32xf32> to vector<24x32xbf16>
    %31 = vector.extract_strided_slice %24 {offsets = [0, 0], sizes = [24, 32], strides = [1, 1]} : vector<24x128xf32> to vector<24x32xf32>
    %32 = arith.truncf %31 : vector<24x32xf32> to vector<24x32xbf16>
    %cst_14 = arith.constant dense<0.000000e+00> : vector<24x24xf32>
    %33 = tpu.matmul %28, %30, %cst_14 {dimension_numbers = #tpu.dot_dimension_numbers<[1], [1], [0], [0], [0, 0, 1, 0], [], []>} : vector<24x32xbf16>, vector<24x32xbf16>, vector<24x24xf32> -> vector<24x24xf32>
    %cst_15 = arith.constant 0.176776692 : f32
    %34 = vector.broadcast %cst_15 : f32 to vector<24x24xf32>
    %35 = arith.mulf %33, %34 : vector<24x24xf32>
    %36 = arith.addf %35, %25 : vector<24x24xf32>
    %cst_16 = arith.constant dense<0xFF800000> : vector<24xf32>
    %37 = vector.multi_reduction <maximumf>, %36, %cst_16 [1] : vector<24x24xf32> to vector<24xf32>
    %38 = vector.shape_cast %37 : vector<24xf32> to vector<24x1xf32>
    %39 = vector.broadcast %38 : vector<24x1xf32> to vector<24x24xf32>
    %40 = arith.subf %36, %39 : vector<24x24xf32>
    %41 = math.exp %40 : vector<24x24xf32>
    %cst_17 = arith.constant dense<0.000000e+00> : vector<24xf32>
    %42 = vector.multi_reduction <add>, %41, %cst_17 [1] : vector<24x24xf32> to vector<24xf32>
    %43 = vector.shape_cast %42 : vector<24xf32> to vector<24x1xf32>
    %44 = tpu.reciprocal %43 {approx = true} : vector<24x1xf32> -> vector<24x1xf32>
    %45 = vector.broadcast %44 : vector<24x1xf32> to vector<24x24xf32>
    %46 = arith.mulf %41, %45 : vector<24x24xf32>
    %47 = arith.truncf %46 : vector<24x24xf32> to vector<24x24xbf16>
    %cst_18 = arith.constant dense<0.000000e+00> : vector<24x32xf32>
    %48 = tpu.matmul %47, %32, %cst_18 {dimension_numbers = #tpu.dot_dimension_numbers<[1], [0], [0], [1], [0, 0, 1, 1], [], []>} : vector<24x24xbf16>, vector<24x32xbf16>, vector<24x32xf32> -> vector<24x32xf32>
    %c0_19 = arith.constant 0 : index
    %c0_20 = arith.constant 0 : index
    %c0_21 = arith.constant 0 : index
    %49 = vector.load %arg4[%c0_19, %c0_20, %c0_21] : memref<1x128x128xbf16, #tpu.memory_space<vmem>>, vector<1x32x128xbf16>
    %50 = vector.shape_cast %49 : vector<1x32x128xbf16> to vector<32x128xbf16>
    %51 = arith.truncf %48 : vector<24x32xf32> to vector<24x32xbf16>
    %cst_22 = arith.constant dense<0.000000e+00> : vector<24x128xf32>
    %52 = tpu.matmul %51, %50, %cst_22 {dimension_numbers = #tpu.dot_dimension_numbers<[1], [0], [0], [1], [0, 0, 1, 1], [], []>} : vector<24x32xbf16>, vector<32x128xbf16>, vector<24x128xf32> -> vector<24x128xf32>
    %53 = arith.addf %26, %52 : vector<24x128xf32>
    %54 = vector.extract_strided_slice %22 {offsets = [0, 32], sizes = [24, 32], strides = [1, 1]} : vector<24x128xf32> to vector<24x32xf32>
    %55 = arith.truncf %54 : vector<24x32xf32> to vector<24x32xbf16>
    %56 = vector.extract_strided_slice %23 {offsets = [0, 32], sizes = [24, 32], strides = [1, 1]} : vector<24x128xf32> to vector<24x32xf32>
    %57 = arith.truncf %56 : vector<24x32xf32> to vector<24x32xbf16>
    %58 = vector.extract_strided_slice %24 {offsets = [0, 32], sizes = [24, 32], strides = [1, 1]} : vector<24x128xf32> to vector<24x32xf32>
    %59 = arith.truncf %58 : vector<24x32xf32> to vector<24x32xbf16>
    %cst_23 = arith.constant dense<0.000000e+00> : vector<24x24xf32>
    %60 = tpu.matmul %55, %57, %cst_23 {dimension_numbers = #tpu.dot_dimension_numbers<[1], [1], [0], [0], [0, 0, 1, 0], [], []>} : vector<24x32xbf16>, vector<24x32xbf16>, vector<24x24xf32> -> vector<24x24xf32>
    %cst_24 = arith.constant 0.176776692 : f32
    %61 = vector.broadcast %cst_24 : f32 to vector<24x24xf32>
    %62 = arith.mulf %60, %61 : vector<24x24xf32>
    %63 = arith.addf %62, %25 : vector<24x24xf32>
    %cst_25 = arith.constant dense<0xFF800000> : vector<24xf32>
    %64 = vector.multi_reduction <maximumf>, %63, %cst_25 [1] : vector<24x24xf32> to vector<24xf32>
    %65 = vector.shape_cast %64 : vector<24xf32> to vector<24x1xf32>
    %66 = vector.broadcast %65 : vector<24x1xf32> to vector<24x24xf32>
    %67 = arith.subf %63, %66 : vector<24x24xf32>
    %68 = math.exp %67 : vector<24x24xf32>
    %cst_26 = arith.constant dense<0.000000e+00> : vector<24xf32>
    %69 = vector.multi_reduction <add>, %68, %cst_26 [1] : vector<24x24xf32> to vector<24xf32>
    %70 = vector.shape_cast %69 : vector<24xf32> to vector<24x1xf32>
    %71 = tpu.reciprocal %70 {approx = true} : vector<24x1xf32> -> vector<24x1xf32>
    %72 = vector.broadcast %71 : vector<24x1xf32> to vector<24x24xf32>
    %73 = arith.mulf %68, %72 : vector<24x24xf32>
    %74 = arith.truncf %73 : vector<24x24xf32> to vector<24x24xbf16>
    %cst_27 = arith.constant dense<0.000000e+00> : vector<24x32xf32>
    %75 = tpu.matmul %74, %59, %cst_27 {dimension_numbers = #tpu.dot_dimension_numbers<[1], [0], [0], [1], [0, 0, 1, 1], [], []>} : vector<24x24xbf16>, vector<24x32xbf16>, vector<24x32xf32> -> vector<24x32xf32>
    %c0_28 = arith.constant 0 : index
    %c32 = arith.constant 32 : index
    %c0_29 = arith.constant 0 : index
    %76 = vector.load %arg4[%c0_28, %c32, %c0_29] : memref<1x128x128xbf16, #tpu.memory_space<vmem>>, vector<1x32x128xbf16>
    %77 = vector.shape_cast %76 : vector<1x32x128xbf16> to vector<32x128xbf16>
    %78 = arith.truncf %75 : vector<24x32xf32> to vector<24x32xbf16>
    %cst_30 = arith.constant dense<0.000000e+00> : vector<24x128xf32>
    %79 = tpu.matmul %78, %77, %cst_30 {dimension_numbers = #tpu.dot_dimension_numbers<[1], [0], [0], [1], [0, 0, 1, 1], [], []>} : vector<24x32xbf16>, vector<32x128xbf16>, vector<24x128xf32> -> vector<24x128xf32>
    %80 = arith.addf %53, %79 : vector<24x128xf32>
    %81 = vector.extract_strided_slice %22 {offsets = [0, 64], sizes = [24, 32], strides = [1, 1]} : vector<24x128xf32> to vector<24x32xf32>
    %82 = arith.truncf %81 : vector<24x32xf32> to vector<24x32xbf16>
    %83 = vector.extract_strided_slice %23 {offsets = [0, 64], sizes = [24, 32], strides = [1, 1]} : vector<24x128xf32> to vector<24x32xf32>
    %84 = arith.truncf %83 : vector<24x32xf32> to vector<24x32xbf16>
    %85 = vector.extract_strided_slice %24 {offsets = [0, 64], sizes = [24, 32], strides = [1, 1]} : vector<24x128xf32> to vector<24x32xf32>
    %86 = arith.truncf %85 : vector<24x32xf32> to vector<24x32xbf16>
    %cst_31 = arith.constant dense<0.000000e+00> : vector<24x24xf32>
    %87 = tpu.matmul %82, %84, %cst_31 {dimension_numbers = #tpu.dot_dimension_numbers<[1], [1], [0], [0], [0, 0, 1, 0], [], []>} : vector<24x32xbf16>, vector<24x32xbf16>, vector<24x24xf32> -> vector<24x24xf32>
    %cst_32 = arith.constant 0.176776692 : f32
    %88 = vector.broadcast %cst_32 : f32 to vector<24x24xf32>
    %89 = arith.mulf %87, %88 : vector<24x24xf32>
    %90 = arith.addf %89, %25 : vector<24x24xf32>
    %cst_33 = arith.constant dense<0xFF800000> : vector<24xf32>
    %91 = vector.multi_reduction <maximumf>, %90, %cst_33 [1] : vector<24x24xf32> to vector<24xf32>
    %92 = vector.shape_cast %91 : vector<24xf32> to vector<24x1xf32>
    %93 = vector.broadcast %92 : vector<24x1xf32> to vector<24x24xf32>
    %94 = arith.subf %90, %93 : vector<24x24xf32>
    %95 = math.exp %94 : vector<24x24xf32>
    %cst_34 = arith.constant dense<0.000000e+00> : vector<24xf32>
    %96 = vector.multi_reduction <add>, %95, %cst_34 [1] : vector<24x24xf32> to vector<24xf32>
    %97 = vector.shape_cast %96 : vector<24xf32> to vector<24x1xf32>
    %98 = tpu.reciprocal %97 {approx = true} : vector<24x1xf32> -> vector<24x1xf32>
    %99 = vector.broadcast %98 : vector<24x1xf32> to vector<24x24xf32>
    %100 = arith.mulf %95, %99 : vector<24x24xf32>
    %101 = arith.truncf %100 : vector<24x24xf32> to vector<24x24xbf16>
    %cst_35 = arith.constant dense<0.000000e+00> : vector<24x32xf32>
    %102 = tpu.matmul %101, %86, %cst_35 {dimension_numbers = #tpu.dot_dimension_numbers<[1], [0], [0], [1], [0, 0, 1, 1], [], []>} : vector<24x24xbf16>, vector<24x32xbf16>, vector<24x32xf32> -> vector<24x32xf32>
    %c0_36 = arith.constant 0 : index
    %c64 = arith.constant 64 : index
    %c0_37 = arith.constant 0 : index
    %103 = vector.load %arg4[%c0_36, %c64, %c0_37] : memref<1x128x128xbf16, #tpu.memory_space<vmem>>, vector<1x32x128xbf16>
    %104 = vector.shape_cast %103 : vector<1x32x128xbf16> to vector<32x128xbf16>
    %105 = arith.truncf %102 : vector<24x32xf32> to vector<24x32xbf16>
    %cst_38 = arith.constant dense<0.000000e+00> : vector<24x128xf32>
    %106 = tpu.matmul %105, %104, %cst_38 {dimension_numbers = #tpu.dot_dimension_numbers<[1], [0], [0], [1], [0, 0, 1, 1], [], []>} : vector<24x32xbf16>, vector<32x128xbf16>, vector<24x128xf32> -> vector<24x128xf32>
    %107 = arith.addf %80, %106 : vector<24x128xf32>
    %108 = vector.extract_strided_slice %22 {offsets = [0, 96], sizes = [24, 32], strides = [1, 1]} : vector<24x128xf32> to vector<24x32xf32>
    %109 = arith.truncf %108 : vector<24x32xf32> to vector<24x32xbf16>
    %110 = vector.extract_strided_slice %23 {offsets = [0, 96], sizes = [24, 32], strides = [1, 1]} : vector<24x128xf32> to vector<24x32xf32>
    %111 = arith.truncf %110 : vector<24x32xf32> to vector<24x32xbf16>
    %112 = vector.extract_strided_slice %24 {offsets = [0, 96], sizes = [24, 32], strides = [1, 1]} : vector<24x128xf32> to vector<24x32xf32>
    %113 = arith.truncf %112 : vector<24x32xf32> to vector<24x32xbf16>
    %cst_39 = arith.constant dense<0.000000e+00> : vector<24x24xf32>
    %114 = tpu.matmul %109, %111, %cst_39 {dimension_numbers = #tpu.dot_dimension_numbers<[1], [1], [0], [0], [0, 0, 1, 0], [], []>} : vector<24x32xbf16>, vector<24x32xbf16>, vector<24x24xf32> -> vector<24x24xf32>
    %cst_40 = arith.constant 0.176776692 : f32
    %115 = vector.broadcast %cst_40 : f32 to vector<24x24xf32>
    %116 = arith.mulf %114, %115 : vector<24x24xf32>
    %117 = arith.addf %116, %25 : vector<24x24xf32>
    %cst_41 = arith.constant dense<0xFF800000> : vector<24xf32>
    %118 = vector.multi_reduction <maximumf>, %117, %cst_41 [1] : vector<24x24xf32> to vector<24xf32>
    %119 = vector.shape_cast %118 : vector<24xf32> to vector<24x1xf32>
    %120 = vector.broadcast %119 : vector<24x1xf32> to vector<24x24xf32>
    %121 = arith.subf %117, %120 : vector<24x24xf32>
    %122 = math.exp %121 : vector<24x24xf32>
    %cst_42 = arith.constant dense<0.000000e+00> : vector<24xf32>
    %123 = vector.multi_reduction <add>, %122, %cst_42 [1] : vector<24x24xf32> to vector<24xf32>
    %124 = vector.shape_cast %123 : vector<24xf32> to vector<24x1xf32>
    %125 = tpu.reciprocal %124 {approx = true} : vector<24x1xf32> -> vector<24x1xf32>
    %126 = vector.broadcast %125 : vector<24x1xf32> to vector<24x24xf32>
    %127 = arith.mulf %122, %126 : vector<24x24xf32>
    %128 = arith.truncf %127 : vector<24x24xf32> to vector<24x24xbf16>
    %cst_43 = arith.constant dense<0.000000e+00> : vector<24x32xf32>
    %129 = tpu.matmul %128, %113, %cst_43 {dimension_numbers = #tpu.dot_dimension_numbers<[1], [0], [0], [1], [0, 0, 1, 1], [], []>} : vector<24x24xbf16>, vector<24x32xbf16>, vector<24x32xf32> -> vector<24x32xf32>
    %c0_44 = arith.constant 0 : index
    %c96 = arith.constant 96 : index
    %c0_45 = arith.constant 0 : index
    %130 = vector.load %arg4[%c0_44, %c96, %c0_45] : memref<1x128x128xbf16, #tpu.memory_space<vmem>>, vector<1x32x128xbf16>
    %131 = vector.shape_cast %130 : vector<1x32x128xbf16> to vector<32x128xbf16>
    %132 = arith.truncf %129 : vector<24x32xf32> to vector<24x32xbf16>
    %cst_46 = arith.constant dense<0.000000e+00> : vector<24x128xf32>
    %133 = tpu.matmul %132, %131, %cst_46 {dimension_numbers = #tpu.dot_dimension_numbers<[1], [0], [0], [1], [0, 0, 1, 1], [], []>} : vector<24x32xbf16>, vector<32x128xbf16>, vector<24x128xf32> -> vector<24x128xf32>
    %134 = arith.addf %107, %133 : vector<24x128xf32>
    %135 = arith.addf %3, %134 : vector<24x128xf32>
    %c0_47 = arith.constant 0 : index
    %c0_48 = arith.constant 0 : index
    %c0_49 = arith.constant 0 : index
    %136 = vector.load %arg5[%c0_47, %c0_48, %c0_49] : memref<1x1x128xf32, #tpu.memory_space<vmem>>, vector<1x1x128xf32>
    %137 = vector.shape_cast %136 : vector<1x1x128xf32> to vector<1x128xf32>
    %138 = vector.broadcast %137 : vector<1x128xf32> to vector<24x128xf32>
    %139 = arith.addf %135, %138 : vector<24x128xf32>
    %140 = arith.mulf %139, %139 : vector<24x128xf32>
    %cst_50 = arith.constant dense<0.000000e+00> : vector<24xf32>
    %141 = vector.multi_reduction <add>, %140, %cst_50 [1] : vector<24x128xf32> to vector<24xf32>
    %142 = vector.shape_cast %141 : vector<24xf32> to vector<24x1xf32>
    %cst_51 = arith.constant 1.280000e+02 : f32
    %143 = vector.broadcast %cst_51 : f32 to vector<24x1xf32>
    %144 = arith.divf %142, %143 : vector<24x1xf32>
    %cst_52 = arith.constant 9.99999993E-9 : f32
    %145 = vector.broadcast %cst_52 : f32 to vector<24x1xf32>
    %146 = arith.addf %144, %145 : vector<24x1xf32>
    %147 = math.rsqrt %146 : vector<24x1xf32>
    %148 = vector.broadcast %147 : vector<24x1xf32> to vector<24x128xf32>
    %149 = arith.mulf %139, %148 : vector<24x128xf32>
    %c0_53 = arith.constant 0 : index
    %c0_54 = arith.constant 0 : index
    %c0_55 = arith.constant 0 : index
    %150 = vector.load %arg7[%c0_53, %c0_54, %c0_55] : memref<1x1x128xf32, #tpu.memory_space<vmem>>, vector<1x1x128xf32>
    %151 = vector.shape_cast %150 : vector<1x1x128xf32> to vector<1x128xf32>
    %152 = vector.broadcast %151 : vector<1x128xf32> to vector<24x128xf32>
    %153 = arith.mulf %149, %152 : vector<24x128xf32>
    %c0_56 = arith.constant 0 : index
    %c0_57 = arith.constant 0 : index
    %c0_58 = arith.constant 0 : index
    %154 = vector.load %arg8[%c0_56, %c0_57, %c0_58] : memref<1x128x1024xbf16, #tpu.memory_space<vmem>>, vector<1x128x1024xbf16>
    %155 = vector.shape_cast %154 : vector<1x128x1024xbf16> to vector<128x1024xbf16>
    %156 = arith.truncf %153 : vector<24x128xf32> to vector<24x128xbf16>
    %cst_59 = arith.constant dense<0.000000e+00> : vector<24x1024xf32>
    %157 = tpu.matmul %156, %155, %cst_59 {dimension_numbers = #tpu.dot_dimension_numbers<[1], [0], [0], [1], [0, 0, 1, 1], [], []>} : vector<24x128xbf16>, vector<128x1024xbf16>, vector<24x1024xf32> -> vector<24x1024xf32>
    %c0_60 = arith.constant 0 : index
    %c0_61 = arith.constant 0 : index
    %c0_62 = arith.constant 0 : index
    %158 = vector.load %arg9[%c0_60, %c0_61, %c0_62] : memref<1x1x1024xf32, #tpu.memory_space<vmem>>, vector<1x1x1024xf32>
    %159 = vector.shape_cast %158 : vector<1x1x1024xf32> to vector<1x1024xf32>
    %160 = vector.broadcast %159 : vector<1x1024xf32> to vector<24x1024xf32>
    %161 = arith.addf %157, %160 : vector<24x1024xf32>
    %162 = vector.extract_strided_slice %161 {offsets = [0, 0], sizes = [24, 512], strides = [1, 1]} : vector<24x1024xf32> to vector<24x512xf32>
    %163 = vector.extract_strided_slice %161 {offsets = [0, 512], sizes = [24, 512], strides = [1, 1]} : vector<24x1024xf32> to vector<24x512xf32>
    %164 = arith.mulf %163, %163 : vector<24x512xf32>
    %165 = arith.mulf %163, %164 : vector<24x512xf32>
    %cst_63 = arith.constant 4.471500e-02 : f32
    %166 = vector.broadcast %cst_63 : f32 to vector<24x512xf32>
    %167 = arith.mulf %166, %165 : vector<24x512xf32>
    %168 = arith.addf %163, %167 : vector<24x512xf32>
    %cst_64 = arith.constant 0.797884583 : f32
    %169 = vector.broadcast %cst_64 : f32 to vector<24x512xf32>
    %170 = arith.mulf %169, %168 : vector<24x512xf32>
    %171 = math.tanh %170 : vector<24x512xf32>
    %cst_65 = arith.constant 1.000000e+00 : f32
    %172 = vector.broadcast %cst_65 : f32 to vector<24x512xf32>
    %173 = arith.addf %172, %171 : vector<24x512xf32>
    %cst_66 = arith.constant 5.000000e-01 : f32
    %174 = vector.broadcast %cst_66 : f32 to vector<24x512xf32>
    %175 = arith.mulf %174, %173 : vector<24x512xf32>
    %176 = arith.mulf %163, %175 : vector<24x512xf32>
    %177 = arith.mulf %162, %176 : vector<24x512xf32>
    %c0_67 = arith.constant 0 : index
    %c0_68 = arith.constant 0 : index
    %c0_69 = arith.constant 0 : index
    %178 = vector.load %arg10[%c0_67, %c0_68, %c0_69] : memref<1x512x128xbf16, #tpu.memory_space<vmem>>, vector<1x512x128xbf16>
    %179 = vector.shape_cast %178 : vector<1x512x128xbf16> to vector<512x128xbf16>
    %180 = arith.truncf %177 : vector<24x512xf32> to vector<24x512xbf16>
    %cst_70 = arith.constant dense<0.000000e+00> : vector<24x128xf32>
    %181 = tpu.matmul %180, %179, %cst_70 {dimension_numbers = #tpu.dot_dimension_numbers<[1], [0], [0], [1], [0, 0, 1, 1], [], []>} : vector<24x512xbf16>, vector<512x128xbf16>, vector<24x128xf32> -> vector<24x128xf32>
    %182 = arith.addf %139, %181 : vector<24x128xf32>
    %c0_71 = arith.constant 0 : index
    %c0_72 = arith.constant 0 : index
    %c0_73 = arith.constant 0 : index
    %183 = vector.load %arg11[%c0_71, %c0_72, %c0_73] : memref<1x1x128xf32, #tpu.memory_space<vmem>>, vector<1x1x128xf32>
    %184 = vector.shape_cast %183 : vector<1x1x128xf32> to vector<1x128xf32>
    %185 = vector.broadcast %184 : vector<1x128xf32> to vector<24x128xf32>
    %186 = arith.addf %182, %185 : vector<24x128xf32>
    %c0_74 = arith.constant 0 : index
    %c0_75 = arith.constant 0 : index
    %187 = vector.load %arg15[%c0_74, %c0_75] : memref<24x128xf32, #tpu.memory_space<vmem>>, vector<24x128xf32>
    tpu.vector_store %arg15[%c0_74, %c0_75], %186 {strides = array<i32>} : memref<24x128xf32, #tpu.memory_space<vmem>>, vector<24x128xf32>,
    %c1_i32 = arith.constant 1 : i32
    %188 = arith.cmpi eq, %arg0, %c1_i32 : i32
    %189 = arith.extui %188 : i1 to i32
    %c0_i32_76 = arith.constant 0 : i32
    %190 = arith.cmpi ne, %189, %c0_i32_76 : i32
    scf.if %190 {
      %191 = vector.extract_strided_slice %186 {offsets = [11, 0], sizes = [1, 128], strides = [1, 1]} : vector<24x128xf32> to vector<1x128xf32>
      %192 = vector.extract_strided_slice %186 {offsets = [23, 0], sizes = [1, 128], strides = [1, 1]} : vector<24x128xf32> to vector<1x128xf32>
      %193 = tpu.concatenate %191, %192 in 0 : vector<1x128xf32>, vector<1x128xf32> -> vector<2x128xf32>
      %194 = arith.mulf %193, %193 : vector<2x128xf32>
      %cst_77 = arith.constant dense<0.000000e+00> : vector<2xf32>
      %195 = vector.multi_reduction <add>, %194, %cst_77 [1] : vector<2x128xf32> to vector<2xf32>
      %196 = vector.shape_cast %195 : vector<2xf32> to vector<2x1xf32>
      %cst_78 = arith.constant 1.280000e+02 : f32
      %197 = vector.broadcast %cst_78 : f32 to vector<2x1xf32>
      %198 = arith.divf %196, %197 : vector<2x1xf32>
      %cst_79 = arith.constant 9.99999993E-9 : f32
      %199 = vector.broadcast %cst_79 : f32 to vector<2x1xf32>
      %200 = arith.addf %198, %199 : vector<2x1xf32>
      %201 = math.rsqrt %200 : vector<2x1xf32>
      %202 = vector.broadcast %201 : vector<2x1xf32> to vector<2x128xf32>
      %203 = arith.mulf %193, %202 : vector<2x128xf32>
      %c0_80 = arith.constant 0 : index
      %c0_81 = arith.constant 0 : index
      %204 = vector.load %arg12[%c0_80, %c0_81] : memref<1x128xf32, #tpu.memory_space<vmem>>, vector<1x128xf32>
      %205 = vector.broadcast %204 : vector<1x128xf32> to vector<2x128xf32>
      %206 = arith.mulf %203, %205 : vector<2x128xf32>
      %c0_82 = arith.constant 0 : index
      %c0_83 = arith.constant 0 : index
      %207 = vector.load %arg13[%c0_82, %c0_83] : memref<1x128xf32, #tpu.memory_space<vmem>>, vector<1x128xf32>
      %208 = vector.broadcast %207 : vector<1x128xf32> to vector<2x128xf32>
      %209 = arith.mulf %206, %208 : vector<2x128xf32>
      %cst_84 = arith.constant dense<0.000000e+00> : vector<2xf32>
      %210 = vector.multi_reduction <add>, %209, %cst_84 [1] : vector<2x128xf32> to vector<2xf32>
      %211 = vector.shape_cast %210 : vector<2xf32> to vector<2x1xf32>
      %212 = vector.shape_cast %211 : vector<2x1xf32> to vector<2x1xf32>
      %213 = vector.broadcast %212 : vector<2x1xf32> to vector<2x128xf32>
      %c0_85 = arith.constant 0 : index
      %c0_86 = arith.constant 0 : index
      %214 = vector.load %arg14[%c0_85, %c0_86] : memref<2x128xf32, #tpu.memory_space<vmem>>, vector<2x128xf32>
      tpu.vector_store %arg14[%c0_85, %c0_86], %213 {strides = array<i32>} : memref<2x128xf32, #tpu.memory_space<vmem>>, vector<2x128xf32>,
    } else {
    }
    return
  }
  func.func @transform_0(%arg0: i32) -> (i32, i32) {
    %c0_i32 = arith.constant 0 : i32
    %c0_i32_0 = arith.constant 0 : i32
    %c0_i32_1 = arith.constant 0 : i32
    return %c0_i32, %c0_i32_0 : i32, i32
  }
  func.func @transform_1(%arg0: i32) -> (i32, i32) {
    %c0_i32 = arith.constant 0 : i32
    %c0_i32_0 = arith.constant 0 : i32
    %c0_i32_1 = arith.constant 0 : i32
    return %c0_i32, %c0_i32_0 : i32, i32
  }
  func.func @transform_2(%arg0: i32) -> (i32, i32, i32) {
    %c0_i32 = arith.constant 0 : i32
    %c0_i32_0 = arith.constant 0 : i32
    %c0_i32_1 = arith.constant 0 : i32
    return %arg0, %c0_i32, %c0_i32_0 : i32, i32, i32
  }
  func.func @transform_3(%arg0: i32) -> (i32, i32, i32) {
    %c0_i32 = arith.constant 0 : i32
    %c0_i32_0 = arith.constant 0 : i32
    %c0_i32_1 = arith.constant 0 : i32
    return %arg0, %c0_i32, %c0_i32_0 : i32, i32, i32
  }
  func.func @transform_4(%arg0: i32) -> (i32, i32, i32) {
    %c0_i32 = arith.constant 0 : i32
    %c0_i32_0 = arith.constant 0 : i32
    %c0_i32_1 = arith.constant 0 : i32
    return %arg0, %c0_i32, %c0_i32_0 : i32, i32, i32
  }
  func.func @transform_5(%arg0: i32) -> (i32, i32, i32) {
    %c0_i32 = arith.constant 0 : i32
    %c0_i32_0 = arith.constant 0 : i32
    %c0_i32_1 = arith.constant 0 : i32
    return %arg0, %c0_i32, %c0_i32_0 : i32, i32, i32
  }
  func.func @transform_6(%arg0: i32) -> (i32, i32, i32) {
    %c0_i32 = arith.constant 0 : i32
    %c0_i32_0 = arith.constant 0 : i32
    %c0_i32_1 = arith.constant 0 : i32
    return %arg0, %c0_i32, %c0_i32_0 : i32, i32, i32
  }
  func.func @transform_7(%arg0: i32) -> (i32, i32, i32) {
    %c0_i32 = arith.constant 0 : i32
    %c0_i32_0 = arith.constant 0 : i32
    %c0_i32_1 = arith.constant 0 : i32
    return %arg0, %c0_i32, %c0_i32_0 : i32, i32, i32
  }
  func.func @transform_8(%arg0: i32) -> (i32, i32, i32) {
    %c0_i32 = arith.constant 0 : i32
    %c0_i32_0 = arith.constant 0 : i32
    %c0_i32_1 = arith.constant 0 : i32
    return %arg0, %c0_i32, %c0_i32_0 : i32, i32, i32
  }
  func.func @transform_9(%arg0: i32) -> (i32, i32, i32) {
    %c0_i32 = arith.constant 0 : i32
    %c0_i32_0 = arith.constant 0 : i32
    %c0_i32_1 = arith.constant 0 : i32
    return %arg0, %c0_i32, %c0_i32_0 : i32, i32, i32
  }
  func.func @transform_10(%arg0: i32) -> (i32, i32, i32) {
    %c0_i32 = arith.constant 0 : i32
    %c0_i32_0 = arith.constant 0 : i32
    %c0_i32_1 = arith.constant 0 : i32
    return %arg0, %c0_i32, %c0_i32_0 : i32, i32, i32
  }
  func.func @transform_11(%arg0: i32) -> (i32, i32) {
    %c0_i32 = arith.constant 0 : i32
    %c0_i32_0 = arith.constant 0 : i32
    %c0_i32_1 = arith.constant 0 : i32
    return %c0_i32, %c0_i32_0 : i32, i32
  }
  func.func @transform_12(%arg0: i32) -> (i32, i32) {
    %c0_i32 = arith.constant 0 : i32
    %c0_i32_0 = arith.constant 0 : i32
    %c0_i32_1 = arith.constant 0 : i32
    return %c0_i32, %c0_i32_0 : i32, i32
  }
  func.func @transform_13(%arg0: i32) -> (i32, i32) {
    %c0_i32 = arith.constant 0 : i32
    %c0_i32_0 = arith.constant 0 : i32
    %c0_i32_1 = arith.constant 0 : i32
    return %c0_i32, %c0_i32_0 : i32, i32
  }
}

</mosaic_0001>

<bundles_post_ra>
// kernel: discriminator_forward.2
= control target key start
LH: loop header
LB: loop body
LE: loop exit
PB: predicated region body
PF: predicated region fallthrough
CT: control target
= control target key end

     0   :  { %s2018_s6 = smov 1   ;;  %s2019_s10 = smov 2   ;;  %s2429_s0 = inlined_call_operand.smem [shape: u32[30], index: -1, kind: input, shape index: {}] }
   0x1   :  { %s2067_s5 = sld [smem:[%s2429_s0]]   ;;  %s2020_s14 = smov 3  }
   0x2   :  { %s2072_s9 = sld [smem:[%s2429_s0 + %s2018_s6]]   ;;  %s2021_s18 = smov 4  }
   0x3   :  { %s2077_s13 = sld [smem:[%s2429_s0 + %s2019_s10]]   ;;  %s2022_s22 = smov 5  }
   0x4   :  { %s2082_s17 = sld [smem:[%s2429_s0 + %s2020_s14]]   ;;  %s2023_s26 = smov 6  }
   0x5   :  { %s2087_s21 = sld [smem:[%s2429_s0 + %s2021_s18]]   ;;  %s2024_s30 = smov 7  }
   0x6   :  { %s2092_s25 = sld [smem:[%s2429_s0 + %s2022_s22]]   ;;  %s2025_s4 = smov 8  }
   0x7   :  { %s2097_s29 = sld [smem:[%s2429_s0 + %s2023_s26]]   ;;  %s2026_s10 = smov 9  }
   0x8   :  { %2430 = sst [smem:[#allocation17_spill]] %s2072_s9  ;;  %s2027_s15 = smov 10  }
   0x9   :  { %s2102_s3 = sld [smem:[%s2429_s0 + %s2024_s30]]   ;;  %s2028_s20 = smov 11  }
   0xa   :  { %s2107_s8 = sld [smem:[%s2429_s0 + %s2025_s4]]   ;;  %s2029_s26 = smov 12  }
   0xb   :  { %s2112_s14 = sld [smem:[%s2429_s0 + %s2026_s10]]   ;;  %s2030_s1 = smov 13  }
   0xc   :  { %s2117_s19 = sld [smem:[%s2429_s0 + %s2027_s15]]   ;;  %s2031_s7 = smov 14  }
   0xd   :  { %s2122_s24 = sld [smem:[%s2429_s0 + %s2028_s20]]   ;;  %s2032_s15 = smov 15  }
   0xe   :  { %s2127_s30 = sld [smem:[%s2429_s0 + %s2029_s26]]   ;;  %s2033_s22 = smov 16  }
   0xf   :  { %s2132_s6 = sld [smem:[%s2429_s0 + %s2030_s1]]   ;;  %s2034_s28 = smov 17  }
  0x10   :  { %s2137_s12 = sld [smem:[%s2429_s0 + %s2031_s7]]   ;;  %s2035_s7 = smov 18  }
  0x11   :  { %s2142_s20 = sld [smem:[%s2429_s0 + %s2032_s15]]   ;;  %s2036_s15 = smov 19  }
  0x12   :  { %s2147_s27 = sld [smem:[%s2429_s0 + %s2033_s22]]   ;;  %s2037_s22 = smov 20  }
  0x13   :  { %2431 = sst [smem:[#allocation18_spill]] %s2122_s24 }
  0x14   :  { %2432 = sst [smem:[#allocation19_spill]] %s2127_s30 }
  0x15   :  { %2433 = sst [smem:[#allocation20_spill]] %s2132_s6 }
  0x16   :  { %s2152_s4 = sld [smem:[%s2429_s0 + %s2034_s28]]   ;;  %s2038_s28 = smov 21  }
  0x17   :  { %2434 = sst [smem:[#allocation21_spill]] %s2142_s20 }
  0x18   :  { %s2157_s9 = sld [smem:[%s2429_s0 + %s2035_s7]]   ;;  %s2039_s7 = smov 22  }
  0x19   :  { %s2162_s20 = sld [smem:[%s2429_s0 + %s2036_s15]]   ;;  %s2040_s15 = smov 23  }
  0x1a   :  { %s2167_s6 = sld [smem:[%s2429_s0 + %s2037_s22]]   ;;  %s2041_s22 = smov 24  }
  0x1b   :  { %s2177_s30 = sld [smem:[%s2429_s0 + %s2039_s7]]   ;;  %s2043_s7 = smov 26  }
  0x1c   :  { %2435 = sst [smem:[#allocation22_spill]] %s2152_s4 }
  0x1d   :  { %s2172_s4 = sld [smem:[%s2429_s0 + %s2038_s28]]   ;;  %s2042_s28 = smov 25  }
  0x1e   :  { %s2197_s24 = sld [smem:[%s2429_s0 + %s2043_s7]]  }
  0x1f   :  { %2436 = sst [smem:[#allocation23_spill]] %s2162_s20 }
  0x20   :  { %2437 = sst [smem:[#allocation24_spill]] %s2167_s6 }
  0x21   :  { %s2182_s20 = sld [smem:[%s2429_s0 + %s2040_s15]]   ;;  %s2044_s15 = smov 27  }
  0x22   :  { %s2187_s6 = sld [smem:[%s2429_s0 + %s2041_s22]]   ;;  %s2045_s22 = smov 28  }
  0x23   :  { %2438 = sst [smem:[#allocation25_spill]] %s2172_s4 }
  0x24   :  { %s2192_s4 = sld [smem:[%s2429_s0 + %s2042_s28]]   ;;  %s2046_s28 = smov 29  }
  0x27   :  { %2439 = sst [smem:[#allocation26_spill]] %s2182_s20 }
  0x28   :  { %2440 = sst [smem:[#allocation27_spill]] %s2187_s6 }
  0x29   :  { %s2202_s20 = sld [smem:[%s2429_s0 + %s2044_s15]]  }
  0x2a   :  { %2441 = sst [smem:[#allocation28_spill]] %s2192_s4 }
  0x2b   :  { %s2207_s6 = sld [smem:[%s2429_s0 + %s2045_s22]]  }
  0x2c   :  { %s2212_s4 = sld [smem:[%s2429_s0 + %s2046_s28]]  }
  0x2d   :  { %64 = vsyncpa [#allocation3], 0 }
  0x2e   :  { %65 = vsyncpa [#allocation5], 0 }
  0x2f   :  { %66 = vsyncpa [#allocation8], 0 }
  0x30   :  { %67 = vsyncpa [#allocation11], 0  ;;  %s2047_s7 = smov [#allocation4]   ;;  %s2048_s11 = smov [#allocation7]  }
  0x31   :  { %s99_s10 = sshll.u32 %s2047_s7, 4  ;;  %s135_s15 = sshll.u32 %s2048_s11, 4  ;;  %s100_s10 = int_to_ptr.vmem [resolvable:$true] %s99_s10  ;;  %s2214_s15 = int_to_ptr.vmem [resolvable:$true] %s135_s15 }
  0x32   :  { %s1856_s16 = scalar_lea.hbm %s2107_s8, 1024 }
  0x33   :  { %p1857_p0 = scmp.ne.s32.totalorder %s2107_s8, %s1856_s16  ;;  %p1860_p1 = scmp.lt.u32.totalorder %s1856_s16, %s2107_s8 }
  0x35   :  { %p1862_p2 = pnand %p1860_p1, %p1857_p0 }
  0x37   :  { %1865 = shalt.err (!%p1862_p2)
}
  0x38   :  { %s1866_s0 = scalar_lea.vmem %s100_s10, 1024  ;;  %p1871_p4 = scmp.lt.s32.totalorder %s100_s10, %s100_s10 }
  0x39   :  { %p1867_p3 = scmp.ne.s32.totalorder %s100_s10, %s1866_s0  ;;  %p1872_p5 = scmp.lt.s32.totalorder %s1866_s0, %s1866_s0 }
  0x3b   :  { %p1873_p6 = por %p1872_p5, %p1871_p4 }
  0x3d   :  { %p1874_p7 = pnand %p1873_p6, %p1867_p3 }
  0x3f   :  { %1877 = shalt.err (!%p1874_p7)
}
  0x40   :  { %s2049_s18 = smov 64   ;;  %s2050_s22 = smov 4  }
  0x41   :  { %105 = dma.hbm_to_vmem [thread:$0]  %s2107_s8, 1024, %s100_s10, [#allocation5], %s2049_s18, %s2049_s18, %s2050_s22  }
  0x42   :  { %s1878_s23 = scalar_lea.hbm %s2147_s27, 1024 }
  0x43   :  { %p1879_p8 = scmp.ne.s32.totalorder %s2147_s27, %s1878_s23  ;;  %p1882_p9 = scmp.lt.u32.totalorder %s1878_s23, %s2147_s27 }
  0x45   :  { %p1884_p10 = pnand %p1882_p9, %p1879_p8 }
  0x47   :  { %1887 = shalt.err (!%p1884_p10)
}
  0x48   :  { %s1888_s26 = scalar_lea.vmem %s2214_s15, 1024  ;;  %p1893_p12 = scmp.lt.s32.totalorder %s2214_s15, %s2214_s15 }
  0x49   :  { %p1889_p11 = scmp.ne.s32.totalorder %s2214_s15, %s1888_s26  ;;  %p1894_p13 = scmp.lt.s32.totalorder %s1888_s26, %s1888_s26 }
  0x4b   :  { %p1895_p0 = por %p1894_p13, %p1893_p12 }
  0x4d   :  { %p1896_p1 = pnand %p1895_p0, %p1889_p11 }
  0x4f   :  { %1899 = shalt.err (!%p1896_p1)
}
  0x50   :  { %141 = dma.hbm_to_vmem [thread:$0]  %s2147_s27, 1024, %s2214_s15, [#allocation8], %s2049_s18, %s2049_s18, %s2050_s22  }
  0x51   :  { %s2051_s8 = smov [#allocation10]   ;;  %s2052_s1 = smov [#allocation2]  }
  0x52   :  { %s167_s28 = sshll.u32 %s2051_s8, 4  ;;  %s81_s2 = sshll.u32 %s2052_s1, 4  ;;  %s168_s28 = int_to_ptr.vmem [resolvable:$true] %s167_s28  ;;  %s2235_s2 = int_to_ptr.vmem [resolvable:$true] %s81_s2 }
  0x53   :  { %s1900_s7 = scalar_lea.hbm %s2177_s30, 1024 }
  0x54   :  { %p1901_p2 = scmp.ne.s32.totalorder %s2177_s30, %s1900_s7  ;;  %p1904_p3 = scmp.lt.u32.totalorder %s1900_s7, %s2177_s30 }
  0x56   :  { %p1906_p4 = pnand %p1904_p3, %p1901_p2 }
  0x58   :  { %1909 = shalt.err (!%p1906_p4)
}
  0x59   :  { %s1910_s10 = scalar_lea.vmem %s168_s28, 1024  ;;  %p1915_p6 = scmp.lt.s32.totalorder %s168_s28, %s168_s28 }
  0x5a   :  { %p1911_p5 = scmp.ne.s32.totalorder %s168_s28, %s1910_s10  ;;  %p1916_p7 = scmp.lt.s32.totalorder %s1910_s10, %s1910_s10 }
  0x5c   :  { %p1917_p8 = por %p1916_p7, %p1915_p6 }
  0x5e   :  { %p1918_p9 = pnand %p1917_p8, %p1911_p5 }
  0x60   :  { %1921 = shalt.err (!%p1918_p9)
}
  0x61   :  { %173 = dma.hbm_to_vmem [thread:$0]  %s2177_s30, 1024, %s168_s28, [#allocation11], %s2049_s18, %s2049_s18, %s2050_s22  }
  0x62   :  { %s1922_s27 = scalar_lea.hbm %s2087_s21, 1536 }
  0x63   :  { %p1923_p10 = scmp.ne.s32.totalorder %s2087_s21, %s1922_s27  ;;  %p1926_p11 = scmp.lt.u32.totalorder %s1922_s27, %s2087_s21 }
  0x65   :  { %p1928_p12 = pnand %p1926_p11, %p1923_p10 }
  0x67   :  { %1931 = shalt.err (!%p1928_p12)
}
  0x68   :  { %s1932_s11 = scalar_lea.vmem %s2235_s2, 1536  ;;  %p1937_p0 = scmp.lt.s32.totalorder %s2235_s2, %s2235_s2 }
  0x69   :  { %p1933_p13 = scmp.ne.s32.totalorder %s2235_s2, %s1932_s11  ;;  %p1938_p1 = scmp.lt.s32.totalorder %s1932_s11, %s1932_s11 }
  0x6b   :  { %p1939_p2 = por %p1938_p1, %p1937_p0 }
  0x6d   :  { %p1940_p3 = pnand %p1939_p2, %p1933_p13 }
  0x6f   :  { %1943 = shalt.err (!%p1940_p3)
}
  0x70   :  { %87 = dma.hbm_to_vmem [thread:$0]  %s2087_s21, 1536, %s2235_s2, [#allocation3], %s2049_s18, %s2049_s18, %s2050_s22  }
  0x71   :  { %s2053_s30 = smov [#allocation6]   ;;  %s2054_s16 = smov [#allocation9]  }
  0x72   :  { %s121_s15 = sshll.u32 %s2053_s30, 4  ;;  %s149_s0 = sshll.u32 %s2054_s16, 4  ;;  %s122_s15 = int_to_ptr.vmem [resolvable:$true] %s121_s15  ;;  %s2256_s0 = int_to_ptr.vmem [resolvable:$true] %s149_s0 }
  0x73   :  { %s1944_s23 = scalar_lea.hbm %s2137_s12, 1024 }
  0x74   :  { %p1945_p4 = scmp.ne.s32.totalorder %s2137_s12, %s1944_s23  ;;  %p1948_p5 = scmp.lt.u32.totalorder %s1944_s23, %s2137_s12 }
  0x76   :  { %p1950_p6 = pnand %p1948_p5, %p1945_p4 }
  0x78   :  { %1953 = shalt.err (!%p1950_p6)
}
  0x79   :  { %s1954_s26 = scalar_lea.vmem %s122_s15, 1024  ;;  %p1959_p8 = scmp.lt.s32.totalorder %s122_s15, %s122_s15 }
  0x7a   :  { %p1955_p7 = scmp.ne.s32.totalorder %s122_s15, %s1954_s26  ;;  %p1960_p9 = scmp.lt.s32.totalorder %s1954_s26, %s1954_s26 }
  0x7c   :  { %p1961_p10 = por %p1960_p9, %p1959_p8 }
  0x7e   :  { %p1962_p11 = pnand %p1961_p10, %p1955_p7 }
  0x80   :  { %1965 = shalt.err (!%p1962_p11)
}
  0x81   :  { %127 = dma.hbm_to_vmem [thread:$0]  %s2137_s12, 1024, %s122_s15, [#allocation5], %s2049_s18, %s2049_s18, %s2050_s22  }
  0x82   :  { %s1966_s21 = scalar_lea.hbm %s2157_s9, 1024 }
  0x83   :  { %p1967_p12 = scmp.ne.s32.totalorder %s2157_s9, %s1966_s21  ;;  %p1970_p13 = scmp.lt.u32.totalorder %s1966_s21, %s2157_s9 }
  0x85   :  { %p1972_p0 = pnand %p1970_p13, %p1967_p12 }
  0x87   :  { %1975 = shalt.err (!%p1972_p0)
}
  0x88   :  { %s1976_s8 = scalar_lea.vmem %s2256_s0, 1024  ;;  %p1981_p2 = scmp.lt.s32.totalorder %s2256_s0, %s2256_s0 }
  0x89   :  { %p1977_p1 = scmp.ne.s32.totalorder %s2256_s0, %s1976_s8  ;;  %p1982_p3 = scmp.lt.s32.totalorder %s1976_s8, %s1976_s8 }
  0x8b   :  { %p1983_p4 = por %p1982_p3, %p1981_p2 }
  0x8d   :  { %p1984_p5 = pnand %p1983_p4, %p1977_p1 }
  0x8f   :  { %1987 = shalt.err (!%p1984_p5)
}
  0x90   :  { %155 = dma.hbm_to_vmem [thread:$0]  %s2157_s9, 1024, %s2256_s0, [#allocation8], %s2049_s18, %s2049_s18, %s2050_s22  }
  0x91   :  { %s2055_s12 = smov [#allocation12]   ;;  %s1988_s1 = scalar_lea.hbm %s2197_s24, 1024 }
  0x92   :  { %s185_s28 = sshll.u32 %s2055_s12, 4  ;;  %p1989_p6 = scmp.ne.s32.totalorder %s2197_s24, %s1988_s1  ;;  %s186_s28 = int_to_ptr.vmem [resolvable:$true] %s185_s28 }
  0x93   :  { %p1992_p7 = scmp.lt.u32.totalorder %s1988_s1, %s2197_s24 }
  0x95   :  { %p1994_p8 = pnand %p1992_p7, %p1989_p6 }
  0x97   :  { %1997 = shalt.err (!%p1994_p8)
}
  0x98   :  { %s1998_s2 = scalar_lea.vmem %s186_s28, 1024  ;;  %p2003_p10 = scmp.lt.s32.totalorder %s186_s28, %s186_s28 }
  0x99   :  { %p1999_p9 = scmp.ne.s32.totalorder %s186_s28, %s1998_s2  ;;  %p2004_p11 = scmp.lt.s32.totalorder %s1998_s2, %s1998_s2 }
  0x9b   :  { %p2005_p12 = por %p2004_p11, %p2003_p10 }
  0x9d   :  { %p2006_p13 = pnand %p2005_p12, %p1999_p9 }
  0x9f   :  { %2009 = shalt.err (!%p2006_p13)
}
  0xa0   :  { %191 = dma.hbm_to_vmem [thread:$0]  %s2197_s24, 1024, %s186_s28, [#allocation11], %s2049_s18, %s2049_s18, %s2050_s22  }
  0xa1   :  { %2010 = dma.done.wait [#allocation3], 1536  }
  0xa2   :  { %2011 = vsyncadd [#allocation3], 4294965760 }
  0xa3   :  { %2012 = dma.done.wait [#allocation5], 2048  }
  0xa4   :  { %2013 = vsyncadd [#allocation5], 4294965248 }
  0xa5   :  { %2014 = dma.done.wait [#allocation8], 2048  }
  0xa6   :  { %2015 = vsyncadd [#allocation8], 4294965248 }
  0xa7   :  { %2016 = dma.done.wait [#allocation11], 2048  }
  0xa8   :  { %2017 = vsyncadd [#allocation11], 4294965248  ;;  %v2056_v0 = vmov 0   ;;  %v1395_v1 = vld [vmem:[%s2207_s6] sm:$0x1]  ;;  %v1753_v4 = vld [vmem:[#allocation2 + $0x8] sm:$0xff]  }
  0xa9   :  { %339 = vmatprep.subr.bf16.mxu0 %v2056_v0  ;;  %v1401_v2 = vld [vmem:[%s2207_s6] sm:$0x1]  ;;  %1396 = vst [vmem:[%s2212_s4 + $0xb] sm:$0x1] %v1395_v1  ;;  %v1754_v5 = vld [vmem:[#allocation2 + $0x10] sm:$0xff]   ;;  %v1755_v6 = vld [vmem:[#allocation2 + $0x18] sm:$0xff]  }
  0xaa   :  { %1402 = vst [vmem:[%s2212_s4 + $0x17] sm:$0x1] %v1401_v2  ;;  %v1752_v3 = vld [vmem:[#allocation2] sm:$0xff]   ;;  %vm335_vm0 = vcmask 523264   ;;  %v1757_v11 = vld [vmem:[#allocation2 + $0x28] sm:$0xff]   ;;  %v1758_v12 = vld [vmem:[#allocation2 + $0x30] sm:$0xff]  }
  0xab   :  { %340 = vmatpush1.bf16.msra.mxu0 %v1752_v3  ;;  %v1756_v7 = vld [vmem:[#allocation2 + $0x20] sm:$0xff]   ;;  %v1759_v13 = vld [vmem:[#allocation2 + $0x38] sm:$0xff]   ;;  %v1761_v15 = vld [vmem:[#allocation2 + $0x48] sm:$0xff]   ;;  %vm386_vm1 = vcmask 1041408   ;;  %v2057_v32 = vmov 0.0   ;;  %vm2058_vm2 = vmmov 0  }
  0xac   :  { %341 = vmatprep.subr.bf16.mxu0 %v2056_v0  ;;  %v1440_v8 = vld.sshfl [vmem:[%s2067_s5] sm:$0x33 pattern:$0x76325410]  ;;  %v1762_v16 = vld [vmem:[#allocation2 + $0x50] sm:$0xff]   ;;  %v1763_v17 = vld [vmem:[#allocation2 + $0x58] sm:$0xff]   ;;  %1591 = vmatprep.subr.bf16.mxu1 %v2057_v32 }
  0xad   :  { %v227_v9 = vcombine.high %v1440_v8, %v1440_v8  ;;  %v1760_v14 = vld [vmem:[#allocation2 + $0x40] sm:$0xff]   ;;  %v230_v18 = vpack.c.bf16 %v1440_v8, %v1440_v8  ;;  %v1765_v33 = vld [vmem:[#allocation4 + $0x8] sm:$0xff]   ;;  %v1766_v34 = vld [vmem:[#allocation4 + $0x10] sm:$0xff]   ;;  %1607 = vmatprep.mubr.msk.bf16.mxu1 %vm2058_vm2, %v2057_v32  ;;  %s2442_s5 = sld [smem:[#allocation18_spill]]  ;;  %s2443_s9 = sld [smem:[#allocation19_spill]] }
  0xae   :  { %v1441_v19 = vld [vmem:[%s2092_s25] ss:$0 sm:$0xff]  ;;  %v1767_v40 = vld [vmem:[#allocation4 + $0x18] sm:$0xff]   ;;  %v1769_v42 = vld [vmem:[#allocation4 + $0x28] sm:$0xff]   ;;  %s2446_s25 = sld [smem:[#allocation24_spill]]  ;;  %s2451_s24 = sld [smem:[#allocation23_spill]] }
  0xaf   :  { %342 = vmatpush1.bf16.msra.mxu0 %v1753_v4  ;;  %v231_v10 = vpack.c.bf16 %v227_v9, %v227_v9  ;;  %v1764_v31 = vld [vmem:[#allocation4] sm:$0xff]   ;;  %v1770_v43 = vld [vmem:[#allocation4 + $0x30] sm:$0xff]   ;;  %v1771_v44 = vld [vmem:[#allocation4 + $0x38] sm:$0xff]   ;;  %s2452_s6 = sld [smem:[#allocation27_spill]]  ;;  %s2453_s18 = sld [smem:[#allocation28_spill]] }
  0xb0   :  { %343 = vmatprep.subr.bf16.mxu0 %v2056_v0  ;;  %1592 = vmatpush3.bf16.msra.mxu1 %v1764_v31  ;;  %v1768_v41 = vld [vmem:[#allocation4 + $0x20] sm:$0xff]   ;;  %v1773_v59 = vld [vmem:[%s2117_s19 + $0x8] sm:$0xff]   ;;  %v1774_v60 = vld [vmem:[%s2117_s19 + $0x10] sm:$0xff]  }
  0xb1   :  { %1454 = vmatprep.mubr.msk.bf16.mxu0 %vm335_vm0, %v231_v10  ;;  %1593 = vmatprep.subr.bf16.mxu1 %v2057_v32  ;;  %v1467_v48 = vld.sshfl [vmem:[%s2077_s13] sm:$0x33 pattern:$0x76325410]  ;;  %v1775_v61 = vld [vmem:[%s2117_s19 + $0x18] sm:$0xff]   ;;  %v1777_v63 = vld [vmem:[%s2117_s19 + $0x28] sm:$0xff]  }
  0xb2   :  { %v1456_v50 = vld [vmem:[%s2097_s29] ss:$0 sm:$0xff]  ;;  %v538_v53 = vcombine.high %v1467_v48, %v1467_v48  ;;  %v1778_v1 = vld [vmem:[%s2117_s19 + $0x30] sm:$0xff]   ;;  %v1779_v2 = vld [vmem:[%s2117_s19 + $0x38] sm:$0xff]   ;;  %s2444_s13 = sld [smem:[#allocation20_spill]]  ;;  %s2447_s29 = sld [smem:[#allocation25_spill]] }
  0xb3   :  { %344 = vmatpush1.bf16.msra.mxu0 %v1754_v5  ;;  %v1457_v52 = vld [vmem:[%s2102_s3] ss:$0 sm:$0xff]  ;;  %v1781_v4 = vld [vmem:[%s2117_s19 + $0x48] sm:$0xff]   ;;  %v1782_v5 = vld [vmem:[%s2117_s19 + $0x50] sm:$0xff]   ;;  %s2448_s3 = sld [smem:[#allocation21_spill]] }
  0xb4   :  { %345 = vmatprep.subr.bf16.mxu0 %v2056_v0  ;;  %1594 = vmatpush3.bf16.msra.mxu1 %v1765_v33  ;;  %v1772_v56 = vld [vmem:[%s2117_s19] sm:$0xff]   ;;  %v542_v57 = vpack.c.bf16 %v538_v53, %v538_v53  ;;  %v1070_v8 = vld [vmem:[%s2082_s17 + $0x8] sm:$0xff] }
  0xb5   :  { %1595 = vmatprep.subr.bf16.mxu1 %v2057_v32  ;;  %v1776_v62 = vld [vmem:[%s2117_s19 + $0x20] sm:$0xff]  }
  0xb6   :  { %v1780_v3 = vld [vmem:[%s2117_s19 + $0x40] sm:$0xff]  }
  0xb7   :  { %346 = vmatpush1.bf16.msra.mxu0 %v1755_v6  ;;  %v1783_v6 = vld [vmem:[%s2117_s19 + $0x58] sm:$0xff]   ;;  %v1458_v9 = vld [vmem:[%s2112_s14] ss:$0 sm:$0xff]  ;;  %s2449_s14 = sld [smem:[#allocation22_spill]]  ;;  %s2450_s19 = sld [smem:[#allocation26_spill]] }
  0xb8   :  { %347 = vmatprep.subr.bf16.mxu0 %v2056_v0  ;;  %1596 = vmatpush3.bf16.msra.mxu1 %v1766_v34  ;;  %v1483_v53 = vld [vmem:[%s2443_s9] ss:$0 sm:$0xff] }
  0xb9   :  { %1597 = vmatprep.subr.bf16.mxu1 %v2057_v32 }
  0xbb   :  { %348 = vmatpush1.bf16.msra.mxu0 %v1756_v7  ;;  %v541_v7 = vpack.c.bf16 %v1467_v48, %v1467_v48  ;;  %v1791_v48 = vld [vmem:[#allocation6 + $0x38] sm:$0xff]  }
  0xbc   :  { %349 = vmatprep.subr.bf16.mxu0 %v2056_v0  ;;  %1598 = vmatpush3.bf16.msra.mxu1 %v1767_v40 }
  0xbd   :  { %1599 = vmatprep.subr.bf16.mxu1 %v2057_v32 }
  0xbf   :  { %350 = vmatpush1.bf16.msra.mxu0 %v1757_v11 }
  0xc0   :  { %351 = vmatprep.subr.bf16.mxu0 %v2056_v0  ;;  %1600 = vmatpush3.bf16.msra.mxu1 %v1768_v41 }
  0xc1   :  { %1601 = vmatprep.subr.bf16.mxu1 %v2057_v32 }
  0xc3   :  { %352 = vmatpush1.bf16.msra.mxu0 %v1758_v12 }
  0xc4   :  { %353 = vmatprep.subr.bf16.mxu0 %v2056_v0  ;;  %1602 = vmatpush3.bf16.msra.mxu1 %v1769_v42 }
  0xc5   :  { %1603 = vmatprep.subr.bf16.mxu1 %v2057_v32 }
  0xc7   :  { %354 = vmatpush1.bf16.msra.mxu0 %v1759_v13 }
  0xc8   :  { %355 = vmatprep.subr.bf16.mxu0 %v2056_v0  ;;  %1604 = vmatpush3.bf16.msra.mxu1 %v1770_v43 }
  0xc9   :  { %1605 = vmatprep.subr.bf16.mxu1 %v2057_v32 }
  0xcb   :  { %356 = vmatpush1.bf16.msra.mxu0 %v1760_v14 }
  0xcc   :  { %357 = vmatprep.subr.bf16.mxu0 %v2056_v0  ;;  %1606 = vmatpush3.bf16.msra.mxu1 %v1771_v44  ;;  %v1787_v44 = vld [vmem:[#allocation6 + $0x18] sm:$0xff]  }
  0xcd   :  { %649 = vmatprep.subr.bf16.mxu1 %v2056_v0 }
  0xcf   :  { %358 = vmatpush1.bf16.msra.mxu0 %v1761_v15 }
  0xd0   :  { %359 = vmatprep.subr.bf16.mxu0 %v2056_v0 }
  0xd3   :  { %360 = vmatpush1.bf16.msra.mxu0 %v1762_v16 }
  0xd4   :  { %361 = vmatprep.subr.bf16.mxu0 %v2056_v0 }
  0xd7   :  { %362 = vmatpush1.bf16.msra.mxu0 %v1763_v17 }
  0xd8   :  { %1611 = vmatprep.subr.bf16.mxu0 %v2057_v32 }
  0xda   :  { %372 = vmatmul.mubr.bf16.vlgmr.msra.gmra.mrb[0].mxu0 %v230_v18 }
  0xdb   :  { %1627 = vmatprep.mubr.msk.bf16.mxu0 %vm2058_vm2, %v2057_v32 }
 0x1ad   :  { %v373_v20 = vpop.f32.mrb[0].mxu0 }
 0x1ae   :  { %v374_v21 = vadd.f32 %v1441_v19, %v373_v20  ;;  %v375_v22 = vpop.f32.mrb[1].mxu0 }
 0x1af   :  { %v376_v23 = vpop.f32.mrb[2].mxu0 }
 0x1b0   :  { %v1455_v24 = vmul.f32 -1.442695, %v374_v21  ;;  %v377_v25 = vpop.f32.mrb[3].mxu0 }
 0x1b2   :  { %1824 = vpow2.f32 %v1455_v24 }
 0x1bc   :  { %v1825_v26 = vpop.eup %1824 }
 0x1bd   :  { %v382_v27 = vadd.f32 1.0, %v1825_v26  ;;  %v1069_v26 = vld [vmem:[%s2082_s17] sm:$0xff]  ;;  %s2445_s17 = sld [smem:[#allocation17_spill]] }
 0x1bf   :  { %1826 = vrcp.f32 %v382_v27  ;;  %v1784_v27 = vld [vmem:[#allocation6] sm:$0xff]  }
 0x1c0   :  { %1612 = vmatpush3.bf16.msra.mxu0 %v1784_v27 }
 0x1c1   :  { %1613 = vmatprep.subr.bf16.mxu0 %v2057_v32 }
 0x1c9   :  { %v1827_v28 = vpop.eup %1826 }
 0x1ca   :  { %v385_v29 = vmul.f32 %v1827_v28, %v374_v21  ;;  %v1785_v28 = vld [vmem:[#allocation6 + $0x8] sm:$0xff]  }
 0x1cb   :  { %1614 = vmatpush3.bf16.msra.mxu0 %v1785_v28 }
 0x1cc   :  { %v387_v30 = vsel %vm386_vm1, %v385_v29, 0.0  ;;  %1615 = vmatprep.subr.bf16.mxu0 %v2057_v32 }
 0x1cd   :  { %388 = vadd.xlane.f32.xlu0 %v387_v30 }
 0x25a   :  { %v389_v35 = vpop.xlane.xlu0 %388 }
 0x25b   :  { %v391_v36 = vmul.f32 0.0078125, %v389_v35 }
 0x25d   :  { %v392_v37 = vsub.f32 %v385_v29, %v391_v36  ;;  %v1786_v29 = vld [vmem:[#allocation6 + $0x10] sm:$0xff]  }
 0x25e   :  { %1616 = vmatpush3.bf16.msra.mxu0 %v1786_v29 }
 0x25f   :  { %v393_v38 = vmul.f32 %v392_v37, %v392_v37  ;;  %1617 = vmatprep.subr.bf16.mxu0 %v2057_v32 }
 0x261   :  { %v394_v39 = vsel %vm386_vm1, %v393_v38, 0.0 }
 0x262   :  { %395 = vadd.xlane.f32.xlu0 %v394_v39  ;;  %1618 = vmatpush3.bf16.msra.mxu0 %v1787_v44 }
 0x263   :  { %1619 = vmatprep.subr.bf16.mxu0 %v2057_v32 }
 0x266   :  { %1073 = vadd.xlane.f32.xlu0 %v1070_v8 }
 0x2ef   :  { %v396_v45 = vpop.xlane.xlu0 %395 }
 0x2f0   :  { %v397_v46 = vmul.f32 0.0078125, %v396_v45  ;;  %v1788_v45 = vld [vmem:[#allocation6 + $0x20] sm:$0xff]  }
 0x2f1   :  { %1620 = vmatpush3.bf16.msra.mxu0 %v1788_v45  ;;  %v1494_v45 = vld [vmem:[%s2449_s14] ss:$0 sm:$0xff] }
 0x2f2   :  { %v398_v47 = vadd.f32 1e-05, %v397_v46  ;;  %1621 = vmatprep.subr.bf16.mxu0 %v2057_v32  ;;  %v1789_v46 = vld [vmem:[#allocation6 + $0x28] sm:$0xff]  }
 0x2f3   :  { %v1074_v30 = vpop.xlane.xlu0 %1073 }
 0x2f4   :  { %1828 = vrsqrt.f32 %v398_v47  ;;  %v1076_v33 = vmul.f32 0.0078125, %v1074_v30  ;;  %v1790_v47 = vld [vmem:[#allocation6 + $0x30] sm:$0xff]   ;;  %v1808_v30 = vld [vmem:[#allocation9] sm:$0xff]  }
 0x2f5   :  { %1622 = vmatpush3.bf16.msra.mxu0 %v1789_v46 }
 0x2f6   :  { %1623 = vmatprep.subr.bf16.mxu0 %v2057_v32 }
 0x2f9   :  { %1624 = vmatpush3.bf16.msra.mxu0 %v1790_v47 }
 0x2fa   :  { %1625 = vmatprep.subr.bf16.mxu0 %v2057_v32 }
 0x2fd   :  { %1626 = vmatpush3.bf16.msra.mxu0 %v1791_v48 }
 0x2fe   :  { %v1829_v49 = vpop.eup %1828  ;;  %1631 = vmatprep.subr.bf16.mxu0 %v2057_v32 }
 0x2ff   :  { %v400_v51 = vmul.f32 %v1829_v49, %v392_v37  ;;  %v2359_v37 = vsub.f32 %v1070_v8, %v1076_v33  ;;  %v1810_v33 = vld [vmem:[#allocation9 + $0x10] sm:$0xff]  }
 0x301   :  { %v408_v54 = vmul.f32 %v1456_v50, %v400_v51  ;;  %v1080_v42 = vmul.f32 %v2359_v37, %v2359_v37 }
 0x303   :  { %v416_v55 = vadd.f32 %v1457_v52, %v408_v54 }
 0x305   :  { %v417_v58 = vpack.c.bf16 %v416_v55, %v416_v55  ;;  %v1484_v55 = vld [vmem:[%s2444_s13] ss:$0 sm:$0xff] }
 0x307   :  { %1608 = vmatmul.mubr.bf16.vlgmr.msra.gmra.mrb[0].mxu1 %v417_v58  ;;  %v1792_v58 = vld [vmem:[#allocation7] sm:$0xff]  }
 0x308   :  { %650 = vmatpush1.bf16.msra.mxu1 %v1772_v56  ;;  %1481 = vmatprep.mubr.msk.bf16.mxu1 %vm335_vm0, %v542_v57 }
 0x309   :  { %651 = vmatprep.subr.bf16.mxu1 %v2056_v0 }
 0x30c   :  { %652 = vmatpush1.bf16.msra.mxu1 %v1773_v59 }
 0x30d   :  { %653 = vmatprep.subr.bf16.mxu1 %v2056_v0 }
 0x310   :  { %654 = vmatpush1.bf16.msra.mxu1 %v1774_v60  ;;  %v1793_v60 = vld [vmem:[#allocation7 + $0x8] sm:$0xff]  }
 0x311   :  { %655 = vmatprep.subr.bf16.mxu1 %v2056_v0 }
 0x314   :  { %656 = vmatpush1.bf16.msra.mxu1 %v1775_v61  ;;  %v1794_v61 = vld [vmem:[#allocation7 + $0x10] sm:$0xff]  }
 0x315   :  { %657 = vmatprep.subr.bf16.mxu1 %v2056_v0 }
 0x318   :  { %658 = vmatpush1.bf16.msra.mxu1 %v1776_v62  ;;  %v1795_v62 = vld [vmem:[#allocation7 + $0x18] sm:$0xff]  }
 0x319   :  { %659 = vmatprep.subr.bf16.mxu1 %v2056_v0 }
 0x31c   :  { %660 = vmatpush1.bf16.msra.mxu1 %v1777_v63  ;;  %v1796_v63 = vld [vmem:[#allocation7 + $0x20] sm:$0xff]  }
 0x31d   :  { %661 = vmatprep.subr.bf16.mxu1 %v2056_v0 }
 0x320   :  { %662 = vmatpush1.bf16.msra.mxu1 %v1778_v1  ;;  %v1797_v1 = vld [vmem:[#allocation7 + $0x28] sm:$0xff]  }
 0x321   :  { %663 = vmatprep.subr.bf16.mxu1 %v2056_v0 }
 0x324   :  { %664 = vmatpush1.bf16.msra.mxu1 %v1779_v2  ;;  %v1798_v2 = vld [vmem:[#allocation7 + $0x30] sm:$0xff]  }
 0x325   :  { %665 = vmatprep.subr.bf16.mxu1 %v2056_v0 }
 0x328   :  { %666 = vmatpush1.bf16.msra.mxu1 %v1780_v3 }
 0x329   :  { %667 = vmatprep.subr.bf16.mxu1 %v2056_v0 }
 0x32c   :  { %668 = vmatpush1.bf16.msra.mxu1 %v1781_v4  ;;  %v1799_v4 = vld [vmem:[#allocation7 + $0x38] sm:$0xff]  }
 0x32d   :  { %669 = vmatprep.subr.bf16.mxu1 %v2056_v0 }
 0x330   :  { %670 = vmatpush1.bf16.msra.mxu1 %v1782_v5  ;;  %v837_v5 = vld [vmem:[%s2445_s17] sm:$0x3] }
 0x331   :  { %671 = vmatprep.subr.bf16.mxu1 %v2056_v0  ;;  %v1468_v0 = vld [vmem:[%s2442_s5] ss:$0 sm:$0xff]  ;;  %v838_v8 = vpack.c.bf16 %v837_v5, %v837_v5 }
 0x334   :  { %672 = vmatpush1.bf16.msra.mxu1 %v1783_v6 }
 0x335   :  { %1651 = vmatprep.subr.bf16.mxu1 %v2057_v32 }
 0x337   :  { %682 = vmatmul.mubr.bf16.vlgmr.msra.gmra.mrb[4].mxu1 %v541_v7 }
 0x338   :  { %1667 = vmatprep.mubr.msk.bf16.mxu1 %vm2058_vm2, %v2057_v32  ;;  %1652 = vmatpush3.bf16.msra.mxu1 %v1808_v30 }
 0x339   :  { %1653 = vmatprep.subr.bf16.mxu1 %v2057_v32 }
 0x3da   :  { %v523_v10 = vpop.f32.mrb[0].mxu1 }
 0x3db   :  { %v524_v11 = vadd.f32 %v1458_v9, %v523_v10  ;;  %v1609_v12 = vpop.f32.mrb[1].mxu1  ;;  %v1800_v10 = vld [vmem:[#allocation10] sm:$0xff]  }
 0x3dc   :  { %v526_v13 = vpop.f32.mrb[2].mxu1 }
 0x3dd   :  { %1394 = vst [vmem:[%s2212_s4 + $0xa] sm:$0x1] %v524_v11  ;;  %1400 = vst [vmem:[%s2212_s4 + $0x15] sm:$0x2] %v524_v11  ;;  %v1610_v14 = vpop.f32.mrb[3].mxu1  ;;  %v1801_v13 = vld [vmem:[#allocation10 + $0x8] sm:$0xff]  }
 0x3de   :  { %v1802_v14 = vld [vmem:[#allocation10 + $0x10] sm:$0xff]  }
 0x40a   :  { %v683_v15 = vpop.f32.mrb[4].mxu1 }
 0x40b   :  { %v684_v16 = vadd.f32 %v1468_v0, %v683_v15  ;;  %v685_v17 = vpop.f32.mrb[5].mxu1  ;;  %v1803_v0 = vld [vmem:[#allocation10 + $0x18] sm:$0xff]   ;;  %v1804_v15 = vld [vmem:[#allocation10 + $0x20] sm:$0xff]  }
 0x40c   :  { %v686_v18 = vpop.f32.mrb[6].mxu1 }
 0x40d   :  { %v1482_v19 = vmul.f32 -1.442695, %v684_v16  ;;  %v687_v20 = vpop.f32.mrb[7].mxu1  ;;  %v1805_v18 = vld [vmem:[#allocation10 + $0x28] sm:$0xff]  }
 0x40f   :  { %1830 = vpow2.f32 %v1482_v19 }
 0x419   :  { %v1831_v21 = vpop.eup %1830 }
 0x41a   :  { %v692_v22 = vadd.f32 1.0, %v1831_v21  ;;  %v1513_v21 = vld [vmem:[%s2446_s25] ss:$0 sm:$0xff] }
 0x41c   :  { %1832 = vrcp.f32 %v692_v22  ;;  %v1806_v22 = vld [vmem:[#allocation10 + $0x30] sm:$0xff]  }
 0x426   :  { %v1833_v23 = vpop.eup %1832 }
 0x427   :  { %v695_v24 = vmul.f32 %v1833_v23, %v684_v16 }
 0x429   :  { %v696_v25 = vsel %vm386_vm1, %v695_v24, 0.0 }
 0x42a   :  { %697 = vadd.xlane.f32.xlu1 %v696_v25  ;;  %v1514_v25 = vld [vmem:[%s2447_s29] ss:$0 sm:$0xff] }
 0x42e   :  { %1071 = vadd.xlane.f32.xlu1 %v1069_v26 }
 0x4b7   :  { %v698_v31 = vpop.xlane.xlu1 %697 }
 0x4b8   :  { %v699_v34 = vmul.f32 0.0078125, %v698_v31  ;;  %v1809_v31 = vld [vmem:[#allocation9 + $0x8] sm:$0xff]  }
 0x4b9   :  { %1654 = vmatpush3.bf16.msra.mxu1 %v1809_v31 }
 0x4ba   :  { %v700_v35 = vsub.f32 %v695_v24, %v699_v34  ;;  %1655 = vmatprep.subr.bf16.mxu1 %v2057_v32  ;;  %v1811_v34 = vld [vmem:[#allocation9 + $0x18] sm:$0xff]  }
 0x4bb   :  { %v1072_v36 = vpop.xlane.xlu1 %1071 }
 0x4bc   :  { %v1075_v38 = vmul.f32 0.0078125, %v1072_v36  ;;  %v701_v39 = vmul.f32 %v700_v35, %v700_v35  ;;  %v1813_v36 = vld [vmem:[#allocation9 + $0x28] sm:$0xff]  }
 0x4bd   :  { %1656 = vmatpush3.bf16.msra.mxu1 %v1810_v33 }
 0x4be   :  { %v2361_v40 = vsub.f32 %v1069_v26, %v1075_v38  ;;  %v702_v41 = vsel %vm386_vm1, %v701_v39, 0.0  ;;  %v1807_v26 = vld [vmem:[#allocation10 + $0x38] sm:$0xff]   ;;  %1657 = vmatprep.subr.bf16.mxu1 %v2057_v32  ;;  %v1485_v39 = vld [vmem:[%s2448_s3] ss:$0 sm:$0xff] }
 0x4bf   :  { %703 = vadd.xlane.f32.xlu1 %v702_v41  ;;  %v1815_v38 = vld [vmem:[#allocation9 + $0x38] sm:$0xff]  }
 0x4c0   :  { %v1079_v43 = vmul.f32 %v2361_v40, %v2361_v40 }
 0x4c1   :  { %1658 = vmatpush3.bf16.msra.mxu1 %v1811_v34 }
 0x4c2   :  { %1081 = vadd.xlane.f32.xlu0 %v1079_v43  ;;  %1659 = vmatprep.subr.bf16.mxu1 %v2057_v32 }
 0x4c3   :  { %1083 = vadd.xlane.f32.xlu1 %v1080_v42 }
 0x54c   :  { %v704_v49 = vpop.xlane.xlu1 %703 }
 0x54d   :  { %v705_v50 = vmul.f32 0.0078125, %v704_v49 }
 0x54f   :  { %v706_v51 = vadd.f32 1e-05, %v705_v50  ;;  %v1082_v3 = vpop.xlane.xlu0 %1081 }
 0x550   :  { %v1084_v6 = vpop.xlane.xlu1 %1083  ;;  %v1085_v7 = vmul.f32 0.0078125, %v1082_v3 }
 0x551   :  { %1834 = vrsqrt.f32 %v706_v51  ;;  %v1086_v9 = vmul.f32 0.0078125, %v1084_v6 }
 0x552   :  { %v1087_v11 = vadd.f32 1e-05, %v1085_v7 }
 0x553   :  { %v1088_v12 = vadd.f32 1e-05, %v1086_v9 }
 0x554   :  { %1836 = vrsqrt.f32 %v1087_v11  ;;  %v1816_v11 = vld [vmem:[#allocation12] sm:$0xff]  }
 0x555   :  { %1838 = vrsqrt.f32 %v1088_v12  ;;  %v1817_v12 = vld [vmem:[#allocation12 + $0x8] sm:$0xff]  }
 0x55b   :  { %v1835_v52 = vpop.eup %1834 }
 0x55c   :  { %v708_v54 = vmul.f32 %v1835_v52, %v700_v35  ;;  %v1812_v35 = vld [vmem:[#allocation9 + $0x20] sm:$0xff]  }
 0x55d   :  { %1660 = vmatpush3.bf16.msra.mxu1 %v1812_v35 }
 0x55e   :  { %v716_v56 = vmul.f32 %v1483_v53, %v708_v54  ;;  %v1837_v16 = vpop.eup %1836  ;;  %1661 = vmatprep.subr.bf16.mxu1 %v2057_v32 }
 0x55f   :  { %v1839_v17 = vpop.eup %1838  ;;  %v1091_v19 = vmul.f32 %v1837_v16, %v2361_v40 }
 0x560   :  { %v724_v57 = vadd.f32 %v1484_v55, %v716_v56  ;;  %v1092_v20 = vmul.f32 %v1839_v17, %v2359_v37  ;;  %v1814_v37 = vld [vmem:[#allocation9 + $0x30] sm:$0xff]   ;;  %v1515_v56 = vld [vmem:[%s2450_s19] ss:$0 sm:$0xff] }
 0x561   :  { %v1100_v23 = vmul.f32 %v1513_v21, %v1091_v19  ;;  %1662 = vmatpush3.bf16.msra.mxu1 %v1813_v36 }
 0x562   :  { %v725_v59 = vpack.c.bf16 %v724_v57, %v724_v57  ;;  %v1101_v24 = vmul.f32 %v1513_v21, %v1092_v20  ;;  %1663 = vmatprep.subr.bf16.mxu1 %v2057_v32  ;;  %v1818_v20 = vld [vmem:[#allocation12 + $0x10] sm:$0xff]   ;;  %v1819_v21 = vld [vmem:[#allocation12 + $0x18] sm:$0xff]  }
 0x563   :  { %v1109_v27 = vadd.f32 %v1514_v25, %v1100_v23  ;;  %v1821_v23 = vld [vmem:[#allocation12 + $0x28] sm:$0xff]  }
 0x564   :  { %1628 = vmatmul.mubr.bf16.vlgmr.msra.gmra.mrb[4].mxu0 %v725_v59  ;;  %v1110_v28 = vadd.f32 %v1514_v25, %v1101_v24  ;;  %v1822_v24 = vld [vmem:[#allocation12 + $0x30] sm:$0xff]   ;;  %v1504_v25 = vld [vmem:[%s2451_s24] ss:$0 sm:$0xff] }
 0x565   :  { %1632 = vmatpush3.bf16.msra.mxu0 %v1792_v58  ;;  %1647 = vmatprep.mubr.msk.bf16.mxu0 %vm2058_vm2, %v2057_v32 }
 0x566   :  { %1633 = vmatprep.subr.bf16.mxu0 %v2057_v32  ;;  %v1111_v29 = vpack.c.bf16 %v1110_v28, %v1109_v27  ;;  %1664 = vmatpush3.bf16.msra.mxu1 %v1814_v37 }
 0x567   :  { %1665 = vmatprep.subr.bf16.mxu1 %v2057_v32 }
 0x569   :  { %1634 = vmatpush3.bf16.msra.mxu0 %v1793_v60 }
 0x56a   :  { %1635 = vmatprep.subr.bf16.mxu0 %v2057_v32  ;;  %1666 = vmatpush3.bf16.msra.mxu1 %v1815_v38 }
 0x56b   :  { %1691 = vmatprep.subr.bf16.mxu1 %v2057_v32 }
 0x56d   :  { %1636 = vmatpush3.bf16.msra.mxu0 %v1794_v61 }
 0x56e   :  { %1637 = vmatprep.subr.bf16.mxu0 %v2057_v32 }
 0x571   :  { %1638 = vmatpush3.bf16.msra.mxu0 %v1795_v62 }
 0x572   :  { %1639 = vmatprep.subr.bf16.mxu0 %v2057_v32 }
 0x575   :  { %1640 = vmatpush3.bf16.msra.mxu0 %v1796_v63 }
 0x576   :  { %1641 = vmatprep.subr.bf16.mxu0 %v2057_v32 }
 0x579   :  { %1642 = vmatpush3.bf16.msra.mxu0 %v1797_v1 }
 0x57a   :  { %1643 = vmatprep.subr.bf16.mxu0 %v2057_v32 }
 0x57d   :  { %1644 = vmatpush3.bf16.msra.mxu0 %v1798_v2 }
 0x57e   :  { %1645 = vmatprep.subr.bf16.mxu0 %v2057_v32 }
 0x581   :  { %1646 = vmatpush3.bf16.msra.mxu0 %v1799_v4 }
 0x582   :  { %1671 = vmatprep.subr.bf16.mxu0 %v2057_v32 }
 0x584   :  { %1648 = vmatmul.mubr.bf16.vlgmr.msra.gmra.mrb[8].mxu0 %v838_v8 }
 0x585   :  { %1672 = vmatpush3.bf16.msra.mxu0 %v1800_v10  ;;  %1687 = vmatprep.mubr.msk.bf16.mxu0 %vm2058_vm2, %v2057_v32 }
 0x586   :  { %1673 = vmatprep.subr.bf16.mxu0 %v2057_v32 }
 0x589   :  { %1674 = vmatpush3.bf16.msra.mxu0 %v1801_v13 }
 0x58a   :  { %1675 = vmatprep.subr.bf16.mxu0 %v2057_v32 }
 0x58d   :  { %1676 = vmatpush3.bf16.msra.mxu0 %v1802_v14 }
 0x58e   :  { %1677 = vmatprep.subr.bf16.mxu0 %v2057_v32 }
 0x591   :  { %1678 = vmatpush3.bf16.msra.mxu0 %v1803_v0 }
 0x592   :  { %1679 = vmatprep.subr.bf16.mxu0 %v2057_v32 }
 0x595   :  { %1680 = vmatpush3.bf16.msra.mxu0 %v1804_v15 }
 0x596   :  { %1681 = vmatprep.subr.bf16.mxu0 %v2057_v32 }
 0x599   :  { %1682 = vmatpush3.bf16.msra.mxu0 %v1805_v18 }
 0x59a   :  { %1683 = vmatprep.subr.bf16.mxu0 %v2057_v32 }
 0x59d   :  { %1684 = vmatpush3.bf16.msra.mxu0 %v1806_v22  ;;  %v1820_v22 = vld [vmem:[#allocation12 + $0x20] sm:$0xff]  }
 0x59e   :  { %1685 = vmatprep.subr.bf16.mxu0 %v2057_v32 }
 0x5a1   :  { %1686 = vmatpush3.bf16.msra.mxu0 %v1807_v26  ;;  %v1823_v26 = vld [vmem:[#allocation12 + $0x38] sm:$0xff]  }
 0x5a4   :  { %1688 = vmatmul.mubr.bf16.vlgmr.msra.gmra.mrb[12].mxu0 %v1111_v29 }
 0x637   :  { %v831_v40 = vpop.f32.mrb[4].mxu0 }
 0x638   :  { %v832_v41 = vadd.f32 %v1485_v39, %v831_v40  ;;  %v1629_v42 = vpop.f32.mrb[5].mxu0 }
 0x639   :  { %v834_v43 = vpop.f32.mrb[6].mxu0 }
 0x63a   :  { %1392 = vst [vmem:[%s2212_s4 + $0x8] sm:$0x1] %v832_v41  ;;  %1398 = vst [vmem:[%s2212_s4 + $0x13] sm:$0x2] %v832_v41  ;;  %v1630_v44 = vpop.f32.mrb[7].mxu0 }
 0x63b   :  { %v1527_v44 = vld [vmem:[%s2453_s18] ss:$0 sm:$0xff] }
 0x657   :  { %v944_v46 = vpop.f32.mrb[8].mxu0 }
 0x658   :  { %v945_v47 = vadd.f32 %v1494_v45, %v944_v46  ;;  %v1649_v48 = vpop.f32.mrb[9].mxu0 }
 0x659   :  { %v947_v49 = vpop.f32.mrb[10].mxu0 }
 0x65a   :  { %v1503_v50 = vmul.f32 -1.442695, %v945_v47  ;;  %v1650_v51 = vpop.f32.mrb[11].mxu0  ;;  %v1528_v49 = vld [vmem:[%s2202_s20] ss:$0 sm:$0xff] }
 0x65c   :  { %1840 = vpow2.f32 %v1503_v50 }
 0x666   :  { %v1841_v52 = vpop.eup %1840 }
 0x667   :  { %v953_v53 = vadd.f32 1.0, %v1841_v52 }
 0x669   :  { %1842 = vrcp.f32 %v953_v53 }
 0x673   :  { %v1843_v54 = vpop.eup %1842 }
 0x674   :  { %v956_v55 = vmul.f32 %v1843_v54, %v945_v47 }
 0x676   :  { %v957_v57 = vpack.c.bf16 %v956_v55, %v956_v55 }
 0x677   :  { %v1217_v58 = vpop.f32.mrb[12].mxu0 }
 0x678   :  { %v1218_v59 = vadd.f32 %v1515_v56, %v1217_v58  ;;  %1668 = vmatmul.mubr.bf16.vlgmr.msra.gmra.mrb[8].mxu1 %v957_v57  ;;  %v1689_v60 = vpop.f32.mrb[13].mxu0 }
 0x679   :  { %v1220_v61 = vpop.f32.mrb[14].mxu0  ;;  %1707 = vmatprep.mubr.msk.bf16.mxu1 %vm2058_vm2, %v2057_v32  ;;  %1692 = vmatpush3.bf16.msra.mxu1 %v1816_v11 }
 0x67a   :  { %v1524_v62 = vmul.f32 -1.442695, %v1218_v59  ;;  %v1221_v63 = vadd.f32 %v1515_v56, %v1220_v61  ;;  %v1690_v1 = vpop.f32.mrb[15].mxu0  ;;  %1693 = vmatprep.subr.bf16.mxu1 %v2057_v32 }
 0x67c   :  { %1844 = vpow2.f32 %v1524_v62  ;;  %v1525_v2 = vmul.f32 -1.442695, %v1221_v63 }
 0x67d   :  { %1694 = vmatpush3.bf16.msra.mxu1 %v1817_v12 }
 0x67e   :  { %1846 = vpow2.f32 %v1525_v2  ;;  %1695 = vmatprep.subr.bf16.mxu1 %v2057_v32 }
 0x681   :  { %1696 = vmatpush3.bf16.msra.mxu1 %v1818_v20 }
 0x682   :  { %1697 = vmatprep.subr.bf16.mxu1 %v2057_v32 }
 0x685   :  { %1698 = vmatpush3.bf16.msra.mxu1 %v1819_v21 }
 0x686   :  { %v1845_v3 = vpop.eup %1844  ;;  %1699 = vmatprep.subr.bf16.mxu1 %v2057_v32 }
 0x687   :  { %v1230_v4 = vadd.f32 1.0, %v1845_v3 }
 0x688   :  { %v1847_v5 = vpop.eup %1846 }
 0x689   :  { %1848 = vrcp.f32 %v1230_v4  ;;  %v1231_v6 = vadd.f32 1.0, %v1847_v5  ;;  %1700 = vmatpush3.bf16.msra.mxu1 %v1820_v22 }
 0x68a   :  { %1701 = vmatprep.subr.bf16.mxu1 %v2057_v32 }
 0x68b   :  { %1850 = vrcp.f32 %v1231_v6 }
 0x68d   :  { %1702 = vmatpush3.bf16.msra.mxu1 %v1821_v23 }
 0x68e   :  { %1703 = vmatprep.subr.bf16.mxu1 %v2057_v32 }
 0x691   :  { %1704 = vmatpush3.bf16.msra.mxu1 %v1822_v24 }
 0x692   :  { %1705 = vmatprep.subr.bf16.mxu1 %v2057_v32  ;;  %v1526_v32 = vld [vmem:[%s2452_s6] ss:$0 sm:$0xff] }
 0x693   :  { %v1849_v7 = vpop.eup %1848 }
 0x694   :  { %v1236_v8 = vmul.f32 %v1849_v7, %v1218_v59 }
 0x695   :  { %v1851_v9 = vpop.eup %1850  ;;  %1706 = vmatpush3.bf16.msra.mxu1 %v1823_v26 }
 0x696   :  { %1238 = vadd.xlane.f32.xlu0 %v1236_v8  ;;  %v1237_v10 = vmul.f32 %v1851_v9, %v1221_v63 }
 0x698   :  { %1240 = vadd.xlane.f32.xlu1 %v1237_v10 }
 0x723   :  { %v1239_v13 = vpop.xlane.xlu0 %1238 }
 0x724   :  { %v1242_v14 = vmul.f32 0.0078125, %v1239_v13 }
 0x725   :  { %v1241_v0 = vpop.xlane.xlu1 %1240 }
 0x726   :  { %v1244_v15 = vsub.f32 %v1236_v8, %v1242_v14  ;;  %v1243_v16 = vmul.f32 0.0078125, %v1241_v0 }
 0x728   :  { %v1245_v17 = vsub.f32 %v1237_v10, %v1243_v16  ;;  %v1246_v18 = vmul.f32 %v1244_v15, %v1244_v15 }
 0x72a   :  { %1248 = vadd.xlane.f32.xlu0 %v1246_v18  ;;  %v1247_v19 = vmul.f32 %v1245_v17, %v1245_v17 }
 0x72c   :  { %1250 = vadd.xlane.f32.xlu1 %v1247_v19 }
 0x74b   :  { %v1063_v27 = vpop.f32.mrb[8].mxu1 }
 0x74c   :  { %v1064_v28 = vadd.f32 %v1504_v25, %v1063_v27  ;;  %v1669_v29 = vpop.f32.mrb[9].mxu1 }
 0x74d   :  { %v1066_v30 = vpop.f32.mrb[10].mxu1 }
 0x74e   :  { %1393 = vst [vmem:[%s2212_s4 + $0x9] sm:$0x1] %v1064_v28  ;;  %1399 = vst [vmem:[%s2212_s4 + $0x14] sm:$0x2] %v1064_v28  ;;  %v1670_v31 = vpop.f32.mrb[11].mxu1 }
 0x7b7   :  { %v1249_v33 = vpop.xlane.xlu0 %1248 }
 0x7b8   :  { %v1252_v34 = vmul.f32 0.0078125, %v1249_v33 }
 0x7b9   :  { %v1251_v35 = vpop.xlane.xlu1 %1250 }
 0x7ba   :  { %v1254_v36 = vadd.f32 1e-05, %v1252_v34  ;;  %v1253_v37 = vmul.f32 0.0078125, %v1251_v35 }
 0x7bc   :  { %1852 = vrsqrt.f32 %v1254_v36  ;;  %v1255_v38 = vadd.f32 1e-05, %v1253_v37 }
 0x7be   :  { %1854 = vrsqrt.f32 %v1255_v38 }
 0x7c6   :  { %v1853_v39 = vpop.eup %1852 }
 0x7c7   :  { %v1258_v40 = vmul.f32 %v1853_v39, %v1244_v15 }
 0x7c8   :  { %v1855_v41 = vpop.eup %1854 }
 0x7c9   :  { %v1259_v42 = vmul.f32 %v1855_v41, %v1245_v17  ;;  %v1267_v43 = vmul.f32 %v1526_v32, %v1258_v40 }
 0x7cb   :  { %v1268_v45 = vmul.f32 %v1526_v32, %v1259_v42  ;;  %v1276_v46 = vadd.f32 %v1527_v44, %v1267_v43 }
 0x7cd   :  { %v1277_v47 = vadd.f32 %v1527_v44, %v1268_v45 }
 0x7cf   :  { %v1278_v48 = vpack.c.bf16 %v1277_v47, %v1276_v46 }
 0x7d1   :  { %1708 = vmatmul.mubr.bf16.vlgmr.msra.gmra.mrb[12].mxu1 %v1278_v48 }
 0x8a4   :  { %v1384_v50 = vpop.f32.mrb[12].mxu1 }
 0x8a5   :  { %v1385_v51 = vadd.f32 %v1528_v49, %v1384_v50  ;;  %v1709_v52 = vpop.f32.mrb[13].mxu1 }
 0x8a6   :  { %v1387_v53 = vpop.f32.mrb[14].mxu1 }
 0x8a7   :  { %1391 = vst [vmem:[%s2212_s4] sm:$0xff] %v1385_v51  ;;  %v1388_v54 = vadd.f32 %v1528_v49, %v1387_v53  ;;  %v1710_v55 = vpop.f32.mrb[15].mxu1 }
 0x8a9   :  { %1397 = vst [vmem:[%s2212_s4 + $0xc] sm:$0xff] %v1388_v54 }
 0x8aa   :  { %1407 = vsyncpa [#allocation3], 1 }
 0x8ab   :  { %1408 = vsyncpa [#allocation5], 1 }
 0x8ac   :  { %1409 = vsyncpa [#allocation8], 1 }
 0x8ad   :  { %1410 = vsyncpa [#allocation11], 1 }

// kernel: discriminator_forward.3
= control target key start
LH: loop header
LB: loop body
LE: loop exit
PB: predicated region body
PF: predicated region fallthrough
CT: control target
= control target key end

     0   :  { %s4825_s0 = inlined_call_operand.vmem [shape: f32[24,128], index: 0, kind: input, shape index: {}]   ;;  %s4826_s1 = inlined_call_operand.vmem [shape: f32[24,24], index: 1, kind: input, shape index: {}]   ;;  %s4827_s2 = inlined_call_operand.hbm [shape: bf16[2,128,384], index: 2, kind: input, shape index: {}]   ;;  %s4828_s3 = inlined_call_operand.vmem [shape: bf16[2,128,128], index: 3, kind: input, shape index: {}]   ;;  %s4829_s4 = inlined_call_operand.vmem [shape: f32[2,1,128], index: 4, kind: input, shape index: {}]   ;;  %s4830_s5 = inlined_call_operand.vmem [shape: f32[2,1,128], index: 5, kind: input, shape index: {}]   ;;  %s4831_s6 = inlined_call_operand.vmem [shape: f32[2,1,128], index: 6, kind: input, shape index: {}]   ;;  %s4832_s7 = inlined_call_operand.hbm [shape: bf16[2,128,1024], index: 7, kind: input, shape index: {}]   ;;  %s4833_s8 = inlined_call_operand.vmem [shape: f32[2,1,1024], index: 8, kind: input, shape index: {}]   ;;  %s4834_s9 = inlined_call_operand.vmem [shape: bf16[2,512,128], index: 9, kind: input, shape index: {}]   ;;  %s4835_s10 = inlined_call_operand.vmem [shape: f32[2,1,128], index: 10, kind: input, shape index: {}]   ;;  %s4836_s11 = inlined_call_operand.vmem [shape: f32[1,128], index: 11, kind: input, shape index: {}]   ;;  %s4837_s12 = inlined_call_operand.vmem [shape: f32[1,128], index: 12, kind: input, shape index: {}]   ;;  %s4838_s13 = inlined_call_operand.vmem [shape: f32[2,128], index: 13, kind: output, shape index: {}]  }
   0x1   :  { %4844 = sst [smem:[#allocation13_spill]] %s4827_s2 }
   0x2   :  { %4845 = sst [smem:[#allocation14_spill]] %s4832_s7 }
   0x3   :  { %4846 = sst [smem:[#allocation15_spill]] %s4837_s12 }
   0x4   :  { %4847 = sst [smem:[#allocation16_spill]] %s4838_s13 }
   0x5   :  { %18 = vsyncpa [#allocation4], 0 }
   0x6   :  { %20 = vsyncpa [#allocation4 + $0x1], 0 }
   0x7   :  { %21 = vsyncpa [#allocation6], 0 }
   0x8   :  { %23 = vsyncpa [#allocation6 + $0x1], 0  ;;  %s4053_s25 = smov 0   ;;  %s4055_s26 = smov 0  }
   0x9   :  { %s4057_s27 = smov 0   ;;  %s4059_s28 = smov 0  }
   0xa LB: > { %4848 = sst [smem:[#allocation9_spill]] %s3963_s26  ;;  %s4072_s29 = sadd.s32 4294967295, %s3971_s28   ;;  %s3971_s28 = sphi %s4059_s28, %s4862_s28   ;;  %s3967_s27 = sphi %s4057_s27, %s4865_s27   ;;  %s3963_s26 = sphi %s4055_s26, %s4864_s26   ;;  %s3959_s25 = sphi %s4053_s25, %s4863_s25  }
   0xb   : > { %4849 = sst [smem:[#allocation10_spill]] %s3967_s27  ;;  %s4075_s30 = sadd.s32 1, %s3971_s28  }
   0xc   : > { %4850 = sst [smem:[#allocation11_spill]] %s4075_s30  ;;  %s75_s14 = ssub.s32 %s3971_s28, %s4075_s30 }
   0xd   : > { %s78_s15 = sadd.s32 1, %s3967_s27  ;;  %p76_p0 = scmp.eq.s32.totalorder %s75_s14, 0 }
   0xe   : > { %p85_p1 = scmp.ne.s32.totalorder %s3967_s27, %s3963_s26  ;;  %p86_p2 = scmp.eq.s32.totalorder %s3971_s28, 0 }
   0xf   : > { %p91_p3 = scmp.ne.s32.totalorder %s3963_s26, %s3959_s25  ;;  %p92_p5 = scmp.eq.s32.totalorder %s4072_s29, 0 }
  0x10   : > { %s4085_s16 = scalar_select %p76_p0, %s3967_s27, %s78_s15  }
  0x11   : > { %p87_p4 = por %p86_p2, %p85_p1  ;;  %p3671_p6 = scmp.lt.s32.totalorder %s3971_s28, 2 }
  0x12   : > { %4851 = sst [smem:[#allocation12_spill]] %s4085_s16  ;;  %p4089_p7 = por %p92_p5, %p91_p3 }
  0x13   : > { %s4094_s18 = sand.u32 1, %s3967_s27   ;;  %s3658_s20 = smul.u32 3072, %s3971_s28 }
  0x14   : > { %s4852_s17 = scalar_select %p4089_p7, 1, 0 }
  0x15   : > { %s3657_s19 = smul.u32 192, %s4094_s18  ;;  %p4098_p8 = pnand %p3671_p6, %p87_p4 }
  0x16   : > { %s4854_s2 = sld [smem:[#allocation13_spill]]  ;;  %s399_s15 = scalar_lea.sflag [#allocation4], %s4094_s18 }
  0x17   : > { %s402_s25 = scalar_lea.vmem [#allocation3], %s3657_s19  ;;  %p3875_p11 = pneg %p4098_p8 }
  0x18   : > { %s409_s14 = sshll.u32 %s402_s25, 4  ;;  %s4107_s14 = int_to_ptr.vmem [resolvable:$true] %s409_s14 }
  0x1c   : > { %s4105_s24 = scalar_lea.hbm %s4854_s2, %s3658_s20  ;;  %s3878_s23 = scalar_lea.hbm %s4854_s2, 6144 }
  0x1d   : > { %s3873_s16 = scalar_lea.hbm %s4105_s24, 3072  ;;  %p3879_p0 = scmp.lt.u32.totalorder %s4105_s24, %s4854_s2 }
  0x1e   : > { %p3874_p10 = scmp.ne.s32.totalorder %s4105_s24, %s3873_s16  ;;  %p3880_p1 = scmp.lt.u32.totalorder %s3878_s23, %s3873_s16 }
  0x1f   : > { %p3882_p3 = scmp.lt.u32.totalorder %s3873_s16, %s4105_s24 }
  0x20   : > { %p3876_p12 = pnand %p3875_p11, %p3874_p10  ;;  %p3881_p2 = por %p3880_p1, %p3879_p0 }
  0x22   : > { %p3877_p13 = pneg %p3876_p12  ;;  %p3883_p4 = por %p3882_p3, %p3881_p2 }
  0x24   : > { %p3884_p5 = pnand %p3883_p4, %p3877_p13 }
  0x26   : > { %3887 = shalt.err (!%p3884_p5)
}
  0x27   : > { %s3888_s19 = scalar_lea.vmem %s4107_s14, 3072  ;;  %s3973_s25 = smov [#allocation3]  }
  0x28   : > { %p3889_p6 = scmp.ne.s32.totalorder %s4107_s14, %s3888_s19  ;;  %s3893_s20 = sshll.u32 %s3973_s25, 4  ;;  %s3894_s20 = int_to_ptr.vmem [resolvable:$false] %s3893_s20 }
  0x29   : > { %s3895_s27 = scalar_lea.vmem %s3894_s20, 6144  ;;  %p3896_p9 = scmp.lt.s32.totalorder %s4107_s14, %s3894_s20 }
  0x2a   : > { %p3891_p10 = pnand %p3889_p6, %p3875_p11  ;;  %p3897_p0 = scmp.lt.s32.totalorder %s3895_s27, %s3888_s19 }
  0x2c   : > { %p3892_p12 = pneg %p3891_p10  ;;  %p3898_p1 = por %p3897_p0, %p3896_p9 }
  0x2e   : > { %p3899_p2 = pnand %p3898_p1, %p3892_p12 }
  0x30   : > { %3902 = shalt.err (!%p3899_p2)
}
  0x31   : > { %s3974_s30 = smov 192   ;;  %s3975_s16 = smov 12  }
  0x32   : > { %3667 = dma.hbm_to_vmem [thread:$0]  (!%p4098_p8), %s4105_s24, 3072, %s4107_s14, %s399_s15, %s3974_s30, %s3974_s30, %s3975_s16  }
  0x33   : > { %p485_p13 = scmp.lt.s32.totalorder %s3971_s28, 3  ;;  %s3240_s22 = sshll.u32 %s4094_s18, 9 }
  0x34   : > { %s3412_s23 = sshll.u32 %s3971_s28, 13  ;;  %p4855_p9 = scmp.ge.s32.totalorder %s3971_s28, 1 }
  0x35   : > { %s4857_s7 = sld [smem:[#allocation14_spill]]  ;;  %s449_s2 = scalar_lea.vmem [#allocation5], %s3240_s22 }
  0x36   : > { %p4143_p3 = pnand %p4855_p9, %p485_p13  ;;  %s456_s13 = sshll.u32 %s449_s2, 4  ;;  %s4152_s13 = int_to_ptr.vmem [resolvable:$true] %s456_s13 }
  0x37   : > { %s446_s24 = scalar_lea.sflag [#allocation6], %s4094_s18 }
  0x3b   : > { %s4150_s27 = scalar_lea.hbm %s4857_s7, %s3412_s23  ;;  %s3908_s30 = scalar_lea.hbm %s4857_s7, 16384 }
  0x3c   : > { %s3903_s14 = scalar_lea.hbm %s4150_s27, 8192  ;;  %p3909_p10 = scmp.lt.u32.totalorder %s4150_s27, %s4857_s7 }
  0x3d   : > { %p3904_p4 = scmp.ne.s32.totalorder %s4150_s27, %s3903_s14  ;;  %p3910_p12 = scmp.lt.u32.totalorder %s3908_s30, %s3903_s14 }
  0x3e   : > { %p3912_p1 = scmp.lt.u32.totalorder %s3903_s14, %s4150_s27 }
  0x3f   : > { %p3906_p5 = pnand %p3904_p4, %p3875_p11  ;;  %p3911_p0 = por %p3910_p12, %p3909_p10 }
  0x41   : > { %p3907_p6 = pneg %p3906_p5  ;;  %p3913_p2 = por %p3912_p1, %p3911_p0 }
  0x43   : > { %p3914_p13 = pnand %p3913_p2, %p3907_p6 }
  0x45   : > { %3917 = shalt.err (!%p3914_p13)
}
  0x46   : > { %s3918_s2 = scalar_lea.vmem %s4152_s13, 8192  ;;  %s3976_s22 = smov [#allocation5]  }
  0x47   : > { %p3919_p9 = scmp.ne.s32.totalorder %s4152_s13, %s3918_s2  ;;  %s3923_s25 = sshll.u32 %s3976_s22, 4  ;;  %s3924_s25 = int_to_ptr.vmem [resolvable:$false] %s3923_s25 }
  0x48   : > { %s3925_s20 = scalar_lea.vmem %s3924_s25, 16384  ;;  %p3926_p7 = scmp.lt.s32.totalorder %s4152_s13, %s3924_s25 }
  0x49   : > { %p3921_p4 = pnand %p3919_p9, %p3875_p11  ;;  %p3927_p10 = scmp.lt.s32.totalorder %s3925_s20, %s3918_s2 }
  0x4b   : > { %p3922_p5 = pneg %p3921_p4  ;;  %p3928_p12 = por %p3927_p10, %p3926_p7 }
  0x4d   : > { %p3929_p0 = pnand %p3928_p12, %p3922_p5 }
  0x4f   : > { %3932 = shalt.err (!%p3929_p0)
}
  0x50   : > { %s3977_s14 = smov 512   ;;  %s3978_s28 = smov 32  }
  0x51   : > { %3670 = dma.hbm_to_vmem [thread:$0]  (!%p4098_p8), %s4150_s27, 8192, %s4152_s13, %s446_s24, %s3977_s14, %s3977_s14, %s3978_s28  }
  0x52   : > { %489 = sbr.rel (%p4143_p3) target bundleno = 4038 (0xfc6), region = 72  ;;  %s491_s15 = sand.u32 (!%p4143_p3), 1, %s3963_s26  }
  0x53   : > { %s3659_s30 = smul.u32 (!%p4143_p3), 192, %s491_s15  ;;  %s492_s16 = scalar_lea.sflag (!%p4143_p3), [#allocation4], %s491_s15 }
  0x54   : > { %p4858_p7 = scmp.ne.s32.totalorder (!%p4143_p3), %s4852_s17, 0 }
  0x55   : > { %s4183_s23 = scalar_lea.vmem (!%p4143_p3), [#allocation3], %s3659_s30 }
  0x59   : > { %3950 = dma.done.wait (%p4858_p7), %s492_s16, 3072  }
  0x5a   : > { %3952 = vsyncadd (%p4858_p7), %s492_s16, 4294964224  ;;  %s3244_s2 = sshll.u32 %s491_s15, 9  ;;  %s501_s21 = scalar_lea.sflag [#allocation6], %s491_s15 }
  0x5b   : > { %s4189_s18 = scalar_lea.vmem [#allocation5], %s3244_s2 }
  0x5c   : > { %3954 = dma.done.wait (%p4858_p7), %s501_s21, 8192  }
  0x5d   : > { %3956 = vsyncadd (%p4858_p7), %s501_s21, 4294959104  ;;  %p573_p8 = scmp.lt.s32.totalorder %s4072_s29, 1  ;;  %p3250_p11 = scmp.ne.s32.totalorder %s4072_s29, 0 }
  0x5e   : > { %v604_v0 = vld [vmem:[%s4825_s0] sm:$0xff] (!%p3250_p11)  ;;  %v605_v1 = vld [vmem:[%s4825_s0 + $0x8] sm:$0xff] (!%p3250_p11)  ;;  %v606_v2 = vld [vmem:[%s4825_s0 + $0x10] sm:$0xff] (!%p3250_p11) }
  0x5f   : > { %s4197_s13 = scalar_select %p573_p8, %s4072_s29, 1 }
  0x60   : > { %603 = sbr.rel (%p3250_p11) target bundleno = 103 (0x67), region = 84  ;;  %607 = vst [vmem:[#allocation2] sm:$0xff] (!%p3250_p11), %v604_v0  ;;  %608 = vst [vmem:[#allocation2 + $0x8] sm:$0xff] (!%p3250_p11), %v605_v1 }
  0x61   : > { %s3413_s19 = sshll.u32 %s4197_s13, 6  ;;  %s583_s15 = scalar_lea.vmem %s4830_s5, %s4197_s13  ;;  %609 = vst [vmem:[#allocation2 + $0x10] sm:$0xff] (!%p3250_p11), %v606_v2 }
  0x62   : > { %s4207_s20 = scalar_lea.vmem %s4828_s3, %s3413_s19  ;;  %s586_s2 = scalar_lea.vmem %s4831_s6, %s4197_s13 }
  0x63   : > { %s3247_s21 = sshll.u32 %s4197_s13, 3  ;;  %s3414_s27 = sshll.u32 %s4197_s13, 8 }
  0x64   : > { %s4221_s12 = scalar_lea.vmem %s4833_s8, %s3247_s21  ;;  %s4227_s19 = scalar_lea.vmem %s4834_s9, %s3414_s27 }
  0x65   : > { %s598_s14 = scalar_lea.vmem %s4835_s10, %s4197_s13 }
  0x67 PF: > { %v4243_v3 = vld [vmem:[#allocation2] sm:$0xff]  ;;  %v4245_v4 = vld [vmem:[#allocation2 + $0x8] sm:$0xff]  ;;  %v3718_v13 = vld [vmem:[%s4183_s23 + $0x18] ss:$12 sps:$4 sm:$0xff]   ;;  %v3979_v30 = vmov 0   ;;  %vm915_vm0 = vcmask 261120   ;;  %s4859_s21 = scalar_lea.vmem %s4829_s4, %s4197_s13 }
  0x68   : > { %v4247_v5 = vld [vmem:[#allocation2 + $0x10] sm:$0xff]  ;;  %v613_v6 = vmul.f32 %v4243_v3, %v4243_v3  ;;  %v3712_v8 = vld [vmem:[%s4183_s23 + $0x4] ss:$12 sps:$4 sm:$0xff]   ;;  %v3714_v9 = vld [vmem:[%s4183_s23] ss:$12 sps:$4 sm:$0xff]   ;;  %v614_v10 = vmul.f32 %v4245_v4, %v4245_v4  ;;  %839 = vmatprep.mubr.bf16.mxu0 %v3979_v30  ;;  %vm1024_vm1 = vcmask 1043456  }
  0x69   : > { %v615_v7 = vmul.f32 %v4247_v5, %v4247_v5  ;;  %v3715_v11 = vld [vmem:[%s4183_s23 + $0x8] ss:$12 sps:$4 sm:$0xff]   ;;  %807 = vmatprep.subr.bf16.mxu0 %v3712_v8  ;;  %v3719_v14 = vld [vmem:[%s4183_s23 + $0x20] ss:$12 sps:$4 sm:$0xff]   ;;  %v3722_v16 = vld [vmem:[%s4183_s23 + $0x30] ss:$12 sps:$4 sm:$0xff]  }
  0x6a   : > { %616 = vadd.xlane.f32.xlu0 %v613_v6  ;;  %v3716_v12 = vld [vmem:[%s4183_s23 + $0x1c] ss:$12 sps:$4 sm:$0xff]   ;;  %808 = vmatpush1.bf16.msra.mxu0 %v3714_v9  ;;  %v3720_v15 = vld [vmem:[%s4183_s23 + $0x34] ss:$12 sps:$4 sm:$0xff]   ;;  %v3723_v17 = vld [vmem:[%s4183_s23 + $0x38] ss:$12 sps:$4 sm:$0xff]  }
  0x6b   : > { %620 = vadd.xlane.f32.xlu1 %v615_v7  ;;  %3529 = vmatprep.subr.bf16.mxu1 %v3715_v11  ;;  %v3724_v18 = vld [vmem:[%s4183_s23 + $0x4c] ss:$12 sps:$4 sm:$0xff]   ;;  %v3726_v19 = vld [vmem:[%s4183_s23 + $0x48] ss:$12 sps:$4 sm:$0xff]   ;;  %v3727_v20 = vld [vmem:[%s4183_s23 + $0x50] ss:$12 sps:$4 sm:$0xff]  }
  0x6c   : > { %809 = vmatprep.subr.bf16.mxu0 %v3716_v12  ;;  %3530 = vmatpush3.bf16.msra.mxu1 %v3715_v11  ;;  %v3728_v21 = vld [vmem:[%s4183_s23 + $0x64] ss:$12 sps:$4 sm:$0xff]   ;;  %v3730_v22 = vld [vmem:[%s4183_s23 + $0x60] ss:$12 sps:$4 sm:$0xff]   ;;  %v3731_v23 = vld [vmem:[%s4183_s23 + $0x68] ss:$12 sps:$4 sm:$0xff]  }
  0x6d   : > { %3531 = vmatprep.subr.bf16.mxu1 %v3719_v14  ;;  %v3732_v24 = vld [vmem:[%s4183_s23 + $0x7c] ss:$12 sps:$4 sm:$0xff]   ;;  %v3734_v25 = vld [vmem:[%s4183_s23 + $0x78] ss:$12 sps:$4 sm:$0xff]   ;;  %v3735_v26 = vld [vmem:[%s4183_s23 + $0x80] ss:$12 sps:$4 sm:$0xff]  }
  0x6e   : > { %618 = vadd.xlane.f32.xlu0 %v614_v10  ;;  %810 = vmatpush1.bf16.msra.mxu0 %v3718_v13  ;;  %v3736_v27 = vld [vmem:[%s4183_s23 + $0x94] ss:$12 sps:$4 sm:$0xff]   ;;  %v3738_v28 = vld [vmem:[%s4183_s23 + $0x90] ss:$12 sps:$4 sm:$0xff]   ;;  %v3739_v29 = vld [vmem:[%s4183_s23 + $0x98] ss:$12 sps:$4 sm:$0xff]  }
  0x6f   : > { %811 = vmatprep.subr.bf16.mxu0 %v3720_v15  ;;  %v3740_v31 = vld [vmem:[%s4183_s23 + $0xac] ss:$12 sps:$4 sm:$0xff]   ;;  %v3742_v32 = vld [vmem:[%s4183_s23 + $0xa8] ss:$12 sps:$4 sm:$0xff]   ;;  %v3743_v33 = vld [vmem:[%s4183_s23 + $0xb0] ss:$12 sps:$4 sm:$0xff]  }
  0x70   : > { %3532 = vmatpush3.bf16.msra.mxu1 %v3719_v14  ;;  %v3251_v47 = vld [vmem:[%s583_s15] ss:$0 sm:$0xff]  ;;  %vm982_vm2 = vcmask 195584   ;;  %s3980_s30 = smov 96   ;;  %s3981_s7 = smov 64  }
  0x71   : > { %3533 = vmatprep.subr.bf16.mxu1 %v3723_v17  ;;  %v4322_v14 = vld [vmem:[%s4826_s1] sm:$0xff]  ;;  %s3982_s26 = smov 32   ;;  %p3407_p3 = scmp.ne.s32.totalorder %s4072_s29, 1 }
  0x72   : > { %812 = vmatpush1.bf16.msra.mxu0 %v3722_v16  ;;  %vm3071_vm3 = vcmask (!%p3407_p3), 1040384   ;;  %vm3074_vm4 = vcmask (!%p3407_p3), 1041408   ;;  %s4861_s24 = sld [smem:[#allocation16_spill]] (!%p3407_p3) }
  0x73   : > { %813 = vmatprep.subr.bf16.mxu0 %v3724_v18 }
  0x74   : > { %3534 = vmatpush3.bf16.msra.mxu1 %v3723_v17 }
  0x75   : > { %3535 = vmatprep.subr.bf16.mxu1 %v3727_v20 }
  0x76   : > { %814 = vmatpush1.bf16.msra.mxu0 %v3726_v19  ;;  %v4327_v19 = vld [vmem:[%s4826_s1 + $0x8] sm:$0xff] }
  0x77   : > { %815 = vmatprep.subr.bf16.mxu0 %v3728_v21 }
  0x78   : > { %3536 = vmatpush3.bf16.msra.mxu1 %v3727_v20  ;;  %v4332_v20 = vld [vmem:[%s4826_s1 + $0x10] sm:$0xff] }
  0x79   : > { %3537 = vmatprep.subr.bf16.mxu1 %v3731_v23 }
  0x7a   : > { %816 = vmatpush1.bf16.msra.mxu0 %v3730_v22 }
  0x7b   : > { %817 = vmatprep.subr.bf16.mxu0 %v3732_v24 }
  0x7c   : > { %3538 = vmatpush3.bf16.msra.mxu1 %v3731_v23 }
  0x7d   : > { %3539 = vmatprep.subr.bf16.mxu1 %v3735_v26 }
  0x7e   : > { %818 = vmatpush1.bf16.msra.mxu0 %v3734_v25 }
  0x7f   : > { %819 = vmatprep.subr.bf16.mxu0 %v3736_v27 }
  0x80   : > { %3540 = vmatpush3.bf16.msra.mxu1 %v3735_v26 }
  0x81   : > { %3541 = vmatprep.subr.bf16.mxu1 %v3739_v29 }
  0x82   : > { %820 = vmatpush1.bf16.msra.mxu0 %v3738_v28 }
  0x83   : > { %821 = vmatprep.subr.bf16.mxu0 %v3740_v31 }
  0x84   : > { %3542 = vmatpush3.bf16.msra.mxu1 %v3739_v29 }
  0x85   : > { %3543 = vmatprep.subr.bf16.mxu1 %v3743_v33 }
  0x86   : > { %822 = vmatpush1.bf16.msra.mxu0 %v3742_v32 }
  0x88   : > { %3544 = vmatpush3.bf16.msra.mxu1 %v3743_v33 }
  0xf7   : > { %v617_v34 = vpop.xlane.xlu0 %616 }
  0xf8   : > { %v621_v35 = vpop.xlane.xlu1 %620  ;;  %v623_v36 = vmul.f32 0.0078125, %v617_v34 }
  0xf9   : > { %v625_v37 = vmul.f32 0.0078125, %v621_v35 }
  0xfa   : > { %v626_v38 = vadd.f32 1e-08, %v623_v36 }
  0xfb   : > { %v628_v39 = vadd.f32 1e-08, %v625_v37  ;;  %v619_v40 = vpop.xlane.xlu0 %618 }
  0xfc   : > { %3784 = vrsqrt.f32 %v626_v38  ;;  %v624_v41 = vmul.f32 0.0078125, %v619_v40 }
  0xfd   : > { %3786 = vrsqrt.f32 %v628_v39 }
  0xfe   : > { %v627_v42 = vadd.f32 1e-08, %v624_v41 }
 0x100   : > { %3788 = vrsqrt.f32 %v627_v42 }
 0x106   : > { %v3785_v43 = vpop.eup %3784 }
 0x107   : > { %v3787_v44 = vpop.eup %3786  ;;  %v632_v46 = vmul.f32 %v3785_v43, %v4243_v3 }
 0x108   : > { %v634_v45 = vmul.f32 %v3787_v44, %v4247_v5 }
 0x109   : > { %v642_v51 = vmul.f32 %v3251_v47, %v632_v46 }
 0x10a   : > { %v3789_v48 = vpop.eup %3788  ;;  %v644_v49 = vmul.f32 %v3251_v47, %v634_v45 }
 0x10b   : > { %v633_v50 = vmul.f32 %v3789_v48, %v4245_v4 }
 0x10c   : > { %v678_v53 = vpack.c.bf16 %v644_v49, %v644_v49 }
 0x10d   : > { %v643_v52 = vmul.f32 %v3251_v47, %v633_v50 }
 0x10f   : > { %v677_v54 = vpack.c.bf16 %v643_v52, %v642_v51 }
 0x111   : > { %840 = vmatmul.mubr.bf16.vlgmr.msra.gmra.mrb[0].mxu0 %v677_v54  ;;  %3545 = vmatprep.mubr.bf16.mxu1 %v677_v54 }
 0x112   : > { %3546 = vmatmul.mubr.bf16.vlgmr.msra.gmra.mrb[0].mxu1 %v678_v53  ;;  %849 = vmatprep.mubr.bf16.mxu0 %v3979_v30 }
 0x119   : > { %850 = vmatmul.mubr.bf16.gmra.mrb[4].mxu0 %v678_v53 }
 0x1e4   : > { %v841_v55 = vpop.f32.mrb[0].mxu0 }
 0x1e5   : > { %v843_v56 = vpop.f32.mrb[1].mxu0  ;;  %v3547_v57 = vpop.f32.mrb[0].mxu1 }
 0x1e6   : > { %v845_v58 = vpop.f32.mrb[2].mxu0  ;;  %v892_v59 = vpop.f32.mrb[1].mxu1  ;;  %v4293_v1 = vpack.c.bf16 %v3547_v57, %v3547_v57 }
 0x1e7   : > { %v4289_v60 = vpack.c.bf16 %v845_v58, %v841_v55  ;;  %v847_v61 = vpop.f32.mrb[3].mxu0  ;;  %v3548_v62 = vpop.f32.mrb[2].mxu1 }
 0x1e8   : > { %v4291_v63 = vpack.c.bf16 %v847_v61, %v843_v56  ;;  %v895_v0 = vpop.f32.mrb[3].mxu1  ;;  %v1026_v6 = vsel %vm1024_vm1, %v4293_v1, 0 }
 0x1e9   : > { %3553 = vmatprep.mubr.msk.bf16.mxu0 %vm915_vm0, %v4289_v60  ;;  %v4297_v2 = vpack.c.bf16 %v895_v0, %v892_v59  ;;  %v3744_v59 = vld [vmem:[%s4207_s20] sm:$0xff]   ;;  %v3745_v0 = vld [vmem:[%s4207_s20 + $0x8] sm:$0xff]  }
 0x1ea   : > { %3645 = vmatprep.subr.msk.bf16.mxu0 %vm915_vm0, %v4291_v63  ;;  %v923_v3 = vsel %vm915_vm0, %v4291_v63, 0 }
 0x1eb   : > { %3550 = vmatpush3.bf16.xpose.msra.mxu0 %v923_v3  ;;  %3557 = vmatprep.subr.bf16.mxu1 %v4297_v2 }
 0x1ec   : > { %v851_v4 = vpop.f32.mrb[4].mxu0  ;;  %3558 = vmatpush3.bf16.msra.mxu1 %v4297_v2 }
 0x1ed   : > { %v853_v5 = vpop.f32.mrb[5].mxu0  ;;  %3647 = vmatprep.subr.msk.bf16.mxu1 %vm1024_vm1, %v4293_v1  ;;  %v4315_v11 = vpack.c.bf16 %v851_v4, %v851_v4 }
 0x1ee   : > { %v4309_v7 = vpack.c.bf16 %v853_v5, %v853_v5  ;;  %v855_v8 = vpop.f32.mrb[6].mxu0 }
 0x1ef   : > { %v856_v9 = vpop.f32.mrb[7].mxu0 }
 0x1f0   : > { %3646 = vmatprep.subr.msk.bf16.mxu0 %vm915_vm0, %v4309_v7  ;;  %3560 = vmatpush3.bf16.msra.mxu1 %v1026_v6  ;;  %v926_v10 = vsel %vm915_vm0, %v4309_v7, 0 }
 0x1f3   : > { %3552 = vmatpush3.bf16.xpose.msra.mxu0 %v926_v10 }
 0x1fa   : > { %3554 = vmatmul.mubr.msk.bf16.vlgmr.msra.gmra.mrb[8].mxu0 %vm915_vm0, %v4315_v11 }
 0x2cd   : > { %v3555_v12 = vpop.f32.mrb[8].mxu0 }
 0x2ce   : > { %v962_v13 = vpop.f32.mrb[9].mxu0  ;;  %v978_v15 = vmul.f32 0.17677669, %v3555_v12 }
 0x2cf   : > { %v976_v16 = vmul.f32 0.17677669, %v962_v13  ;;  %v3556_v17 = vpop.f32.mrb[10].mxu0 }
 0x2d0   : > { %v965_v18 = vpop.f32.mrb[11].mxu0  ;;  %v981_v25 = vadd.f32 %v978_v15, %v4332_v20 }
 0x2d1   : > { %v977_v21 = vmul.f32 0.17677669, %v965_v18  ;;  %v979_v22 = vadd.f32 %v976_v16, %v4322_v14 }
 0x2d2   : > { %v989_v27 = vsel %vm982_vm2, %v981_v25, -inf }
 0x2d3   : > { %v983_v23 = vsel %vm982_vm2, %v979_v22, -inf  ;;  %v980_v24 = vadd.f32 %v977_v21, %v4327_v19 }
 0x2d4   : > { %984 = vmax.xlane.f32.xlu1 %v983_v23 }
 0x2d5   : > { %v986_v26 = vsel %vm982_vm2, %v980_v24, -inf }
 0x2d6   : > { %987 = vmax.xlane.f32.xlu0 %v986_v26 }
 0x2d8   : > { %990 = vmax.xlane.f32.xlu1 %v989_v27 }
 0x361   : > { %v985_v28 = vpop.xlane.xlu1 %984 }
 0x362   : > { %v992_v29 = vsub.f32 %v979_v22, %v985_v28 }
 0x363   : > { %v988_v31 = vpop.xlane.xlu0 %987 }
 0x364   : > { %v995_v32 = vmul.f32 1.442695, %v992_v29  ;;  %v993_v33 = vsub.f32 %v980_v24, %v988_v31 }
 0x365   : > { %v991_v34 = vpop.xlane.xlu1 %990 }
 0x366   : > { %3790 = vpow2.f32 %v995_v32  ;;  %v997_v35 = vmul.f32 1.442695, %v993_v33  ;;  %v994_v36 = vsub.f32 %v981_v25, %v991_v34 }
 0x368   : > { %3792 = vpow2.f32 %v997_v35  ;;  %v999_v37 = vmul.f32 1.442695, %v994_v36 }
 0x36a   : > { %3794 = vpow2.f32 %v999_v37 }
 0x370   : > { %v3791_v38 = vpop.eup %3790 }
 0x371   : > { %v1001_v39 = vsel %vm982_vm2, %v3791_v38, 0.0 }
 0x372   : > { %v3793_v40 = vpop.eup %3792  ;;  %1002 = vadd.xlane.f32.xlu0 %v1001_v39 }
 0x373   : > { %v1004_v41 = vsel %vm982_vm2, %v3793_v40, 0.0 }
 0x374   : > { %v3795_v42 = vpop.eup %3794  ;;  %1005 = vadd.xlane.f32.xlu1 %v1004_v41 }
 0x375   : > { %v1007_v43 = vsel %vm982_vm2, %v3795_v42, 0.0 }
 0x376   : > { %1008 = vadd.xlane.f32.xlu0 %v1007_v43 }
 0x385   : > { %1090 = vrot.lane.b32.xlu1 %v4291_v63, %s3980_s30 }
 0x389   : > { %1084 = vrot.lane.b32.xlu1 %v4289_v60, %s3980_s30 }
 0x38c   : > { %1092 = vrot.lane.b32.xlu0 %v4309_v7, %s3980_s30 }
 0x38d   : > { %1086 = vrot.lane.b32.xlu1 %v4315_v11, %s3980_s30 }
 0x3ff   : > { %v1003_v44 = vpop.xlane.xlu0 %1002 }
 0x400   : > { %3796 = vrcp.f32 %v1003_v44 }
 0x401   : > { %v1006_v45 = vpop.xlane.xlu1 %1005 }
 0x402   : > { %3798 = vrcp.f32 %v1006_v45 }
 0x403   : > { %v1009_v46 = vpop.xlane.xlu0 %1008 }
 0x404   : > { %3800 = vrcp.f32 %v1009_v46 }
 0x405   : > { %v1091_v47 = vpop.permute.xlu1 %1090 }
 0x406   : > { %3648 = vmatprep.subr.msk.bf16.mxu1 %vm915_vm0, %v1091_v47  ;;  %v1101_v56 = vsel %vm915_vm0, %v1091_v47, 0 }
 0x407   : > { %v1093_v58 = vpop.permute.xlu0 %1092 }
 0x408   : > { %v1104_v61 = vsel %vm915_vm0, %v1093_v58, 0 }
 0x409   : > { %v1085_v57 = vpop.permute.xlu1 %1084 }
 0x40a   : > { %v3797_v48 = vpop.eup %3796 }
 0x40b   : > { %v1013_v50 = vmul.f32 %v3797_v48, %v3791_v38 }
 0x40c   : > { %v3799_v49 = vpop.eup %3798 }
 0x40d   : > { %v1014_v51 = vmul.f32 %v3799_v49, %v3793_v40  ;;  %v1087_v62 = vpop.permute.xlu1 %1086 }
 0x40e   : > { %v3801_v52 = vpop.eup %3800 }
 0x40f   : > { %v1015_v53 = vmul.f32 %v3801_v52, %v3795_v42  ;;  %v1016_v54 = vpack.c.bf16 %v1014_v51, %v1013_v50 }
 0x411   : > { %3561 = vmatprep.mubr.msk.bf16.mxu1 %vm982_vm2, %v1016_v54  ;;  %v1017_v55 = vpack.c.bf16 %v1015_v53, %v1015_v53 }
 0x413   : > { %3562 = vmatmul.mubr.msk.bf16.vlgmr.msra.gmra.mrb[4].mxu1 %vm982_vm2, %v1017_v55 }
 0x414   : > { %3566 = vmatpush3.bf16.xpose.msra.mxu1 %v1101_v56  ;;  %3569 = vmatprep.mubr.msk.bf16.mxu1 %vm915_vm0, %v1085_v57 }
 0x415   : > { %3649 = vmatprep.subr.msk.bf16.mxu1 %vm915_vm0, %v1093_v58  ;;  %v3747_v58 = vld [vmem:[%s4207_s20 + $0x18] sm:$0xff]  }
 0x41c   : > { %3568 = vmatpush3.bf16.xpose.msra.mxu1 %v1104_v61 }
 0x41d   : > { %3589 = vmatprep.subr.bf16.mxu1 %v3744_v59 }
 0x423   : > { %3570 = vmatmul.mubr.msk.bf16.vlgmr.msra.gmra.mrb[8].mxu1 %vm915_vm0, %v1087_v62 }
 0x424   : > { %3590 = vmatpush3.bf16.msra.mxu1 %v3744_v59 }
 0x425   : > { %3591 = vmatprep.subr.bf16.mxu1 %v3745_v0 }
 0x428   : > { %3592 = vmatpush3.bf16.msra.mxu1 %v3745_v0 }
 0x4e6   : > { %v3563_v3 = vpop.f32.mrb[4].mxu1 }
 0x4e7   : > { %v1062_v4 = vpop.f32.mrb[5].mxu1  ;;  %v1081_v9 = vpack.c.bf16 %v3563_v3, %v3563_v3 }
 0x4e8   : > { %v3564_v5 = vpop.f32.mrb[6].mxu1 }
 0x4e9   : > { %v1065_v6 = vpop.f32.mrb[7].mxu1 }
 0x4ea   : > { %v1080_v8 = vpack.c.bf16 %v1065_v6, %v1062_v4 }
 0x4ec   : > { %3593 = vmatprep.mubr.msk.bf16.mxu1 %vm915_vm0, %v1080_v8 }
 0x4ed   : > { %3594 = vmatmul.mubr.msk.bf16.vlgmr.msra.gmra.mrb[12].mxu1 %vm915_vm0, %v1081_v9 }
 0x4f6   : > { %v3571_v10 = vpop.f32.mrb[8].mxu1 }
 0x4f7   : > { %v1140_v12 = vpop.f32.mrb[9].mxu1  ;;  %v1156_v17 = vmul.f32 0.17677669, %v3571_v10 }
 0x4f8   : > { %v1154_v13 = vmul.f32 0.17677669, %v1140_v12  ;;  %v3572_v15 = vpop.f32.mrb[10].mxu1 }
 0x4f9   : > { %v1143_v16 = vpop.f32.mrb[11].mxu1  ;;  %v1159_v25 = vadd.f32 %v1156_v17, %v4332_v20 }
 0x4fa   : > { %v1155_v18 = vmul.f32 0.17677669, %v1143_v16  ;;  %v1157_v21 = vadd.f32 %v1154_v13, %v4322_v14 }
 0x4fb   : > { %v1166_v26 = vsel %vm982_vm2, %v1159_v25, -inf }
 0x4fc   : > { %v1160_v22 = vsel %vm982_vm2, %v1157_v21, -inf  ;;  %v1158_v23 = vadd.f32 %v1155_v18, %v4327_v19 }
 0x4fd   : > { %1161 = vmax.xlane.f32.xlu1 %v1160_v22 }
 0x4fe   : > { %v1163_v24 = vsel %vm982_vm2, %v1158_v23, -inf }
 0x4ff   : > { %1164 = vmax.xlane.f32.xlu0 %v1163_v24 }
 0x503   : > { %1167 = vmax.xlane.f32.xlu0 %v1166_v26 }
 0x58a   : > { %v1162_v27 = vpop.xlane.xlu1 %1161 }
 0x58b   : > { %v1169_v31 = vsub.f32 %v1157_v21, %v1162_v27 }
 0x58c   : > { %v1165_v28 = vpop.xlane.xlu0 %1164 }
 0x58d   : > { %v1170_v29 = vsub.f32 %v1158_v23, %v1165_v28  ;;  %v1172_v35 = vmul.f32 1.442695, %v1169_v31 }
 0x58f   : > { %v1174_v32 = vmul.f32 1.442695, %v1170_v29 }
 0x590   : > { %v1168_v33 = vpop.xlane.xlu0 %1167 }
 0x591   : > { %3802 = vpow2.f32 %v1174_v32  ;;  %v1171_v34 = vsub.f32 %v1159_v25, %v1168_v33 }
 0x593   : > { %v1176_v36 = vmul.f32 1.442695, %v1171_v34 }
 0x595   : > { %3804 = vpow2.f32 %v1176_v36 }
 0x596   : > { %3806 = vpow2.f32 %v1172_v35 }
 0x59b   : > { %v3803_v37 = vpop.eup %3802 }
 0x59c   : > { %v1181_v38 = vsel %vm982_vm2, %v3803_v37, 0.0 }
 0x59d   : > { %1182 = vadd.xlane.f32.xlu1 %v1181_v38 }
 0x59f   : > { %v3805_v39 = vpop.eup %3804 }
 0x5a0   : > { %v1184_v40 = vsel %vm982_vm2, %v3805_v39, 0.0  ;;  %v3807_v41 = vpop.eup %3806 }
 0x5a1   : > { %1185 = vadd.xlane.f32.xlu0 %v1184_v40  ;;  %v1178_v42 = vsel %vm982_vm2, %v3807_v41, 0.0 }
 0x5a5   : > { %1179 = vadd.xlane.f32.xlu0 %v1178_v42 }
 0x5ae   : > { %1197 = vrot.lane.b32.xlu1 %v4297_v2, %s3980_s30 }
 0x5b2   : > { %1401 = vrot.lane.b32.xlu1 %v4291_v63, %s3981_s7 }
 0x5b6   : > { %1403 = vrot.lane.b32.xlu1 %v4309_v7, %s3981_s7 }
 0x5ba   : > { %1397 = vrot.lane.b32.xlu1 %v4289_v60, %s3981_s7 }
 0x5bb   : > { %1199 = vrot.lane.b32.xlu0 %v4293_v1, %s3980_s30 }
 0x5be   : > { %1647 = vrot.lane.b32.xlu1 %v4291_v63, %s3982_s26 }
 0x5bf   : > { %1399 = vrot.lane.b32.xlu0 %v4315_v11, %s3981_s7 }
 0x5c0   : > { %v4386_v43 = vpop.f32.mrb[12].mxu1 }
 0x5c1   : > { %v4388_v44 = vpop.f32.mrb[13].mxu1 }
 0x5c2   : > { %1643 = vrot.lane.b32.xlu1 %v4289_v60, %s3982_s26  ;;  %v3596_v45 = vpop.f32.mrb[14].mxu1  ;;  %v3746_v60 = vld [vmem:[%s4207_s20 + $0x10] sm:$0xff]  }
 0x5c3   : > { %1649 = vrot.lane.b32.xlu0 %v4309_v7, %s3982_s26  ;;  %v4394_v46 = vpop.f32.mrb[15].mxu1 }
 0x5c7   : > { %1645 = vrot.lane.b32.xlu0 %v4315_v11, %s3982_s26 }
 0x62a   : > { %v1183_v63 = vpop.xlane.xlu1 %1182 }
 0x62e   : > { %v1198_v47 = vpop.permute.xlu1 %1197  ;;  %v1186_v48 = vpop.xlane.xlu0 %1185 }
 0x62f   : > { %3573 = vmatprep.subr.bf16.mxu0 %v1198_v47  ;;  %3808 = vrcp.f32 %v1186_v48 }
 0x630   : > { %3574 = vmatpush3.bf16.msra.mxu0 %v1198_v47  ;;  %3810 = vrcp.f32 %v1183_v63 }
 0x632   : > { %v1180_v49 = vpop.xlane.xlu0 %1179  ;;  %v1402_v59 = vpop.permute.xlu1 %1401 }
 0x633   : > { %3812 = vrcp.f32 %v1180_v49  ;;  %v1412_v8 = vsel %vm915_vm0, %v1402_v59, 0 }
 0x636   : > { %v1200_v50 = vpop.permute.xlu0 %1199  ;;  %v1404_v62 = vpop.permute.xlu1 %1403 }
 0x637   : > { %v1209_v51 = vsel %vm1024_vm1, %v1200_v50, 0  ;;  %3650 = vmatprep.subr.msk.bf16.mxu0 %vm1024_vm1, %v1200_v50  ;;  %v1415_v10 = vsel %vm915_vm0, %v1404_v62, 0 }
 0x638   : > { %3576 = vmatpush3.bf16.msra.mxu0 %v1209_v51 }
 0x639   : > { %3581 = vmatprep.subr.bf16.mxu0 %v3746_v60  ;;  %v3809_v7 = vpop.eup %3808 }
 0x63a   : > { %v3811_v11 = vpop.eup %3810  ;;  %v1192_v53 = vmul.f32 %v3809_v7, %v3805_v39  ;;  %v1398_v9 = vpop.permute.xlu1 %1397 }
 0x63b   : > { %v1191_v55 = vmul.f32 %v3811_v11, %v3803_v37  ;;  %v1400_v13 = vpop.permute.xlu0 %1399 }
 0x63c   : > { %v1194_v57 = vpack.c.bf16 %v1192_v53, %v1192_v53 }
 0x63d   : > { %v3813_v52 = vpop.eup %3812 }
 0x63e   : > { %v1190_v54 = vmul.f32 %v3813_v52, %v3807_v41  ;;  %v1648_v12 = vpop.permute.xlu1 %1647 }
 0x63f   : > { %v1658_v15 = vsel %vm915_vm0, %v1648_v12, 0  ;;  %v1650_v17 = vpop.permute.xlu0 %1649 }
 0x640   : > { %v1193_v56 = vpack.c.bf16 %v1191_v55, %v1190_v54  ;;  %v1661_v18 = vsel %vm915_vm0, %v1650_v17, 0 }
 0x642   : > { %3577 = vmatprep.mubr.msk.bf16.mxu0 %vm982_vm2, %v1193_v56  ;;  %v1644_v16 = vpop.permute.xlu1 %1643 }
 0x643   : > { %3578 = vmatmul.mubr.msk.bf16.vlgmr.msra.gmra.mrb[12].mxu0 %vm982_vm2, %v1194_v57  ;;  %v1646_v21 = vpop.permute.xlu0 %1645 }
 0x644   : > { %3582 = vmatpush3.bf16.msra.mxu0 %v3746_v60 }
 0x645   : > { %3583 = vmatprep.subr.bf16.mxu0 %v3747_v58 }
 0x648   : > { %3584 = vmatpush3.bf16.msra.mxu0 %v3747_v58 }
 0x649   : > { %3651 = vmatprep.subr.msk.bf16.mxu0 %vm915_vm0, %v1402_v59 }
 0x716   : > { %v3579_v61 = vpop.f32.mrb[12].mxu0 }
 0x717   : > { %v1245_v0 = vpop.f32.mrb[13].mxu0  ;;  %v1264_v6 = vpack.c.bf16 %v3579_v61, %v3579_v61 }
 0x718   : > { %v3580_v3 = vpop.f32.mrb[14].mxu0 }
 0x719   : > { %v1248_v4 = vpop.f32.mrb[15].mxu0 }
 0x71a   : > { %v1263_v5 = vpack.c.bf16 %v1248_v4, %v1245_v0 }
 0x71c   : > { %3585 = vmatprep.mubr.msk.bf16.mxu0 %vm915_vm0, %v1263_v5 }
 0x71d   : > { %3586 = vmatmul.mubr.msk.bf16.vlgmr.msra.gmra.mrb[16].mxu0 %vm915_vm0, %v1264_v6 }
 0x71e   : > { %3598 = vmatpush3.bf16.xpose.msra.mxu0 %v1412_v8  ;;  %3601 = vmatprep.mubr.msk.bf16.mxu0 %vm915_vm0, %v1398_v9 }
 0x71f   : > { %3652 = vmatprep.subr.msk.bf16.mxu0 %vm915_vm0, %v1404_v62 }
 0x726   : > { %3600 = vmatpush3.bf16.xpose.msra.mxu0 %v1415_v10 }
 0x727   : > { %3654 = vmatprep.subr.msk.bf16.mxu0 %vm915_vm0, %v1648_v12 }
 0x72d   : > { %3602 = vmatmul.mubr.msk.bf16.vlgmr.msra.gmra.mrb[20].mxu0 %vm915_vm0, %v1400_v13 }
 0x72e   : > { %3622 = vmatpush3.bf16.xpose.msra.mxu0 %v1658_v15  ;;  %3625 = vmatprep.mubr.msk.bf16.mxu0 %vm915_vm0, %v1644_v16 }
 0x72f   : > { %3655 = vmatprep.subr.msk.bf16.mxu0 %vm915_vm0, %v1650_v17 }
 0x736   : > { %3624 = vmatpush3.bf16.xpose.msra.mxu0 %v1661_v18 }
 0x73d   : > { %3626 = vmatmul.mubr.msk.bf16.vlgmr.msra.gmra.mrb[24].mxu0 %vm915_vm0, %v1646_v21 }
 0x73e   : > { %2393 = vmatprep.mubr.bf16.mxu0 %v3979_v30 }
 0x7f0   : > { %v3587_v22 = vpop.f32.mrb[16].mxu0 }
 0x7f1   : > { %v4420_v23 = vadd.f32 %v4386_v43, %v3587_v22  ;;  %v1317_v24 = vpop.f32.mrb[17].mxu0 }
 0x7f2   : > { %v4423_v25 = vadd.f32 %v4388_v44, %v1317_v24  ;;  %v3588_v26 = vpop.f32.mrb[18].mxu0 }
 0x7f3   : > { %v1320_v27 = vpop.f32.mrb[19].mxu0 }
 0x7f4   : > { %v4426_v28 = vadd.f32 %v4394_v46, %v1320_v27 }
 0x800   : > { %v3603_v29 = vpop.f32.mrb[20].mxu0 }
 0x801   : > { %v1451_v31 = vpop.f32.mrb[21].mxu0  ;;  %v1467_v35 = vmul.f32 0.17677669, %v3603_v29 }
 0x802   : > { %v1465_v32 = vmul.f32 0.17677669, %v1451_v31  ;;  %v3604_v33 = vpop.f32.mrb[22].mxu0 }
 0x803   : > { %v1454_v34 = vpop.f32.mrb[23].mxu0  ;;  %v1470_v41 = vadd.f32 %v1467_v35, %v4332_v20 }
 0x804   : > { %v1466_v36 = vmul.f32 0.17677669, %v1454_v34  ;;  %v1468_v37 = vadd.f32 %v1465_v32, %v4322_v14 }
 0x805   : > { %v1477_v42 = vsel %vm982_vm2, %v1470_v41, -inf }
 0x806   : > { %v1471_v38 = vsel %vm982_vm2, %v1468_v37, -inf  ;;  %v1469_v39 = vadd.f32 %v1466_v36, %v4327_v19 }
 0x807   : > { %1472 = vmax.xlane.f32.xlu1 %v1471_v38 }
 0x808   : > { %v1474_v40 = vsel %vm982_vm2, %v1469_v39, -inf }
 0x809   : > { %1475 = vmax.xlane.f32.xlu0 %v1474_v40 }
 0x80d   : > { %1478 = vmax.xlane.f32.xlu0 %v1477_v42  ;;  %v3748_v42 = vld [vmem:[%s4207_s20 + $0x20] sm:$0xff]  }
 0x810   : > { %v3627_v43 = vpop.f32.mrb[24].mxu0 }
 0x811   : > { %v1697_v44 = vpop.f32.mrb[25].mxu0  ;;  %v1713_v59 = vmul.f32 0.17677669, %v3627_v43  ;;  %v3749_v43 = vld [vmem:[%s4207_s20 + $0x28] sm:$0xff]  }
 0x812   : > { %v3628_v45 = vpop.f32.mrb[26].mxu0  ;;  %v1711_v58 = vmul.f32 0.17677669, %v1697_v44 }
 0x813   : > { %v1700_v46 = vpop.f32.mrb[27].mxu0  ;;  %v1716_v3 = vadd.f32 %v1713_v59, %v4332_v20  ;;  %v3751_v59 = vld [vmem:[%s4207_s20 + $0x38] sm:$0xff]  }
 0x814   : > { %v1714_v61 = vadd.f32 %v1711_v58, %v4322_v14  ;;  %v1712_v62 = vmul.f32 0.17677669, %v1700_v46  ;;  %v3750_v58 = vld [vmem:[%s4207_s20 + $0x30] sm:$0xff]  }
 0x815   : > { %v1723_v4 = vsel %vm982_vm2, %v1716_v3, -inf }
 0x816   : > { %v1717_v0 = vsel %vm982_vm2, %v1714_v61, -inf  ;;  %v1715_v5 = vadd.f32 %v1712_v62, %v4327_v19 }
 0x818   : > { %v1720_v6 = vsel %vm982_vm2, %v1715_v5, -inf }
 0x894   : > { %v1473_v63 = vpop.xlane.xlu1 %1472 }
 0x895   : > { %v1480_v49 = vsub.f32 %v1468_v37, %v1473_v63 }
 0x896   : > { %v1476_v47 = vpop.xlane.xlu0 %1475 }
 0x897   : > { %v1481_v48 = vsub.f32 %v1469_v39, %v1476_v47  ;;  %v1483_v7 = vmul.f32 1.442695, %v1480_v49 }
 0x899   : > { %v1485_v60 = vmul.f32 1.442695, %v1481_v48 }
 0x89a   : > { %v1479_v50 = vpop.xlane.xlu0 %1478 }
 0x89b   : > { %3814 = vpow2.f32 %v1485_v60  ;;  %v1482_v51 = vsub.f32 %v1470_v41, %v1479_v50 }
 0x89d   : > { %v1487_v11 = vmul.f32 1.442695, %v1482_v51 }
 0x89f   : > { %3816 = vpow2.f32 %v1487_v11 }
 0x8a0   : > { %3818 = vpow2.f32 %v1483_v7 }
 0x8a5   : > { %v3815_v52 = vpop.eup %3814 }
 0x8a6   : > { %v1492_v53 = vsel %vm982_vm2, %v3815_v52, 0.0 }
 0x8a7   : > { %1493 = vadd.xlane.f32.xlu1 %v1492_v53 }
 0x8a9   : > { %v3817_v54 = vpop.eup %3816 }
 0x8aa   : > { %v1495_v55 = vsel %vm982_vm2, %v3817_v54, 0.0  ;;  %v3819_v56 = vpop.eup %3818 }
 0x8ab   : > { %1496 = vadd.xlane.f32.xlu0 %v1495_v55  ;;  %v1489_v57 = vsel %vm982_vm2, %v3819_v56, 0.0 }
 0x8af   : > { %1490 = vadd.xlane.f32.xlu0 %v1489_v57 }
 0x8b8   : > { %1506 = vrot.lane.b32.xlu1 %v4297_v2, %s3981_s7 }
 0x8c5   : > { %1508 = vrot.lane.b32.xlu0 %v4293_v1, %s3981_s7 }
 0x8dc   : > { %1718 = vmax.xlane.f32.xlu1 %v1717_v0 }
 0x8e0   : > { %1724 = vmax.xlane.f32.xlu1 %v1723_v4 }
 0x8e4   : > { %1721 = vmax.xlane.f32.xlu0 %v1720_v6 }
 0x934   : > { %v1494_v8 = vpop.xlane.xlu1 %1493 }
 0x938   : > { %v1507_v9 = vpop.permute.xlu1 %1506  ;;  %v1497_v10 = vpop.xlane.xlu0 %1496 }
 0x939   : > { %3605 = vmatprep.subr.bf16.mxu1 %v1507_v9  ;;  %3820 = vrcp.f32 %v1497_v10 }
 0x93a   : > { %3606 = vmatpush3.bf16.msra.mxu1 %v1507_v9  ;;  %3822 = vrcp.f32 %v1494_v8 }
 0x93c   : > { %v1491_v14 = vpop.xlane.xlu0 %1490 }
 0x93d   : > { %3824 = vrcp.f32 %v1491_v14 }
 0x940   : > { %v1509_v12 = vpop.permute.xlu0 %1508 }
 0x941   : > { %v1518_v20 = vsel %vm1024_vm1, %v1509_v12, 0  ;;  %3653 = vmatprep.subr.msk.bf16.mxu1 %vm1024_vm1, %v1509_v12 }
 0x942   : > { %3608 = vmatpush3.bf16.msra.mxu1 %v1518_v20 }
 0x943   : > { %v3821_v19 = vpop.eup %3820  ;;  %3613 = vmatprep.subr.bf16.mxu1 %v3748_v42 }
 0x944   : > { %v3823_v13 = vpop.eup %3822  ;;  %v1503_v16 = vmul.f32 %v3821_v19, %v3817_v54 }
 0x945   : > { %v1502_v18 = vmul.f32 %v3823_v13, %v3815_v52 }
 0x946   : > { %v1505_v22 = vpack.c.bf16 %v1503_v16, %v1503_v16  ;;  %v1941_v16 = vld [vmem:[%s4189_s18 + $0x40] sm:$0xff] }
 0x947   : > { %v3825_v15 = vpop.eup %3824 }
 0x948   : > { %v1501_v17 = vmul.f32 %v3825_v15, %v3819_v56  ;;  %v1938_v15 = vld [vmem:[%s4189_s18 + $0x28] sm:$0xff] }
 0x94a   : > { %v1504_v21 = vpack.c.bf16 %v1502_v18, %v1501_v17  ;;  %v1945_v17 = vld [vmem:[%s4189_s18 + $0x60] sm:$0xff] }
 0x94c   : > { %3609 = vmatprep.mubr.msk.bf16.mxu1 %vm982_vm2, %v1504_v21 }
 0x94d   : > { %3610 = vmatmul.mubr.msk.bf16.vlgmr.msra.gmra.mrb[16].mxu1 %vm982_vm2, %v1505_v22  ;;  %v3319_v22 = vcombine.high %v1941_v16, %v1945_v17 }
 0x94e   : > { %3614 = vmatpush3.bf16.msra.mxu1 %v3748_v42 }
 0x94f   : > { %3615 = vmatprep.subr.bf16.mxu1 %v3749_v43 }
 0x952   : > { %3616 = vmatpush3.bf16.msra.mxu1 %v3749_v43 }
 0x969   : > { %v1719_v24 = vpop.xlane.xlu1 %1718 }
 0x96a   : > { %v1726_v26 = vsub.f32 %v1714_v61, %v1719_v24  ;;  %v1942_v24 = vld [vmem:[%s4189_s18 + $0x48] sm:$0xff] }
 0x96c   : > { %v1729_v31 = vmul.f32 1.442695, %v1726_v26  ;;  %v1946_v26 = vld [vmem:[%s4189_s18 + $0x68] sm:$0xff] }
 0x96d   : > { %v1725_v27 = vpop.xlane.xlu1 %1724 }
 0x96e   : > { %v1728_v29 = vsub.f32 %v1716_v3, %v1725_v27  ;;  %v1949_v27 = vld [vmem:[%s4189_s18 + $0x80] sm:$0xff] }
 0x970   : > { %v1733_v32 = vmul.f32 1.442695, %v1728_v29  ;;  %v3321_v29 = vcombine.high %v1942_v24, %v1946_v26 }
 0x971   : > { %v1722_v33 = vpop.xlane.xlu0 %1721 }
 0x972   : > { %3826 = vpow2.f32 %v1733_v32  ;;  %v1727_v34 = vsub.f32 %v1715_v5, %v1722_v33  ;;  %v1950_v32 = vld [vmem:[%s4189_s18 + $0x88] sm:$0xff] }
 0x973   : > { %3828 = vpow2.f32 %v1729_v31  ;;  %v1953_v31 = vld [vmem:[%s4189_s18 + $0xa0] sm:$0xff]  ;;  %v1954_v33 = vld [vmem:[%s4189_s18 + $0xa8] sm:$0xff] }
 0x974   : > { %v1731_v35 = vmul.f32 1.442695, %v1727_v34  ;;  %v3318_v34 = vcombine.low %v1941_v16, %v1945_v17 }
 0x976   : > { %3830 = vpow2.f32 %v1731_v35  ;;  %v3320_v35 = vcombine.low %v1942_v24, %v1946_v26  ;;  %v1993_v26 = vld [vmem:[%s4189_s18 + $0x1e0] sm:$0xff] }
 0x97c   : > { %v3827_v36 = vpop.eup %3826 }
 0x97d   : > { %v1741_v37 = vsel %vm982_vm2, %v3827_v36, 0.0  ;;  %v3829_v38 = vpop.eup %3828 }
 0x97e   : > { %1742 = vadd.xlane.f32.xlu0 %v1741_v37  ;;  %v1735_v40 = vsel %vm982_vm2, %v3829_v38, 0.0  ;;  %v3329_v37 = vcombine.high %v1950_v32, %v1954_v33 }
 0x980   : > { %v3831_v39 = vpop.eup %3830 }
 0x981   : > { %v1738_v41 = vsel %vm982_vm2, %v3831_v39, 0.0 }
 0x982   : > { %1736 = vadd.xlane.f32.xlu0 %v1735_v40  ;;  %1739 = vadd.xlane.f32.xlu1 %v1738_v41 }
 0x993   : > { %1752 = vrot.lane.b32.xlu1 %v4297_v2, %s3982_s26 }
 0x998   : > { %1754 = vrot.lane.b32.xlu0 %v4293_v1, %s3982_s26 }
 0xa0b   : > { %v1743_v44 = vpop.xlane.xlu0 %1742 }
 0xa0f   : > { %v1740_v45 = vpop.xlane.xlu1 %1739  ;;  %v1737_v46 = vpop.xlane.xlu0 %1736 }
 0xa10   : > { %3832 = vrcp.f32 %v1740_v45  ;;  %v3308_v45 = vld [vmem:[%s4859_s21] ss:$0 sm:$0xff] }
 0xa11   : > { %3834 = vrcp.f32 %v1737_v46 }
 0xa12   : > { %3836 = vrcp.f32 %v1743_v44 }
 0xa13   : > { %v1753_v63 = vpop.permute.xlu1 %1752  ;;  %v1755_v54 = vpop.permute.xlu0 %1754 }
 0xa14   : > { %3629 = vmatprep.subr.bf16.mxu1 %v1753_v63  ;;  %v1764_v56 = vsel %vm1024_vm1, %v1755_v54, 0 }
 0xa1a   : > { %v3833_v47 = vpop.eup %3832 }
 0xa1b   : > { %v3835_v48 = vpop.eup %3834  ;;  %v1748_v2 = vmul.f32 %v3833_v47, %v3831_v39  ;;  %v3328_v39 = vcombine.low %v1950_v32, %v1954_v33  ;;  %v1935_v32 = vld [vmem:[%s4189_s18 + $0x10] sm:$0xff] }
 0xa1c   : > { %v1747_v51 = vmul.f32 %v3835_v48, %v3829_v38  ;;  %v3837_v1 = vpop.eup %3836  ;;  %v3326_v38 = vcombine.low %v1949_v27, %v1953_v31  ;;  %v3869_v48 = vld [vmem:[#allocation2] sm:$0xff]  ;;  %v1939_v33 = vld [vmem:[%s4189_s18 + $0x30] sm:$0xff] }
 0xa1d   : > { %v1749_v55 = vmul.f32 %v3837_v1, %v3827_v36  ;;  %v3327_v36 = vcombine.high %v1949_v27, %v1953_v31  ;;  %v1990_v27 = vld [vmem:[%s4189_s18 + $0x1c8] sm:$0xff] }
 0xa1e   : > { %v1750_v53 = vpack.c.bf16 %v1748_v2, %v1747_v51  ;;  %v3870_v51 = vld [vmem:[#allocation2 + $0x8] sm:$0xff] }
 0xa1f   : > { %v1751_v57 = vpack.c.bf16 %v1749_v55, %v1749_v55  ;;  %v1961_v55 = vld [vmem:[%s4189_s18 + $0xe0] sm:$0xff] }
 0xa20   : > { %v3611_v49 = vpop.f32.mrb[16].mxu1 }
 0xa21   : > { %v1554_v60 = vpop.f32.mrb[17].mxu1  ;;  %v1573_v52 = vpack.c.bf16 %v3611_v49, %v3611_v49 }
 0xa22   : > { %v3612_v50 = vpop.f32.mrb[18].mxu1 }
 0xa23   : > { %v1557_v7 = vpop.f32.mrb[19].mxu1 }
 0xa24   : > { %v1572_v11 = vpack.c.bf16 %v1557_v7, %v1554_v60 }
 0xa26   : > { %3617 = vmatprep.mubr.msk.bf16.mxu1 %vm915_vm0, %v1572_v11 }
 0xa27   : > { %3618 = vmatmul.mubr.msk.bf16.vlgmr.msra.gmra.mrb[20].mxu1 %vm915_vm0, %v1573_v52 }
 0xa28   : > { %3630 = vmatpush3.bf16.msra.mxu1 %v1753_v63  ;;  %3633 = vmatprep.mubr.msk.bf16.mxu1 %vm982_vm2, %v1750_v53  ;;  %v3868_v63 = vld [vmem:[#allocation2 + $0x10] sm:$0xff] }
 0xa29   : > { %3656 = vmatprep.subr.msk.bf16.mxu1 %vm1024_vm1, %v1755_v54  ;;  %v1957_v54 = vld [vmem:[%s4189_s18 + $0xc0] sm:$0xff] }
 0xa2c   : > { %3632 = vmatpush3.bf16.msra.mxu1 %v1764_v56  ;;  %v1958_v56 = vld [vmem:[%s4189_s18 + $0xc8] sm:$0xff] }
 0xa2d   : > { %3637 = vmatprep.subr.bf16.mxu1 %v3750_v58 }
 0xa2f   : > { %3634 = vmatmul.mubr.msk.bf16.vlgmr.msra.gmra.mrb[24].mxu1 %vm982_vm2, %v1751_v57  ;;  %v3335_v57 = vcombine.high %v1957_v54, %v1961_v55 }
 0xa30   : > { %3638 = vmatpush3.bf16.msra.mxu1 %v3750_v58  ;;  %v1962_v58 = vld [vmem:[%s4189_s18 + $0xe8] sm:$0xff] }
 0xa31   : > { %3639 = vmatprep.subr.bf16.mxu1 %v3751_v59 }
 0xa34   : > { %3640 = vmatpush3.bf16.msra.mxu1 %v3751_v59  ;;  %v3334_v59 = vcombine.low %v1957_v54, %v1961_v55  ;;  %v3309_v54 = vld [vmem:[%s586_s2] ss:$0 sm:$0xff] }
 0xafa   : > { %v3619_v61 = vpop.f32.mrb[20].mxu1 }
 0xafb   : > { %v1642_v62 = vadd.f32 %v3619_v61, %v4420_v23  ;;  %v1626_v0 = vpop.f32.mrb[21].mxu1  ;;  %v1933_v23 = vld [vmem:[%s4189_s18] sm:$0xff]  ;;  %v3336_v61 = vcombine.low %v1958_v56, %v1962_v58 }
 0xafc   : > { %v1640_v3 = vadd.f32 %v1626_v0, %v4423_v25  ;;  %v3620_v4 = vpop.f32.mrb[22].mxu1  ;;  %v1937_v25 = vld [vmem:[%s4189_s18 + $0x20] sm:$0xff] }
 0xafd   : > { %v1629_v5 = vpop.f32.mrb[23].mxu1  ;;  %v3310_v19 = vcombine.low %v1933_v23, %v1937_v25  ;;  %v3311_v13 = vcombine.high %v1933_v23, %v1937_v25  ;;  %v1965_v0 = vld [vmem:[%s4189_s18 + $0x100] sm:$0xff]  ;;  %v1966_v4 = vld [vmem:[%s4189_s18 + $0x108] sm:$0xff] }
 0xafe   : > { %v1641_v6 = vadd.f32 %v1629_v5, %v4426_v28  ;;  %v1934_v28 = vld [vmem:[%s4189_s18 + $0x8] sm:$0xff] }
 0xaff   : > { %v3312_v18 = vcombine.low %v1934_v28, %v1938_v15  ;;  %v3313_v21 = vcombine.high %v1934_v28, %v1938_v15  ;;  %2361 = vmatprep.subr.bf16.mxu0 %v3311_v13  ;;  %v1978_v28 = vld [vmem:[%s4189_s18 + $0x168] sm:$0xff]  ;;  %v1985_v13 = vld [vmem:[%s4189_s18 + $0x1a0] sm:$0xff] }
 0xb00   : > { %2362 = vmatpush1.bf16.msra.mxu0 %v3310_v19  ;;  %v1981_v19 = vld [vmem:[%s4189_s18 + $0x180] sm:$0xff] }
 0xb01   : > { %2412 = vmatprep.subr.bf16.mxu1 %v3313_v21  ;;  %2363 = vmatprep.subr.bf16.mxu0 %v3319_v22  ;;  %v3359_v17 = vcombine.high %v1981_v19, %v1985_v13  ;;  %v1986_v21 = vld [vmem:[%s4189_s18 + $0x1a8] sm:$0xff]  ;;  %v1989_v22 = vld [vmem:[%s4189_s18 + $0x1c0] sm:$0xff]  ;;  %v3358_v31 = vcombine.low %v1981_v19, %v1985_v13  ;;  %v1959_v19 = vld [vmem:[%s4189_s18 + $0xd0] sm:$0xff] }
 0xb02   : > { %v3635_v8 = vpop.f32.mrb[24].mxu1  ;;  %v1963_v13 = vld [vmem:[%s4189_s18 + $0xf0] sm:$0xff] }
 0xb03   : > { %v1800_v9 = vpop.f32.mrb[25].mxu1  ;;  %v1819_v20 = vpack.c.bf16 %v3635_v8, %v3635_v8 }
 0xb04   : > { %v3636_v10 = vpop.f32.mrb[26].mxu1  ;;  %2364 = vmatpush1.bf16.msra.mxu0 %v3318_v34  ;;  %v1936_v34 = vld [vmem:[%s4189_s18 + $0x18] sm:$0xff] }
 0xb05   : > { %v1803_v14 = vpop.f32.mrb[27].mxu1  ;;  %2365 = vmatprep.subr.bf16.mxu0 %v3327_v36  ;;  %v3367_v36 = vcombine.high %v1989_v22, %v1993_v26 }
 0xb06   : > { %v1818_v12 = vpack.c.bf16 %v1803_v14, %v1800_v9  ;;  %v1973_v14 = vld [vmem:[%s4189_s18 + $0x140] sm:$0xff] }
 0xb08   : > { %3641 = vmatprep.mubr.msk.bf16.mxu1 %vm915_vm0, %v1818_v12  ;;  %2366 = vmatpush1.bf16.msra.mxu0 %v3326_v38  ;;  %v1977_v12 = vld [vmem:[%s4189_s18 + $0x160] sm:$0xff]  ;;  %v1940_v38 = vld [vmem:[%s4189_s18 + $0x38] sm:$0xff] }
 0xb09   : > { %3642 = vmatmul.mubr.msk.bf16.vlgmr.msra.gmra.mrb[28].mxu1 %vm915_vm0, %v1819_v20  ;;  %2367 = vmatprep.subr.bf16.mxu0 %v3335_v57  ;;  %v1974_v20 = vld [vmem:[%s4189_s18 + $0x148] sm:$0xff]  ;;  %v3350_v23 = vcombine.low %v1973_v14, %v1977_v12  ;;  %v3351_v25 = vcombine.high %v1973_v14, %v1977_v12  ;;  %v1956_v14 = vld [vmem:[%s4189_s18 + $0xb8] sm:$0xff] }
 0xb0a   : > { %2444 = vmatprep.mubr.bf16.mxu1 %v3979_v30  ;;  %2413 = vmatpush1.bf16.msra.mxu1 %v3312_v18  ;;  %v3352_v15 = vcombine.low %v1974_v20, %v1978_v28  ;;  %v3353_v16 = vcombine.high %v1974_v20, %v1978_v28  ;;  %v1982_v18 = vld [vmem:[%s4189_s18 + $0x188] sm:$0xff] }
 0xb0b   : > { %2414 = vmatprep.subr.bf16.mxu1 %v3321_v29  ;;  %v3361_v24 = vcombine.high %v1982_v18, %v1986_v21  ;;  %v1994_v29 = vld [vmem:[%s4189_s18 + $0x1e8] sm:$0xff] }
 0xb0c   : > { %2368 = vmatpush1.bf16.msra.mxu0 %v3334_v59  ;;  %v1944_v59 = vld [vmem:[%s4189_s18 + $0x58] sm:$0xff] }
 0xb0e   : > { %2415 = vmatpush1.bf16.msra.mxu1 %v3320_v35  ;;  %v3360_v35 = vcombine.low %v1982_v18, %v1986_v21 }
 0xb0f   : > { %2416 = vmatprep.subr.bf16.mxu1 %v3329_v37  ;;  %v3314_v37 = vcombine.low %v1935_v32, %v1939_v33 }
 0xb12   : > { %2417 = vmatpush1.bf16.msra.mxu1 %v3328_v39  ;;  %v3369_v39 = vcombine.high %v1990_v27, %v1994_v29 }
 0xbdc   : > { %v3643_v40 = vpop.f32.mrb[28].mxu1 }
 0xbdd   : > { %v1888_v41 = vadd.f32 %v3643_v40, %v1642_v62  ;;  %v1872_v42 = vpop.f32.mrb[29].mxu1  ;;  %v3337_v62 = vcombine.high %v1958_v56, %v1962_v58  ;;  %v3316_v40 = vcombine.low %v1936_v34, %v1940_v38  ;;  %v1943_v56 = vld [vmem:[%s4189_s18 + $0x50] sm:$0xff] }
 0xbde   : > { %v1886_v43 = vadd.f32 %v1872_v42, %v1640_v3  ;;  %v3644_v44 = vpop.f32.mrb[30].mxu1  ;;  %v1969_v3 = vld [vmem:[%s4189_s18 + $0x120] sm:$0xff]  ;;  %v3368_v42 = vcombine.low %v1990_v27, %v1994_v29  ;;  %v1947_v58 = vld [vmem:[%s4189_s18 + $0x70] sm:$0xff]  ;;  %v1968_v29 = vld [vmem:[%s4189_s18 + $0x118] sm:$0xff] }
 0xbdf   : > { %v1875_v46 = vpop.f32.mrb[31].mxu1  ;;  %v1891_v47 = vadd.f32 %v3868_v63, %v1888_v41  ;;  %2418 = vmatprep.subr.bf16.mxu1 %v3337_v62  ;;  %v3343_v5 = vcombine.high %v1965_v0, %v1969_v3  ;;  %v3342_v8 = vcombine.low %v1965_v0, %v1969_v3  ;;  %v3366_v41 = vcombine.low %v1989_v22, %v1993_v26  ;;  %v1967_v26 = vld [vmem:[%s4189_s18 + $0x110] sm:$0xff] }
 0xbe0   : > { %v1889_v49 = vadd.f32 %v3869_v48, %v1886_v43  ;;  %v1887_v60 = vadd.f32 %v1875_v46, %v1641_v6  ;;  %2419 = vmatpush1.bf16.msra.mxu1 %v3336_v61  ;;  %v1970_v6 = vld [vmem:[%s4189_s18 + $0x128] sm:$0xff]  ;;  %v3315_v43 = vcombine.high %v1935_v32, %v1939_v33  ;;  %v3317_v44 = vcombine.high %v1936_v34, %v1940_v38  ;;  %v1948_v61 = vld [vmem:[%s4189_s18 + $0x78] sm:$0xff]  ;;  %v1971_v27 = vld [vmem:[%s4189_s18 + $0x130] sm:$0xff] }
 0xbe1   : > { %v4493_v7 = vadd.f32 %v3308_v45, %v1891_v47  ;;  %v3344_v9 = vcombine.low %v1966_v4, %v1970_v6  ;;  %v3345_v10 = vcombine.high %v1966_v4, %v1970_v6  ;;  %2369 = vmatprep.subr.bf16.mxu0 %v3343_v5  ;;  %v3323_v4 = vcombine.high %v1943_v56, %v1947_v58  ;;  %v1951_v6 = vld [vmem:[%s4189_s18 + $0x90] sm:$0xff]  ;;  %v1976_v38 = vld [vmem:[%s4189_s18 + $0x158] sm:$0xff] }
 0xbe2   : > { %v4491_v50 = vadd.f32 %v3308_v45, %v1889_v49  ;;  %v1890_v2 = vadd.f32 %v3870_v51, %v1887_v60  ;;  %2370 = vmatpush1.bf16.msra.mxu0 %v3342_v8  ;;  %v3325_v5 = vcombine.high %v1944_v59, %v1948_v61  ;;  %v3322_v12 = vcombine.low %v1943_v56, %v1947_v58 }
 0xbe3   : > { %v1904_v53 = vmul.f32 %v4493_v7, %v4493_v7  ;;  %2420 = vmatprep.subr.bf16.mxu1 %v3345_v10  ;;  %2371 = vmatprep.subr.bf16.mxu0 %v3351_v25  ;;  %v1952_v10 = vld [vmem:[%s4189_s18 + $0x98] sm:$0xff]  ;;  %v3324_v20 = vcombine.low %v1944_v59, %v1948_v61  ;;  %v3339_v22 = vcombine.high %v1959_v19, %v1963_v13  ;;  %v3752_v59 = vld [vmem:[%s4227_s19 + $0x40] sm:$0xff]  }
 0xbe4   : > { %v4495_v11 = vadd.f32 %v3308_v45, %v1890_v2  ;;  %v1902_v52 = vmul.f32 %v4491_v50, %v4491_v50  ;;  %2421 = vmatpush1.bf16.msra.mxu1 %v3344_v9  ;;  %v1955_v9 = vld [vmem:[%s4189_s18 + $0xb0] sm:$0xff]  ;;  %v3333_v25 = vcombine.high %v1952_v10, %v1956_v14  ;;  %v3332_v18 = vcombine.low %v1952_v10, %v1956_v14  ;;  %v3753_v61 = vld [vmem:[%s4227_s19 + $0xc0] sm:$0xff]   ;;  %v3763_v10 = vld [vmem:[%s4227_s19 + $0x90] sm:$0xff]  }
 0xbe5   : > { %2422 = vmatprep.subr.bf16.mxu1 %v3353_v16  ;;  %v1964_v16 = vld [vmem:[%s4189_s18 + $0xf8] sm:$0xff]  ;;  %v3338_v32 = vcombine.low %v1959_v19, %v1963_v13  ;;  %v3347_v34 = vcombine.high %v1967_v26, %v1971_v27  ;;  %v3764_v14 = vld [vmem:[%s4227_s19 + $0x58] sm:$0xff]   ;;  %v3770_v19 = vld [vmem:[%s4227_s19 + $0x20] sm:$0xff]  }
 0xbe6   : > { %1905 = vadd.xlane.f32.xlu1 %v1902_v52  ;;  %v1903_v1 = vmul.f32 %v4495_v11, %v4495_v11  ;;  %2372 = vmatpush1.bf16.msra.mxu0 %v3350_v23  ;;  %v3331_v23 = vcombine.high %v1951_v6, %v1955_v9  ;;  %v3771_v13 = vld [vmem:[%s4227_s19 + $0xa0] sm:$0xff]  }
 0xbe7   : > { %2373 = vmatprep.subr.bf16.mxu0 %v3359_v17  ;;  %v3330_v17 = vcombine.low %v1951_v6, %v1955_v9  ;;  %v3760_v6 = vld [vmem:[%s4227_s19 + $0x50] sm:$0xff]  }
 0xbe8   : > { %1907 = vadd.xlane.f32.xlu0 %v1903_v1  ;;  %2423 = vmatpush1.bf16.msra.mxu1 %v3352_v15  ;;  %v1960_v15 = vld [vmem:[%s4189_s18 + $0xd8] sm:$0xff] }
 0xbe9   : > { %2424 = vmatprep.subr.bf16.mxu1 %v3361_v24  ;;  %v3341_v24 = vcombine.high %v1960_v15, %v1964_v16  ;;  %v3340_v33 = vcombine.low %v1960_v15, %v1964_v16  ;;  %v3762_v9 = vld [vmem:[%s4227_s19 + $0x10] sm:$0xff]   ;;  %v3772_v15 = vld [vmem:[%s4227_s19 + $0x68] sm:$0xff]  }
 0xbea   : > { %1909 = vadd.xlane.f32.xlu1 %v1904_v53  ;;  %2374 = vmatpush1.bf16.msra.mxu0 %v3358_v31  ;;  %v1972_v31 = vld [vmem:[%s4189_s18 + $0x138] sm:$0xff]  ;;  %v3773_v16 = vld [vmem:[%s4227_s19 + $0xe8] sm:$0xff]  }
 0xbeb   : > { %2375 = vmatprep.subr.bf16.mxu0 %v3367_v36  ;;  %v1975_v36 = vld [vmem:[%s4189_s18 + $0x150] sm:$0xff] }
 0xbec   : > { %2425 = vmatpush1.bf16.msra.mxu1 %v3360_v35  ;;  %v3349_v35 = vcombine.high %v1968_v29, %v1972_v31 }
 0xbed   : > { %2426 = vmatprep.subr.bf16.mxu1 %v3369_v39  ;;  %v1980_v39 = vld [vmem:[%s4189_s18 + $0x178] sm:$0xff] }
 0xbee   : > { %2376 = vmatpush1.bf16.msra.mxu0 %v3366_v41  ;;  %v3348_v41 = vcombine.low %v1968_v29, %v1972_v31  ;;  %v3781_v29 = vld [vmem:[%s4227_s19 + $0xf8] sm:$0xff]  }
 0xbef   : > { %2463 = vmatprep.subr.bf16.mxu0 %v3315_v43  ;;  %v3357_v43 = vcombine.high %v1976_v38, %v1980_v39  ;;  %v3782_v31 = vld [vmem:[%s4227_s19 + $0x38] sm:$0xff]  }
 0xbf0   : > { %2427 = vmatpush1.bf16.msra.mxu1 %v3368_v42 }
 0xbf1   : > { %2514 = vmatprep.subr.bf16.mxu1 %v3317_v44  ;;  %v1983_v44 = vld [vmem:[%s4189_s18 + $0x190] sm:$0xff] }
 0xc73   : > { %v1906_v45 = vpop.xlane.xlu1 %1905 }
 0xc74   : > { %v1911_v46 = vmul.f32 0.0078125, %v1906_v45  ;;  %v1987_v45 = vld [vmem:[%s4189_s18 + $0x1b0] sm:$0xff] }
 0xc75   : > { %v1908_v63 = vpop.xlane.xlu0 %1907 }
 0xc76   : > { %v1914_v47 = vadd.f32 1e-08, %v1911_v46  ;;  %v1912_v48 = vmul.f32 0.0078125, %v1908_v63  ;;  %v1984_v46 = vld [vmem:[%s4189_s18 + $0x198] sm:$0xff] }
 0xc77   : > { %v1910_v49 = vpop.xlane.xlu1 %1909  ;;  %v1988_v63 = vld [vmem:[%s4189_s18 + $0x1b8] sm:$0xff] }
 0xc78   : > { %3838 = vrsqrt.f32 %v1914_v47  ;;  %v1915_v60 = vadd.f32 1e-08, %v1912_v48  ;;  %v1913_v51 = vmul.f32 0.0078125, %v1910_v49  ;;  %v3356_v48 = vcombine.low %v1976_v38, %v1980_v39 }
 0xc79   : > { %v3363_v49 = vcombine.high %v1983_v44, %v1987_v45 }
 0xc7a   : > { %3840 = vrsqrt.f32 %v1915_v60  ;;  %v1916_v2 = vadd.f32 1e-08, %v1913_v51  ;;  %v3365_v60 = vcombine.high %v1984_v46, %v1988_v63  ;;  %v1991_v51 = vld [vmem:[%s4189_s18 + $0x1d0] sm:$0xff] }
 0xc7c   : > { %3842 = vrsqrt.f32 %v1916_v2  ;;  %v1995_v2 = vld [vmem:[%s4189_s18 + $0x1f0] sm:$0xff] }
 0xc82   : > { %v3839_v52 = vpop.eup %3838 }
 0xc83   : > { %v1920_v1 = vmul.f32 %v3839_v52, %v4491_v50  ;;  %v1992_v52 = vld [vmem:[%s4189_s18 + $0x1d8] sm:$0xff] }
 0xc84   : > { %v3841_v53 = vpop.eup %3840 }
 0xc85   : > { %v1921_v55 = vmul.f32 %v3841_v53, %v4495_v11  ;;  %v1930_v62 = vmul.f32 %v3309_v54, %v1920_v1  ;;  %v1996_v1 = vld [vmem:[%s4189_s18 + $0x1f8] sm:$0xff]  ;;  %v3362_v53 = vcombine.low %v1983_v44, %v1987_v45 }
 0xc86   : > { %v3843_v57 = vpop.eup %3842  ;;  %v3373_v56 = vcombine.high %v1992_v52, %v1996_v1  ;;  %v3372_v58 = vcombine.low %v1992_v52, %v1996_v1  ;;  %v4644_v1 = vld [vmem:[%s4221_s12] sm:$0xff] }
 0xc87   : > { %v1931_v0 = vmul.f32 %v3309_v54, %v1921_v55  ;;  %v1922_v8 = vmul.f32 %v3843_v57, %v4493_v7  ;;  %v3371_v55 = vcombine.high %v1991_v51, %v1995_v2  ;;  %v3370_v57 = vcombine.low %v1991_v51, %v1995_v2 }
 0xc89   : > { %v4538_v3 = vpack.c.bf16 %v1931_v0, %v1930_v62  ;;  %v1932_v28 = vmul.f32 %v3309_v54, %v1922_v8  ;;  %v3364_v54 = vcombine.low %v1984_v46, %v1988_v63  ;;  %v3754_v62 = vld [vmem:[%s4227_s19] sm:$0xff]   ;;  %v3761_v8 = vld [vmem:[%s4227_s19 + $0xd0] sm:$0xff]  }
 0xc8a   : > { %v3755_v0 = vld [vmem:[%s4227_s19 + $0x80] sm:$0xff]  }
 0xc8b   : > { %2394 = vmatmul.mubr.bf16.vlgmr.msra.gmra.mrb[28].mxu0 %v4538_v3  ;;  %2445 = vmatmul.mubr.bf16.vlgmr.msra.gmra.mrb[32].mxu1 %v4538_v3  ;;  %v4553_v21 = vpack.c.bf16 %v1932_v28, %v1932_v28  ;;  %v3769_v28 = vld [vmem:[%s4227_s19 + $0xe0] sm:$0xff]  }
 0xc8c   : > { %2464 = vmatpush1.bf16.msra.mxu0 %v3314_v37  ;;  %2515 = vmatpush1.bf16.msra.mxu1 %v3316_v40  ;;  %v1979_v37 = vld [vmem:[%s4189_s18 + $0x170] sm:$0xff]  ;;  %v3346_v40 = vcombine.low %v1967_v26, %v1971_v27  ;;  %v3779_v26 = vld [vmem:[%s4227_s19 + $0xb0] sm:$0xff]   ;;  %v3780_v27 = vld [vmem:[%s4227_s19 + $0x78] sm:$0xff]  }
 0xc8d   : > { %2465 = vmatprep.subr.bf16.mxu0 %v3323_v4  ;;  %2516 = vmatprep.subr.bf16.mxu1 %v3325_v5  ;;  %v3355_v42 = vcombine.high %v1975_v36, %v1979_v37  ;;  %v3354_v47 = vcombine.low %v1975_v36, %v1979_v37  ;;  %v3757_v4 = vld [vmem:[%s4227_s19 + $0xc8] sm:$0xff]  }
 0xc8e   : > { %2403 = vmatprep.mubr.bf16.mxu0 %v3979_v30  ;;  %2454 = vmatprep.mubr.bf16.mxu1 %v3979_v30  ;;  %v3759_v5 = vld [vmem:[%s4227_s19 + $0x88] sm:$0xff]  }
 0xc90   : > { %2466 = vmatpush1.bf16.msra.mxu0 %v3322_v12  ;;  %2517 = vmatpush1.bf16.msra.mxu1 %v3324_v20  ;;  %v3765_v12 = vld [vmem:[%s4227_s19 + $0xd8] sm:$0xff]  }
 0xc91   : > { %2467 = vmatprep.subr.bf16.mxu0 %v3331_v23  ;;  %2518 = vmatprep.subr.bf16.mxu1 %v3333_v25  ;;  %v3766_v20 = vld [vmem:[%s4227_s19 + $0x18] sm:$0xff]   ;;  %v3768_v25 = vld [vmem:[%s4227_s19 + $0x60] sm:$0xff]  }
 0xc92   : > { %v3767_v23 = vld [vmem:[%s4227_s19 + $0x98] sm:$0xff]  }
 0xc93   : > { %2404 = vmatmul.mubr.bf16.gmra.mrb[32].mxu0 %v4553_v21  ;;  %2455 = vmatmul.mubr.bf16.gmra.mrb[36].mxu1 %v4553_v21 }
 0xc94   : > { %2468 = vmatpush1.bf16.msra.mxu0 %v3330_v17  ;;  %2519 = vmatpush1.bf16.msra.mxu1 %v3332_v18  ;;  %v3774_v17 = vld [vmem:[%s4227_s19 + $0x28] sm:$0xff]  }
 0xc95   : > { %2469 = vmatprep.subr.bf16.mxu0 %v3339_v22  ;;  %2520 = vmatprep.subr.bf16.mxu1 %v3341_v24  ;;  %v3775_v18 = vld [vmem:[%s4227_s19 + $0xa8] sm:$0xff]   ;;  %v3777_v22 = vld [vmem:[%s4227_s19 + $0xf0] sm:$0xff]  }
 0xc96   : > { %2495 = vmatprep.mubr.bf16.mxu0 %v3979_v30  ;;  %2546 = vmatprep.mubr.bf16.mxu1 %v3979_v30  ;;  %v3778_v24 = vld [vmem:[%s4227_s19 + $0x30] sm:$0xff]  }
 0xc98   : > { %2470 = vmatpush1.bf16.msra.mxu0 %v3338_v32  ;;  %2521 = vmatpush1.bf16.msra.mxu1 %v3340_v33  ;;  %v3783_v32 = vld [vmem:[%s4227_s19 + $0xb8] sm:$0xff]  }
 0xc99   : > { %2471 = vmatprep.subr.bf16.mxu0 %v3347_v34  ;;  %2522 = vmatprep.subr.bf16.mxu1 %v3349_v35 }
 0xc9c   : > { %2472 = vmatpush1.bf16.msra.mxu0 %v3346_v40  ;;  %2523 = vmatpush1.bf16.msra.mxu1 %v3348_v41 }
 0xc9d   : > { %2473 = vmatprep.subr.bf16.mxu0 %v3355_v42  ;;  %2524 = vmatprep.subr.bf16.mxu1 %v3357_v43 }
 0xca0   : > { %2474 = vmatpush1.bf16.msra.mxu0 %v3354_v47  ;;  %2525 = vmatpush1.bf16.msra.mxu1 %v3356_v48  ;;  %v2001_v48 = vlaneseq }
 0xca1   : > { %2475 = vmatprep.subr.bf16.mxu0 %v3363_v49  ;;  %2526 = vmatprep.subr.bf16.mxu1 %v3365_v60 }
 0xca2   : > { %v4637_v49 = vshrl.u32 %v2001_v48, 7 }
 0xca4   : > { %2476 = vmatpush1.bf16.msra.mxu0 %v3362_v53  ;;  %2527 = vmatpush1.bf16.msra.mxu1 %v3364_v54  ;;  %v2019_v60 = vsub.s32 4, %v4637_v49  ;;  %v2027_v51 = vsub.s32 6, %v4637_v49  ;;  %v2023_v2 = vsub.s32 5, %v4637_v49  ;;  %v2031_v52 = vsub.s32 7, %v4637_v49 }
 0xca5   : > { %2477 = vmatprep.subr.bf16.mxu0 %v3371_v55  ;;  %2528 = vmatprep.subr.bf16.mxu1 %v3373_v56 }
 0xca6   : > { %v4647_v53 = vrot.slane %v4644_v1, %v2019_v60  ;;  %v4650_v54 = vrot.slane %v4644_v1, %v2027_v51  ;;  %v4653_v55 = vrot.slane %v4644_v1, %v2023_v2  ;;  %v4656_v56 = vrot.slane %v4644_v1, %v2031_v52 }
 0xca8   : > { %2478 = vmatpush1.bf16.msra.mxu0 %v3370_v57  ;;  %2529 = vmatpush1.bf16.msra.mxu1 %v3372_v58 }
 0xca9   : > { %3473 = vmatprep.subr.bf16.mxu0 %v3752_v59  ;;  %3501 = vmatprep.subr.bf16.mxu1 %v3753_v61 }
 0xcab   : > { %2496 = vmatmul.mubr.bf16.vlgmr.msra.gmra.mrb[36].mxu0 %v4538_v3  ;;  %2547 = vmatmul.mubr.bf16.vlgmr.msra.gmra.mrb[40].mxu1 %v4538_v3  ;;  %v3756_v3 = vld [vmem:[%s4227_s19 + $0x48] sm:$0xff]  }
 0xcac   : > { %2505 = vmatprep.mubr.bf16.mxu0 %v3979_v30  ;;  %2556 = vmatprep.mubr.bf16.mxu1 %v3979_v30  ;;  %v3758_v30 = vld [vmem:[%s4227_s19 + $0x8] sm:$0xff]  }
 0xcad   : > { %3474 = vmatpush3.bf16.msra.mxu0 %v3754_v62  ;;  %3502 = vmatpush3.bf16.msra.mxu1 %v3755_v0 }
 0xcae   : > { %3475 = vmatprep.subr.bf16.mxu0 %v3756_v3  ;;  %3503 = vmatprep.subr.bf16.mxu1 %v3757_v4 }
 0xcb1   : > { %3476 = vmatpush3.bf16.msra.mxu0 %v3758_v30  ;;  %3504 = vmatpush3.bf16.msra.mxu1 %v3759_v5 }
 0xcb2   : > { %3477 = vmatprep.subr.bf16.mxu0 %v3760_v6  ;;  %3505 = vmatprep.subr.bf16.mxu1 %v3761_v8 }
 0xcb3   : > { %2506 = vmatmul.mubr.bf16.gmra.mrb[40].mxu0 %v4553_v21  ;;  %2557 = vmatmul.mubr.bf16.gmra.mrb[44].mxu1 %v4553_v21  ;;  %v3776_v21 = vld [vmem:[%s4227_s19 + $0x70] sm:$0xff]  }
 0xcb5   : > { %3478 = vmatpush3.bf16.msra.mxu0 %v3762_v9  ;;  %3506 = vmatpush3.bf16.msra.mxu1 %v3763_v10 }
 0xcb6   : > { %3479 = vmatprep.subr.bf16.mxu0 %v3764_v14  ;;  %3507 = vmatprep.subr.bf16.mxu1 %v3765_v12 }
 0xcb9   : > { %3480 = vmatpush3.bf16.msra.mxu0 %v3766_v20  ;;  %3508 = vmatpush3.bf16.msra.mxu1 %v3767_v23 }
 0xcba   : > { %3481 = vmatprep.subr.bf16.mxu0 %v3768_v25  ;;  %3509 = vmatprep.subr.bf16.mxu1 %v3769_v28 }
 0xcbd   : > { %3482 = vmatpush3.bf16.msra.mxu0 %v3770_v19  ;;  %3510 = vmatpush3.bf16.msra.mxu1 %v3771_v13 }
 0xcbe   : > { %3483 = vmatprep.subr.bf16.mxu0 %v3772_v15  ;;  %3511 = vmatprep.subr.bf16.mxu1 %v3773_v16 }
 0xcc1   : > { %3484 = vmatpush3.bf16.msra.mxu0 %v3774_v17  ;;  %3512 = vmatpush3.bf16.msra.mxu1 %v3775_v18 }
 0xcc2   : > { %3485 = vmatprep.subr.bf16.mxu0 %v3776_v21  ;;  %3513 = vmatprep.subr.bf16.mxu1 %v3777_v22 }
 0xcc5   : > { %3486 = vmatpush3.bf16.msra.mxu0 %v3778_v24  ;;  %3514 = vmatpush3.bf16.msra.mxu1 %v3779_v26 }
 0xcc6   : > { %3487 = vmatprep.subr.bf16.mxu0 %v3780_v27  ;;  %3515 = vmatprep.subr.bf16.mxu1 %v3781_v29 }
 0xcc9   : > { %3488 = vmatpush3.bf16.msra.mxu0 %v3782_v31  ;;  %3516 = vmatpush3.bf16.msra.mxu1 %v3783_v32 }
 0xd5e   : > { %v4613_v33 = vpop.f32.mrb[28].mxu0  ;;  %v4615_v34 = vpop.f32.mrb[32].mxu1 }
 0xd5f   : > { %v4617_v35 = vpop.f32.mrb[29].mxu0  ;;  %v4619_v36 = vpop.f32.mrb[33].mxu1 }
 0xd60   : > { %v4621_v37 = vpop.f32.mrb[30].mxu0  ;;  %v4623_v38 = vpop.f32.mrb[34].mxu1 }
 0xd61   : > { %v4625_v39 = vpop.f32.mrb[31].mxu0  ;;  %v4627_v40 = vpop.f32.mrb[35].mxu1 }
 0xd66   : > { %v4629_v41 = vpop.f32.mrb[32].mxu0  ;;  %v4631_v42 = vpop.f32.mrb[36].mxu1 }
 0xd67   : > { %v4633_v43 = vpop.f32.mrb[33].mxu0  ;;  %v4635_v44 = vpop.f32.mrb[37].mxu1 }
 0xd68   : > { %v2409_v45 = vpop.f32.mrb[34].mxu0  ;;  %v2460_v46 = vpop.f32.mrb[38].mxu1 }
 0xd69   : > { %v2410_v63 = vpop.f32.mrb[35].mxu0  ;;  %v2461_v47 = vpop.f32.mrb[39].mxu1 }
 0xd7e   : > { %v2497_v57 = vpop.f32.mrb[36].mxu0  ;;  %v2548_v58 = vpop.f32.mrb[40].mxu1 }
 0xd7f   : > { %v4659_v59 = vadd.f32 %v2497_v57, %v4647_v53  ;;  %v4662_v61 = vadd.f32 %v2548_v58, %v4650_v54  ;;  %v2499_v62 = vpop.f32.mrb[37].mxu0  ;;  %v2550_v0 = vpop.f32.mrb[41].mxu1 }
 0xd80   : > { %v4665_v3 = vadd.f32 %v2499_v62, %v4653_v55  ;;  %v4668_v4 = vadd.f32 %v2550_v0, %v4656_v56  ;;  %v2501_v30 = vpop.f32.mrb[38].mxu0  ;;  %v2552_v5 = vpop.f32.mrb[42].mxu1 }
 0xd81   : > { %v2565_v6 = vmul.f32 %v4659_v59, %v4659_v59  ;;  %v2567_v8 = vmul.f32 %v4662_v61, %v4662_v61  ;;  %v4675_v9 = vadd.f32 %v2501_v30, %v4647_v53  ;;  %v4678_v10 = vadd.f32 %v2552_v5, %v4650_v54  ;;  %v2503_v14 = vpop.f32.mrb[39].mxu0  ;;  %v2554_v12 = vpop.f32.mrb[43].mxu1 }
 0xd82   : > { %v2566_v20 = vmul.f32 %v4665_v3, %v4665_v3  ;;  %v2568_v23 = vmul.f32 %v4668_v4, %v4668_v4  ;;  %v4685_v25 = vadd.f32 %v2503_v14, %v4653_v55  ;;  %v4688_v28 = vadd.f32 %v2554_v12, %v4656_v56 }
 0xd83   : > { %v2577_v19 = vmul.f32 %v2565_v6, %v4659_v59  ;;  %v2579_v13 = vmul.f32 %v2567_v8, %v4662_v61  ;;  %v2569_v15 = vmul.f32 %v4675_v9, %v4675_v9  ;;  %v2571_v16 = vmul.f32 %v4678_v10, %v4678_v10 }
 0xd84   : > { %v2578_v17 = vmul.f32 %v2566_v20, %v4665_v3  ;;  %v2580_v18 = vmul.f32 %v2568_v23, %v4668_v4  ;;  %v2570_v21 = vmul.f32 %v4685_v25, %v4685_v25  ;;  %v2572_v22 = vmul.f32 %v4688_v28, %v4688_v28 }
 0xd85   : > { %v2589_v24 = vmul.f32 0.044715, %v2577_v19  ;;  %v2591_v26 = vmul.f32 0.044715, %v2579_v13  ;;  %v2581_v27 = vmul.f32 %v2569_v15, %v4675_v9  ;;  %v2583_v29 = vmul.f32 %v2571_v16, %v4678_v10 }
 0xd86   : > { %v2590_v31 = vmul.f32 0.044715, %v2578_v17  ;;  %v2592_v32 = vmul.f32 0.044715, %v2580_v18  ;;  %v2582_v45 = vmul.f32 %v2570_v21, %v4685_v25  ;;  %v2584_v46 = vmul.f32 %v2572_v22, %v4688_v28  ;;  %v2507_v63 = vpop.f32.mrb[40].mxu0  ;;  %v2558_v47 = vpop.f32.mrb[44].mxu1 }
 0xd87   : > { %v2601_v48 = vadd.f32 %v2589_v24, %v4659_v59  ;;  %v2603_v60 = vadd.f32 %v2591_v26, %v4662_v61  ;;  %v2593_v51 = vmul.f32 0.044715, %v2581_v27  ;;  %v2595_v2 = vmul.f32 0.044715, %v2583_v29  ;;  %v2509_v52 = vpop.f32.mrb[41].mxu0  ;;  %v2560_v57 = vpop.f32.mrb[45].mxu1 }
 0xd88   : > { %v2602_v58 = vadd.f32 %v2590_v31, %v4665_v3  ;;  %v2604_v62 = vadd.f32 %v2592_v32, %v4668_v4  ;;  %v2594_v0 = vmul.f32 0.044715, %v2582_v45  ;;  %v2596_v30 = vmul.f32 0.044715, %v2584_v46  ;;  %v2511_v5 = vpop.f32.mrb[42].mxu0  ;;  %v2562_v6 = vpop.f32.mrb[46].mxu1 }
 0xd89   : > { %v2613_v8 = vmul.f32 0.7978846, %v2601_v48  ;;  %v2615_v14 = vmul.f32 0.7978846, %v2603_v60  ;;  %v2605_v12 = vadd.f32 %v2593_v51, %v4675_v9  ;;  %v2607_v20 = vadd.f32 %v2595_v2, %v4678_v10  ;;  %v2512_v23 = vpop.f32.mrb[43].mxu0  ;;  %v2563_v19 = vpop.f32.mrb[47].mxu1 }
 0xd8a   : > { %v2614_v13 = vmul.f32 0.7978846, %v2602_v58  ;;  %v2616_v15 = vmul.f32 0.7978846, %v2604_v62  ;;  %v2606_v16 = vadd.f32 %v2594_v0, %v4685_v25  ;;  %v2608_v17 = vadd.f32 %v2596_v30, %v4688_v28 }
 0xd8b   : > { %3844 = vtanh.f32 %v2613_v8  ;;  %v2617_v18 = vmul.f32 0.7978846, %v2605_v12  ;;  %v4715_v21 = vadd.f32 %v2507_v63, %v4647_v53  ;;  %v2619_v22 = vmul.f32 0.7978846, %v2607_v20 }
 0xd8c   : > { %3846 = vtanh.f32 %v2615_v14  ;;  %v2618_v24 = vmul.f32 0.7978846, %v2606_v16  ;;  %v4718_v26 = vadd.f32 %v2558_v47, %v4650_v54  ;;  %v4723_v29 = vadd.f32 %v2509_v52, %v4653_v55 }
 0xd8d   : > { %3848 = vtanh.f32 %v2614_v13  ;;  %v2573_v27 = vmul.f32 %v4715_v21, %v4715_v21  ;;  %v4726_v31 = vadd.f32 %v2560_v57, %v4656_v56  ;;  %v2003_v32 = vsub.s32 0, %v4637_v49 }
 0xd8e   : > { %3850 = vtanh.f32 %v2616_v15  ;;  %v2620_v53 = vmul.f32 0.7978846, %v2608_v17  ;;  %v2575_v45 = vmul.f32 %v4718_v26, %v4718_v26  ;;  %v2574_v46 = vmul.f32 %v4723_v29, %v4723_v29 }
 0xd8f   : > { %3852 = vtanh.f32 %v2617_v18  ;;  %v2585_v54 = vmul.f32 %v2573_v27, %v4715_v21  ;;  %v2576_v55 = vmul.f32 %v4726_v31, %v4726_v31  ;;  %v2011_v63 = vsub.s32 2, %v4637_v49 }
 0xd90   : > { %v2007_v56 = vsub.s32 1, %v4637_v49  ;;  %3854 = vtanh.f32 %v2619_v22  ;;  %v2587_v47 = vmul.f32 %v2575_v45, %v4718_v26  ;;  %v2586_v60 = vmul.f32 %v2574_v46, %v4723_v29 }
 0xd91   : > { %3856 = vtanh.f32 %v2618_v24  ;;  %v2597_v48 = vmul.f32 0.044715, %v2585_v54  ;;  %v2588_v51 = vmul.f32 %v2576_v55, %v4726_v31  ;;  %v4742_v2 = vrot.slane %v4644_v1, %v2003_v32 }
 0xd92   : > { %v2015_v52 = vsub.s32 3, %v4637_v49  ;;  %3858 = vtanh.f32 %v2620_v53  ;;  %v2599_v57 = vmul.f32 0.044715, %v2587_v47  ;;  %v2598_v62 = vmul.f32 0.044715, %v2586_v60 }
 0xd93   : > { %v2609_v58 = vadd.f32 %v2597_v48, %v4715_v21  ;;  %v2600_v0 = vmul.f32 0.044715, %v2588_v51  ;;  %v4747_v30 = vrot.slane %v4644_v1, %v2011_v63  ;;  %v4751_v8 = vrot.slane %v4644_v1, %v2007_v56 }
 0xd94   : > { %v2611_v5 = vadd.f32 %v2599_v57, %v4718_v26  ;;  %v2610_v12 = vadd.f32 %v2598_v62, %v4723_v29  ;;  %v2396_v23 = vadd.f32 %v4613_v33, %v4742_v2  ;;  %v4758_v19 = vrot.slane %v4644_v1, %v2015_v52 }
 0xd95   : > { %v3845_v6 = vpop.eup %3844  ;;  %v2621_v14 = vmul.f32 0.7978846, %v2609_v58  ;;  %v2612_v49 = vadd.f32 %v2600_v0, %v4726_v31  ;;  %v2447_v27 = vadd.f32 %v4615_v34, %v4747_v30  ;;  %v2398_v33 = vadd.f32 %v4617_v35, %v4751_v8 }
 0xd96   : > { %v3847_v20 = vpop.eup %3846  ;;  %v2637_v13 = vadd.f32 1.0, %v3845_v6  ;;  %v2623_v15 = vmul.f32 0.7978846, %v2611_v5  ;;  %v2622_v18 = vmul.f32 0.7978846, %v2610_v12  ;;  %v2449_v34 = vadd.f32 %v4619_v36, %v4758_v19 }
 0xd97   : > { %v3849_v16 = vpop.eup %3848  ;;  %v2639_v17 = vadd.f32 1.0, %v3847_v20  ;;  %3860 = vtanh.f32 %v2621_v14  ;;  %v2624_v22 = vmul.f32 0.7978846, %v2612_v49  ;;  %v2400_v14 = vadd.f32 %v4621_v37, %v4742_v2 }
 0xd98   : > { %v3851_v24 = vpop.eup %3850  ;;  %v2649_v32 = vmul.f32 0.5, %v2637_v13  ;;  %3862 = vtanh.f32 %v2623_v15  ;;  %v2638_v53 = vadd.f32 1.0, %v3849_v16  ;;  %v2451_v49 = vadd.f32 %v4623_v38, %v4747_v30 }
 0xd99   : > { %v3853_v45 = vpop.eup %3852  ;;  %v2651_v1 = vmul.f32 0.5, %v2639_v17  ;;  %3864 = vtanh.f32 %v2622_v18  ;;  %v2640_v54 = vadd.f32 1.0, %v3851_v24  ;;  %v2453_v37 = vadd.f32 %v4627_v40, %v4758_v19 }
 0xd9a   : > { %v3855_v46 = vpop.eup %3854  ;;  %v2661_v55 = vmul.f32 %v2649_v32, %v4659_v59  ;;  %v2641_v63 = vadd.f32 1.0, %v3853_v45  ;;  %3866 = vtanh.f32 %v2624_v22  ;;  %v2650_v56 = vmul.f32 0.5, %v2638_v53 }
 0xd9b   : > { %v3857_v47 = vpop.eup %3856  ;;  %v2663_v48 = vmul.f32 %v2651_v1, %v4662_v61  ;;  %v2643_v60 = vadd.f32 1.0, %v3855_v46  ;;  %v2652_v51 = vmul.f32 0.5, %v2640_v54  ;;  %v2406_v40 = vadd.f32 %v4629_v41, %v4742_v2 }
 0xd9c   : > { %v3859_v52 = vpop.eup %3858  ;;  %v2673_v57 = vmul.f32 %v2661_v55, %v2396_v23  ;;  %v2653_v35 = vmul.f32 0.5, %v2641_v63  ;;  %v2642_v58 = vadd.f32 1.0, %v3857_v47  ;;  %v2662_v62 = vmul.f32 %v2650_v56, %v4665_v3 }
 0xd9d   : > { %v2675_v0 = vmul.f32 %v2663_v48, %v2447_v27  ;;  %v2655_v5 = vmul.f32 0.5, %v2643_v60  ;;  %v2644_v59 = vadd.f32 1.0, %v3859_v52  ;;  %v2664_v6 = vmul.f32 %v2652_v51, %v4668_v4 }
 0xd9e   : > { %v2665_v36 = vmul.f32 %v2653_v35, %v4675_v9  ;;  %v2654_v12 = vmul.f32 0.5, %v2642_v58  ;;  %v2674_v61 = vmul.f32 %v2662_v62, %v2398_v33  ;;  %v2402_v3 = vadd.f32 %v4625_v39, %v4751_v8 }
 0xd9f   : > { %v2667_v20 = vmul.f32 %v2655_v5, %v4678_v10  ;;  %v2656_v23 = vmul.f32 0.5, %v2644_v59  ;;  %v2676_v13 = vmul.f32 %v2664_v6, %v2449_v34  ;;  %v2457_v63 = vadd.f32 %v4631_v42, %v4747_v30 }
 0xda0   : > { %v2677_v15 = vmul.f32 %v2665_v36, %v2400_v14  ;;  %v2666_v4 = vmul.f32 %v2654_v12, %v4685_v25  ;;  %v2408_v34 = vadd.f32 %v4633_v43, %v4751_v8  ;;  %v2459_v41 = vadd.f32 %v4635_v44, %v4758_v19  ;;  %v3406_v14 = vld [vmem:[%s598_s14] ss:$0 sm:$0xff]  ;;  %s4860_s14 = sld [smem:[#allocation15_spill]] (!%p3407_p3) }
 0xda1   : > { %v3861_v16 = vpop.eup %3860  ;;  %v2679_v9 = vmul.f32 %v2667_v20, %v2451_v49  ;;  %v2668_v17 = vmul.f32 %v2656_v23, %v4688_v28 }
 0xda2   : > { %v3863_v18 = vpop.eup %3862  ;;  %v2678_v22 = vmul.f32 %v2666_v4, %v2402_v3  ;;  %v2749_v38 = vpack.c.bf16 %v2677_v15, %v2673_v57  ;;  %v2645_v24 = vadd.f32 1.0, %v3861_v16 }
 0xda3   : > { %v3865_v10 = vpop.eup %3864  ;;  %v2680_v27 = vmul.f32 %v2668_v17, %v2453_v37  ;;  %v2751_v32 = vpack.c.bf16 %v2679_v9, %v2675_v0  ;;  %v2647_v53 = vadd.f32 1.0, %v3863_v18 }
 0xda4   : > { %v3867_v45 = vpop.eup %3866  ;;  %v2750_v39 = vpack.c.bf16 %v2678_v22, %v2674_v61  ;;  %v2646_v33 = vadd.f32 1.0, %v3865_v10  ;;  %v2657_v1 = vmul.f32 0.5, %v2645_v24 }
 0xda5   : > { %v2752_v25 = vpack.c.bf16 %v2680_v27, %v2676_v13  ;;  %v2648_v54 = vadd.f32 1.0, %v3867_v45  ;;  %v2659_v46 = vmul.f32 0.5, %v2647_v53 }
 0xda6   : > { %2981 = vmatprep.mubr.bf16.mxu0 %v2750_v39  ;;  %v2658_v28 = vmul.f32 0.5, %v2646_v33  ;;  %v2669_v55 = vmul.f32 %v2657_v1, %v4715_v21 }
 0xda7   : > { %3029 = vmatprep.mubr.bf16.mxu1 %v2752_v25  ;;  %2982 = vmatmul.mubr.bf16.vlgmr.msra.gmra.mrb[44].mxu0 %v2749_v38  ;;  %v2660_v56 = vmul.f32 0.5, %v2648_v54  ;;  %v2671_v47 = vmul.f32 %v2659_v46, %v4718_v26  ;;  %v3409_v25 = vld [vmem:[%s4860_s14] ss:$0 sm:$0xff] (!%p3407_p3) }
 0xda8   : > { %3030 = vmatmul.mubr.bf16.vlgmr.msra.gmra.mrb[48].mxu1 %v2751_v32  ;;  %v2670_v48 = vmul.f32 %v2658_v28, %v4723_v29  ;;  %v2681_v60 = vmul.f32 %v2669_v55, %v2406_v40 }
 0xda9   : > { %v2672_v21 = vmul.f32 %v2660_v56, %v4726_v31  ;;  %v2683_v2 = vmul.f32 %v2671_v47, %v2457_v63 }
 0xdaa   : > { %v2682_v51 = vmul.f32 %v2670_v48, %v2408_v34  ;;  %v2753_v57 = vpack.c.bf16 %v2681_v60, %v2681_v60 }
 0xdab   : > { %v2684_v42 = vmul.f32 %v2672_v21, %v2459_v41  ;;  %v2755_v26 = vpack.c.bf16 %v2683_v2, %v2683_v2 }
 0xdac   : > { %v2754_v30 = vpack.c.bf16 %v2682_v51, %v2682_v51 }
 0xdad   : > { %v2756_v52 = vpack.c.bf16 %v2684_v42, %v2684_v42 }
 0xdae   : > { %2989 = vmatprep.mubr.bf16.mxu0 %v2754_v30 }
 0xdaf   : > { %3037 = vmatprep.mubr.bf16.mxu1 %v2756_v52  ;;  %2990 = vmatmul.mubr.bf16.gmra.mrb[48].mxu0 %v2753_v57 }
 0xdb0   : > { %3038 = vmatmul.mubr.bf16.gmra.mrb[52].mxu1 %v2755_v26 }
 0xe7a   : > { %v3489_v43 = vpop.f32.mrb[44].mxu0 }
 0xe7b   : > { %v3517_v29 = vpop.f32.mrb[48].mxu1  ;;  %v3490_v8 = vpop.f32.mrb[45].mxu0 }
 0xe7c   : > { %v3491_v35 = vadd.f32 %v3490_v8, %v3489_v43  ;;  %v3518_v58 = vpop.f32.mrb[49].mxu1  ;;  %v3492_v44 = vpop.f32.mrb[46].mxu0 }
 0xe7d   : > { %v3519_v19 = vadd.f32 %v3518_v58, %v3517_v29  ;;  %v3520_v31 = vpop.f32.mrb[50].mxu1  ;;  %v3493_v62 = vpop.f32.mrb[47].mxu0 }
 0xe7e   : > { %v3494_v0 = vadd.f32 %v3493_v62, %v3492_v44  ;;  %v3521_v5 = vpop.f32.mrb[51].mxu1 }
 0xe7f   : > { %v3032_v59 = vadd.f32 %v3519_v19, %v3491_v35  ;;  %v3522_v6 = vadd.f32 %v3521_v5, %v3520_v31 }
 0xe81   : > { %v3045_v36 = vadd.f32 %v3032_v59, %v4491_v50  ;;  %v3035_v12 = vadd.f32 %v3522_v6, %v3494_v0 }
 0xe82   : > { %v3495_v61 = vpop.f32.mrb[48].mxu0 }
 0xe83   : > { %v3055_v49 = vadd.f32 %v3406_v14, %v3045_v36  ;;  %v3046_v20 = vadd.f32 %v3035_v12, %v4495_v11  ;;  %v3523_v23 = vpop.f32.mrb[52].mxu1  ;;  %v3496_v13 = vpop.f32.mrb[49].mxu0 }
 0xe84   : > { %v3497_v3 = vadd.f32 %v3496_v13, %v3495_v61  ;;  %v3524_v15 = vpop.f32.mrb[53].mxu1  ;;  %v3498_v4 = vpop.f32.mrb[50].mxu0 }
 0xe85   : > { %3058 = vst [vmem:[#allocation2] sm:$0xff] %v3055_v49  ;;  %v3056_v16 = vadd.f32 %v3406_v14, %v3046_v20  ;;  %v3525_v37 = vadd.f32 %v3524_v15, %v3523_v23  ;;  %v3526_v9 = vpop.f32.mrb[54].mxu1  ;;  %v3499_v17 = vpop.f32.mrb[51].mxu0 }
 0xe86   : > { %v3527_v18 = vpop.f32.mrb[55].mxu1 }
 0xe87   : > { %3059 = vst [vmem:[#allocation2 + $0x8] sm:$0xff] %v3056_v16  ;;  %v3040_v22 = vadd.f32 %v3525_v37, %v3497_v3  ;;  %3064 = sbr.rel (%p3407_p3) target bundleno = 4038 (0xfc6), region = 88  ;;  %v3066_v11 = vrot.slane (!%p3407_p3), %v3056_v16, 3 }
 0xe89   : > { %v3047_v50 = vadd.f32 %v3040_v22, %v4493_v7  ;;  %v3408_v7 = vld [vmem:[%s4836_s11] ss:$0 sm:$0xff] (!%p3407_p3) }
 0xe8b   : > { %v3057_v38 = vadd.f32 %v3406_v14, %v3047_v50 }
 0xe8d   : > { %3060 = vst [vmem:[#allocation2 + $0x10] sm:$0xff] %v3057_v38  ;;  %v3069_v24 = vrot.slane (!%p3407_p3), %v3057_v38, 6 }
 0xe8f   : > { %v3072_v10 = vsel %vm3071_vm3, %v3066_v11, %v3069_v24 }
 0xe90   : > { %v3073_v27 = vmul.f32 %v3072_v10, %v3072_v10 }
 0xe92   : > { %v3075_v32 = vsel %vm3074_vm4, %v3073_v27, 0.0 }
 0xe93   : > { %3076 = vadd.xlane.f32.xlu0 %v3075_v32 }
 0xf20   : > { %v3077_v53 = vpop.xlane.xlu0 %3076 }
 0xf21   : > { %v3078_v45 = vmul.f32 0.0078125, %v3077_v53 }
 0xf23   : > { %v3079_v39 = vadd.f32 1e-08, %v3078_v45 }
 0xf25   : > { %3871 = vrsqrt.f32 %v3079_v39 }
 0xf2f   : > { %v3872_v33 = vpop.eup %3871 }
 0xf30   : > { %v3081_v1 = vmul.f32 %v3872_v33, %v3072_v10 }
 0xf32   : > { %v3089_v54 = vmul.f32 %v3408_v7, %v3081_v1 }
 0xf34   : > { %v3097_v46 = vmul.f32 %v3409_v25, %v3089_v54 }
 0xf36   : > { %v3098_v40 = vsel %vm3074_vm4, %v3097_v46, 0.0 }
 0xf37   : > { %3099 = vadd.xlane.f32.xlu0 %v3098_v40 }
 0xfc4   : > { %v3100_v28 = vpop.xlane.xlu0 %3099 }
 0xfc5   : > { %3101 = vst [vmem:[%s4861_s24] sm:$0x3] %v3100_v28 }
 0xfc6 PF: > { %s4862_s28 = sld [smem:[#allocation11_spill]]  ;;  %s4863_s25 = sld [smem:[#allocation9_spill]] }
 0xfc7   : > { %s4864_s26 = sld [smem:[#allocation10_spill]]  ;;  %s4865_s27 = sld [smem:[#allocation12_spill]] }
 0xfcc   : > { %p26_p6 = scmp.ge.s32.totalorder %s4862_s28, 4  }
 0xfce   :  { %28 = sbr.rel (!%p26_p6) target bundleno = 10 (0xa), region = 150 }
 0xfd5   :  { %3113 = vsyncpa [#allocation4], 1 }
 0xfd6   :  { %3115 = vsyncpa [#allocation4 + $0x1], 1 }
 0xfd7   :  { %3116 = vsyncpa [#allocation6], 1 }
 0xfd8   :  { %3118 = vsyncpa [#allocation6 + $0x1], 1 }

</bundles_post_ra>
